<compile_context>
chip_gen: v7x
topology: tpu7x:2x2x1
jax: 0.10.0
libtpu: 0.0.40
codegen_flags: <defaults>
</compile_context>

<pallas_src>
import functools
import math

import jax
import jax.numpy as jnp
from jax import lax
from jax.experimental import pallas as pl
from jax.experimental.pallas import tpu as pltpu

_EPS = 1e-5


# --------------------------- hardware / feature probes ---------------------- #

def _detect_vmem_bytes():
    try:
        info = pltpu.get_tpu_info()
        cap = int(getattr(info, "vmem_capacity_bytes", 0) or 0)
        if cap >= 16 * 1024 * 1024:
            return cap
    except Exception:
        pass
    return 64 * 1024 * 1024          # conservative (v7x per-TensorCore)


_VMEM_CAP = _detect_vmem_bytes()
_VMEM_LIMIT = int(min(_VMEM_CAP * 3 // 4, 96 * 1024 * 1024))
_VMEM_BUDGET = int(min(_VMEM_CAP // 2, 48 * 1024 * 1024))


def _probe_buffered():
    """pipeline_mode=pl.Buffered(1) (no double-buffering of constant blocks)."""
    try:
        def k(x_ref, w_ref, o_ref):
            o_ref[...] = x_ref[...] + w_ref[...]

        x = jnp.zeros((16, 128), jnp.float32)
        w = jnp.ones((8, 128), jnp.float32)
        out = pl.pallas_call(
            k,
            out_shape=jax.ShapeDtypeStruct((16, 128), jnp.float32),
            grid=(2,),
            in_specs=[pl.BlockSpec((8, 128), lambda i: (i, 0)),
                      pl.BlockSpec((8, 128), lambda i: (0, 0),
                                   pipeline_mode=pl.Buffered(1))],
            out_specs=pl.BlockSpec((8, 128), lambda i: (i, 0)),
        )(x, w)
        jax.block_until_ready(out)
        return True
    except Exception:
        return False


def _probe_regroup():
    """(rows, C) -> (rows/g, g*C) lane-dense regroup reshape inside a kernel."""
    try:
        def k(x_ref, o_ref):
            o_ref[...] = x_ref[...].reshape(o_ref.shape) * 2.0

        x = jnp.arange(128 * 8, dtype=jnp.float32).reshape(128, 8)
        out = pl.pallas_call(
            k, out_shape=jax.ShapeDtypeStruct((8, 128), jnp.float32))(x)
        jax.block_until_ready(out)
        return bool(jnp.array_equal(out.reshape(-1), x.reshape(-1) * 2.0))
    except Exception:
        return False


_HAS_BUFFERED = _probe_buffered()
_CAN_REGROUP = _probe_regroup()


# --------------------------------- helpers ---------------------------------- #

def _round_up(x, m):
    return (x + m - 1) // m * m


def _resident(shape, index_map):
    """BlockSpec for a constant-index (VMEM-resident) block: no double buffering."""
    if _HAS_BUFFERED:
        return pl.BlockSpec(shape, index_map, pipeline_mode=pl.Buffered(1))
    return pl.BlockSpec(shape, index_map)


def _choose_tm(m_rows, stream_bytes_per_row, resident_bytes):
    """Row-tile from a per-generation VMEM budget (double-buffered streams +
    resident weights + in-kernel temporaries); keeps >= 2 tiles for megacore."""
    avail = max(_VMEM_BUDGET - resident_bytes, 128 * max(stream_bytes_per_row, 1))
    tm = avail // max(stream_bytes_per_row, 1)
    tm = max(128, min(4096, (tm // 128) * 128))
    tm = min(tm, _round_up(m_rows, 128))
    while tm > 128 and m_rows > 128 and pl.cdiv(m_rows, tm) < 2:
        tm = max(128, ((tm // 2) // 128) * 128)
    return tm


def _out_group(last_dim, tm_rows, total_rows):
    """Row-group factor so the output slab is lane-dense (last dim -> 128)."""
    if not _CAN_REGROUP or last_dim >= 128 or 128 % last_dim:
        return 1
    g = 128 // last_dim
    if tm_rows % g or total_rows % g or (tm_rows // g) % 8:
        return 1
    return g


def _fold_bn(bn):
    gamma, beta, mean, var = bn
    scale = gamma / jnp.sqrt(var + _EPS)
    return scale, beta - mean * scale


def _folded(w, bn):
    """Fold BN scale into the conv weight (last axis = out channels)."""
    scale, bias = _fold_bn(bn)
    return (w * scale).astype(jnp.bfloat16), bias


# ------------------------------- Pallas kernels ----------------------------- #

def _bottleneck_frame_kernel(x0_ref, x1_ref, x2_ref, w1_ref, b1_ref,
                             w2_ref, b2_ref, w3_ref, b3_ref, *rest,
                             H, W, shortcut):
    """Whole bottleneck for one (image, frame) at stride (1,1,1).

    x0/x1/x2 are the three temporal taps (views of the temporally padded input);
    the conv1 activation is staged into a spatially padded VMEM scratch, the nine
    1x3x3 conv2 taps are read from it, then conv3 + BN + ReLU + shortcut.  No
    intermediate activation touches HBM; x1 (centre tap) is the residual input."""
    buf = rest[-1]
    o_ref = rest[-2]
    t = w1_ref.shape[-1]
    HW = H * W

    # conv1: temporal 3x1x1 + folded-BN bias + ReLU  (f32 accumulation)
    a = jnp.dot(x0_ref[0].astype(jnp.bfloat16), w1_ref[0],
                preferred_element_type=jnp.float32)
    a += jnp.dot(x1_ref[0].astype(jnp.bfloat16), w1_ref[1],
                 preferred_element_type=jnp.float32)
    a += jnp.dot(x2_ref[0].astype(jnp.bfloat16), w1_ref[2],
                 preferred_element_type=jnp.float32)
    a = jnp.maximum(a + b1_ref[...], 0.0).astype(jnp.bfloat16)      # (HW, t)

    # stage the spatially padded conv1 frame in VMEM (halo = zeros)
    buf[...] = jnp.zeros_like(buf)
    buf[1:H + 1, 1:W + 1, :] = a.reshape(H, W, t)

    # conv2: 1x3x3, nine taps accumulated straight from the VMEM scratch
    acc = jnp.zeros((HW, t), jnp.float32)
    for kh in range(3):
        for kw in range(3):
            tap = buf[kh:kh + H, kw:kw + W, :].reshape(HW, t)
            acc += jnp.dot(tap, w2_ref[kh, kw],
                           preferred_element_type=jnp.float32)
    y = jnp.maximum(acc + b2_ref[...], 0.0)

    # conv3: pointwise 1x1x1
    y = jnp.dot(y.astype(jnp.bfloat16), w3_ref[...],
                preferred_element_type=jnp.float32)
    y = jnp.maximum(y + b3_ref[...], 0.0)

    # residual shortcut (centre tap == original input frame)
    xc = x1_ref[0]
    if shortcut == "proj":
        wsc_ref, bsc_ref = rest[0], rest[1]
        y = y + (jnp.dot(xc.astype(jnp.bfloat16), wsc_ref[...],
                         preferred_element_type=jnp.float32) + bsc_ref[...])
    else:                                   # identity (Cin == Cout), exact f32 add
        y = y + xc

    o_ref[0] = y.reshape(o_ref.shape[1:]).astype(o_ref.dtype)


def _conv1_kernel(x0_ref, x1_ref, x2_ref, w_ref, b_ref, o_ref):
    """Temporal 3x1x1 conv + folded-BN bias + ReLU; three taps in one grid step."""
    y = jnp.dot(x0_ref[...], w_ref[0], preferred_element_type=jnp.float32)
    y += jnp.dot(x1_ref[...], w_ref[1], preferred_element_type=jnp.float32)
    y += jnp.dot(x2_ref[...], w_ref[2], preferred_element_type=jnp.float32)
    y = jnp.maximum(y + b_ref[...], 0.0)
    o_ref[...] = y.reshape(o_ref.shape).astype(o_ref.dtype)


def _matmul_bias_relu_kernel(x_ref, w_ref, b_ref, o_ref):
    y = jnp.dot(x_ref[...], w_ref[...], preferred_element_type=jnp.float32)
    y = jnp.maximum(y + b_ref[...], 0.0)
    o_ref[...] = y.reshape(o_ref.shape).astype(o_ref.dtype)


def _tail_im2col_kernel(c2_ref, w2_ref, b2_ref, w3_ref, b3_ref, *rest, shortcut):
    """conv2 (im2col matmul) + BN + ReLU fused with conv3 + BN + ReLU (+ shortcut)."""
    o_ref = rest[-1]
    y = jnp.dot(c2_ref[...], w2_ref[...], preferred_element_type=jnp.float32)
    y = jnp.maximum(y + b2_ref[...], 0.0)
    y = jnp.dot(y.astype(jnp.bfloat16), w3_ref[...],
                preferred_element_type=jnp.float32)
    y = jnp.maximum(y + b3_ref[...], 0.0)
    if shortcut == "proj":
        x_ref, wsc_ref, bsc_ref = rest[0], rest[1], rest[2]
        y = y + (jnp.dot(x_ref[...], wsc_ref[...],
                         preferred_element_type=jnp.float32) + bsc_ref[...])
    elif shortcut == "identity":
        y = y + rest[0][...].astype(jnp.float32)
    o_ref[...] = y.reshape(o_ref.shape).astype(o_ref.dtype)


# ------------------------------ kernel wrappers ------------------------------ #

def _frame_fits(H, W, Cin, t, Cout):
    """Can the fully-fused per-frame kernel keep its working set in VMEM?"""
    if (H * W) % 8 or W % 8:
        return False
    hw = H * W
    nbuf = 1 if _HAS_BUFFERED else 2
    frame = (3 * 2 * hw * Cin * 4            # three temporal tap views, double-buffered
             + (H + 2) * (W + 2) * t * 2     # padded conv1 frame (VMEM scratch)
             + 2 * hw * Cout * 4             # output frame, double-buffered
             + hw * t * 10)                  # f32 accumulators + bf16 copies
    weights = (3 * Cin * t + 9 * t * t + t * Cout + Cin * Cout) * 2 * nbuf
    return frame + weights <= _VMEM_BUDGET


def _bottleneck_fused_stride1(x, w1f, b1, w2f, b2, w3f, b3, wscf, bsc):
    """One Pallas kernel per frame: conv1+conv2+conv3+BNs+ReLUs+shortcut."""
    N, T, H, W, Cin = x.shape
    t = w1f.shape[-1]
    Cout = w3f.shape[-1]
    HW = H * W
    NT = N * T
    shortcut = "proj" if wscf is not None else "identity"

    # Temporally padded input; the dt=1 view doubles as the residual frame.
    xp = jnp.pad(x, ((0, 0), (1, 1), (0, 0), (0, 0), (0, 0)))
    xr = xp.reshape(N * (T + 2), HW, Cin)

    F = HW * Cout
    if _CAN_REGROUP and F % 128 == 0:
        out_tail = (F // 128, 128)            # lane-dense output slab
    else:
        out_tail = (HW, Cout)

    def tap_spec(dt):
        return pl.BlockSpec((1, HW, Cin),
                            lambda n, to, dt=dt: (n * (T + 2) + to + dt, 0, 0))

    in_specs = [tap_spec(0), tap_spec(1), tap_spec(2),
                _resident((3, Cin, t), lambda n, to: (0, 0, 0)),
                _resident((1, t), lambda n, to: (0, 0)),
                _resident((3, 3, t, t), lambda n, to: (0, 0, 0, 0)),
                _resident((1, t), lambda n, to: (0, 0)),
                _resident((t, Cout), lambda n, to: (0, 0)),
                _resident((1, Cout), lambda n, to: (0, 0))]
    args = [xr, xr, xr, w1f, b1.reshape(1, t), w2f, b2.reshape(1, t),
            w3f, b3.reshape(1, Cout)]
    if shortcut == "proj":
        in_specs += [_resident((Cin, Cout), lambda n, to: (0, 0)),
                     _resident((1, Cout), lambda n, to: (0, 0))]
        args += [wscf, bsc.reshape(1, Cout)]

    out = pl.pallas_call(
        functools.partial(_bottleneck_frame_kernel, H=H, W=W, shortcut=shortcut),
        out_shape=jax.ShapeDtypeStruct((NT,) + out_tail, x.dtype),
        grid=(N, T),
        in_specs=in_specs,
        out_specs=pl.BlockSpec((1,) + out_tail, lambda n, to: (n * T + to, 0, 0)),
        scratch_shapes=[pltpu.VMEM((H + 2, W + 2, t), jnp.bfloat16)],
        compiler_params=pltpu.CompilerParams(
            dimension_semantics=("parallel", "parallel"),
            vmem_limit_bytes=_VMEM_LIMIT),
    )(*args)
    return out.reshape(N, T, H, W, Cout)


def _conv1_fallback(x_nthwc, w1f, b1):
    # TODO(synk): temporal-im2col fallback for H*W not a multiple of 8.
    N, T, H, W, Cin = x_nthwc.shape
    t = w1f.shape[-1]
    xp = jnp.pad(x_nthwc, ((0, 0), (1, 1), (0, 0), (0, 0), (0, 0)))
    cols = jnp.stack([xp[:, dt:dt + T] for dt in range(3)], axis=4)
    cols = cols.reshape(N * T * H * W, 3 * Cin).astype(jnp.bfloat16)
    w = w1f.reshape(3 * Cin, t)
    M = cols.shape[0]
    stream = 2 * (3 * Cin * 2 + t * 2) + t * 4
    tm = _choose_tm(M, stream, 3 * Cin * t * 2 + t * 4)
    Mp = _round_up(M, tm)
    cols = jnp.pad(cols, ((0, Mp - M), (0, 0)))
    g = _out_group(t, tm, Mp)
    out = pl.pallas_call(
        _matmul_bias_relu_kernel,
        out_shape=jax.ShapeDtypeStruct((Mp // g, g * t), jnp.bfloat16),
        grid=(Mp // tm,),
        in_specs=[pl.BlockSpec((tm, 3 * Cin), lambda i: (i, 0)),
                  _resident((3 * Cin, t), lambda i: (0, 0)),
                  _resident((1, t), lambda i: (0, 0))],
        out_specs=pl.BlockSpec((tm // g, g * t), lambda i: (i, 0)),
        compiler_params=pltpu.CompilerParams(
            dimension_semantics=("parallel",), vmem_limit_bytes=_VMEM_LIMIT),
    )(cols, w, b1.reshape(1, t))
    return out.reshape(Mp, t)[:M]


def conv1_temporal(x_nthwc, w1f, b1):
    """3x1x1 temporal conv + folded-BN bias + ReLU (used by the fallback paths).

    The three temporal taps are three block-aligned views of the padded input,
    all consumed in a single grid step; weights/bias stay VMEM-resident."""
    N, T, H, W, Cin = x_nthwc.shape
    t = w1f.shape[-1]
    HW = H * W

    gt = 128 // t if (_CAN_REGROUP and t < 128 and 128 % t == 0) else 1
    align = (8 * gt) // math.gcd(8, gt) if gt > 1 else 8

    stream = 2 * (3 * Cin * 2 + t * 2) + t * 4
    resident = 3 * Cin * t * 2 * (1 if _HAS_BUFFERED else 2) + t * 4
    budget = max(_VMEM_BUDGET - resident, align * stream)
    tm = 0
    cap = min(HW, max(budget // stream, align))
    for d in range(cap, align - 1, -1):
        if HW % d == 0 and d % align == 0:   # tile must divide H*W (tap alignment)
            tm = d
            break
    if tm == 0:
        return _conv1_fallback(x_nthwc, w1f, b1)
    if tm % gt or (tm // gt) % 8:
        gt = 1

    M = N * T * HW
    xp = jnp.pad(x_nthwc, ((0, 0), (1, 1), (0, 0), (0, 0), (0, 0)))
    x_flat = xp.reshape(N * (T + 2) * HW, Cin).astype(jnp.bfloat16)

    hw_tiles = HW // tm
    tiles_per_img = T * HW // tm
    tpp = (T + 2) * HW // tm

    def tap_spec(dt):
        return pl.BlockSpec((tm, Cin),
                            lambda n, j, dt=dt: (n * tpp + j + dt * hw_tiles, 0))

    out = pl.pallas_call(
        _conv1_kernel,
        out_shape=jax.ShapeDtypeStruct((M // gt, gt * t), jnp.bfloat16),
        grid=(N, tiles_per_img),
        in_specs=[tap_spec(0), tap_spec(1), tap_spec(2),
                  _resident((3, Cin, t), lambda n, j: (0, 0, 0)),
                  _resident((1, t), lambda n, j: (0, 0))],
        out_specs=pl.BlockSpec((tm // gt, gt * t),
                               lambda n, j: (n * tiles_per_img + j, 0)),
        compiler_params=pltpu.CompilerParams(
            dimension_semantics=("parallel", "parallel"),
            vmem_limit_bytes=_VMEM_LIMIT),
    )(x_flat, x_flat, x_flat, w1f, b1.reshape(1, t))
    return out.reshape(M, t)


def tail_im2col(cols2, w2m, b2, w3f, b3, out_dtype,
                shortcut=None, sc_x=None, wscf=None, bsc=None):
    """Fused conv2(im2col) + BN + ReLU + conv3 + BN + ReLU (+ shortcut)."""
    M, K2 = cols2.shape
    t = w2m.shape[1]
    Cout = w3f.shape[1]
    out_is = jnp.dtype(out_dtype).itemsize

    stream = 2 * K2 * 2 + 2 * Cout * out_is + t * 6
    if sc_x is not None:
        stream += 2 * sc_x.shape[1] * sc_x.dtype.itemsize
    nbuf = 1 if _HAS_BUFFERED else 2
    resident = (K2 * t + t * Cout) * 2 * nbuf + (t + 2 * Cout) * 4
    tm = _choose_tm(M, stream, resident)
    Mp = _round_up(M, tm)
    cols2p = jnp.pad(cols2, ((0, Mp - M), (0, 0)))
    g = _out_group(Cout, tm, Mp)

    in_specs = [pl.BlockSpec((tm, K2), lambda i: (i, 0)),
                _resident((K2, t), lambda i: (0, 0)),
                _resident((1, t), lambda i: (0, 0)),
                _resident((t, Cout), lambda i: (0, 0)),
                _resident((1, Cout), lambda i: (0, 0))]
    args = [cols2p, w2m, b2.reshape(1, t), w3f, b3.reshape(1, Cout)]
    if shortcut is not None:
        sc_xp = jnp.pad(sc_x, ((0, Mp - M), (0, 0)))
        in_specs.append(pl.BlockSpec((tm, sc_x.shape[1]), lambda i: (i, 0)))
        args.append(sc_xp)
        if shortcut == "proj":
            in_specs += [_resident(wscf.shape, lambda i: (0, 0)),
                         _resident((1, Cout), lambda i: (0, 0))]
            args += [wscf, bsc.reshape(1, Cout)]

    out = pl.pallas_call(
        functools.partial(_tail_im2col_kernel, shortcut=shortcut),
        out_shape=jax.ShapeDtypeStruct((Mp // g, g * Cout), out_dtype),
        grid=(Mp // tm,),
        in_specs=in_specs,
        out_specs=pl.BlockSpec((tm // g, g * Cout), lambda i: (i, 0)),
        compiler_params=pltpu.CompilerParams(
            dimension_semantics=("parallel",), vmem_limit_bytes=_VMEM_LIMIT),
    )(*args)
    return out.reshape(Mp, Cout)[:M]


# --------------------------------- JAX glue ---------------------------------- #

def init_params(key, in_c, out_c, stride, t):
    ks = jax.random.split(key, 8)

    def bn_params(k, c):
        k1, k2, k3, k4 = jax.random.split(k, 4)
        return (jax.random.uniform(k1, (c,), minval=0.5, maxval=1.5),
                jax.random.normal(k2, (c,)) * 0.1,
                jax.random.normal(k3, (c,)) * 0.1,
                jax.random.uniform(k4, (c,), minval=0.5, maxval=1.5))

    p = {
        "W1": jax.random.normal(ks[0], (3, in_c, t), jnp.float32) / jnp.sqrt(3.0 * in_c),
        "bn1": bn_params(ks[1], t),
        "W2": jax.random.normal(ks[2], (3, 3, t, t), jnp.float32) / jnp.sqrt(9.0 * t),
        "bn2": bn_params(ks[3], t),
        "W3": jax.random.normal(ks[4], (t, out_c), jnp.float32) / jnp.sqrt(1.0 * t),
        "bn3": bn_params(ks[5], out_c),
    }
    if stride == (1, 1, 1) and in_c != out_c:
        p["Wsc"] = jax.random.normal(ks[6], (in_c, out_c), jnp.float32) / jnp.sqrt(1.0 * in_c)
        p["bnsc"] = bn_params(ks[7], out_c)
    return p


def bottleneck_forward(params, x_ncdhw, *, stride):
    # x_ncdhw: (N, C, T, H, W) -> (N, out_c, T_o, H_o, W_o)
    x = jnp.transpose(x_ncdhw, (0, 2, 3, 4, 1))          # (N, T, H, W, Cin)
    N, T, H, W, Cin = x.shape
    st, sh, sw = stride
    t = params["W1"].shape[-1]
    Cout = params["W3"].shape[-1]

    w1f, b1 = _folded(params["W1"], params["bn1"])
    w2f, b2 = _folded(params["W2"], params["bn2"])
    w3f, b3 = _folded(params["W3"], params["bn3"])
    wscf = bsc = None
    if "Wsc" in params:
        wscf, bsc = _folded(params["Wsc"], params["bnsc"])

    if stride == (1, 1, 1) and _frame_fits(H, W, Cin, t, Cout):
        out = _bottleneck_fused_stride1(x, w1f, b1, w2f, b2, w3f, b3, wscf, bsc)
        return jnp.transpose(out, (0, 4, 1, 2, 3))

    # ------- strided / oversized-frame fallback: conv1 kernel + im2col tail -------
    # TODO(synk): stream the 9 spatial taps in-kernel for the strided case too
    # (needs strided in-kernel slicing or a phase-split input); the blob here is
    # only ~2.25x when spatially strided.
    a1 = conv1_temporal(x, w1f, b1).reshape(N, T, H, W, t)
    a1s = a1[:, ::st]
    To = a1s.shape[1]
    Ho = (H - 1) // sh + 1
    Wo = (W - 1) // sw + 1
    xp2 = jnp.pad(a1s, ((0, 0), (0, 0), (1, 1), (1, 1), (0, 0)))
    patches = [xp2[:, :, kh:kh + sh * (Ho - 1) + 1:sh, kw:kw + sw * (Wo - 1) + 1:sw, :]
               for kh in range(3) for kw in range(3)]
    cols2 = jnp.stack(patches, axis=4).reshape(N * To * Ho * Wo, 9 * t)
    w2m = w2f.reshape(9 * t, t)

    if stride == (1, 1, 1):
        if wscf is not None:
            out = tail_im2col(cols2, w2m, b2, w3f, b3, x.dtype, shortcut="proj",
                              sc_x=x.reshape(N * T * H * W, Cin).astype(jnp.bfloat16),
                              wscf=wscf, bsc=bsc)
        else:
            out = tail_im2col(cols2, w2m, b2, w3f, b3, x.dtype, shortcut="identity",
                              sc_x=x.reshape(N * T * H * W, Cin))
    else:
        out = tail_im2col(cols2, w2m, b2, w3f, b3, x.dtype)

    out = out.reshape(N, To, Ho, Wo, Cout)
    return jnp.transpose(out, (0, 4, 1, 2, 3))


# ----------------------------- pure-JAX reference ---------------------------- #

def reference_forward(params, x_cl, *, stride):
    """lax.conv reference matching the kernels' numeric path (BN folded at f32,
    bf16 conv operands, f32 accumulation, f32 bias/ReLU/residual epilogue)."""
    dn = ("NDHWC", "DHWIO", "NDHWC")

    def conv(x, w, strides, padding):
        return lax.conv_general_dilated(
            x.astype(jnp.bfloat16), w.astype(jnp.bfloat16), strides, padding,
            dimension_numbers=dn, preferred_element_type=jnp.float32)

    t = params["W1"].shape[-1]
    Cin = params["W1"].shape[1]
    Cout = params["W3"].shape[-1]

    w1f, b1 = _folded(params["W1"], params["bn1"])
    w2f, b2 = _folded(params["W2"], params["bn2"])
    w3f, b3 = _folded(params["W3"], params["bn3"])

    y = jax.nn.relu(conv(x_cl, w1f.reshape(3, 1, 1, Cin, t),
                         (1, 1, 1), ((1, 1), (0, 0), (0, 0))) + b1)
    y = jax.nn.relu(conv(y, w2f.reshape(1, 3, 3, t, t),
                         stride, ((0, 0), (1, 1), (1, 1))) + b2)
    y = jax.nn.relu(conv(y, w3f.reshape(1, 1, 1, t, Cout),
                         (1, 1, 1), ((0, 0), (0, 0), (0, 0))) + b3)
    if stride == (1, 1, 1):
        if "Wsc" in params:
            wscf, bsc = _folded(params["Wsc"], params["bnsc"])
            sc = conv(x_cl, wscf.reshape(1, 1, 1, Cin, Cout),
                      (1, 1, 1), ((0, 0), (0, 0), (0, 0))) + bsc
        else:
            sc = x_cl
        y = y + sc
    return y


# ------------------------------------ main ----------------------------------- #

if __name__ == "__main__":
    key = jax.random.PRNGKey(0)
    kx, kx2, kp1, kp2, kp3 = jax.random.split(key, 5)

    N, Cin, Cout, t_exp, T, H, W = 2, 4, 8, 16, 8, 16, 16
    x = jax.random.normal(kx, (N, Cin, T, H, W), jnp.float32)
    x_id = jax.random.normal(kx2, (N, Cout, T, H, W), jnp.float32)

    cases = (
        (x, init_params(kp1, Cin, Cout, (1, 1, 1), t_exp), (1, 1, 1)),   # proj shortcut
        (x, init_params(kp2, Cin, Cout, (1, 2, 2), t_exp), (1, 2, 2)),   # strided, no shortcut
        (x_id, init_params(kp3, Cout, Cout, (1, 1, 1), t_exp), (1, 1, 1)),  # identity shortcut
    )

    ok = True
    for xi, params, stride in cases:
        out = jax.block_until_ready(bottleneck_forward(params, xi, stride=stride))
        x_cl = jnp.transpose(xi, (0, 2, 3, 4, 1))
        ref = jnp.transpose(reference_forward(params, x_cl, stride=stride),
                            (0, 4, 1, 2, 3))
        ok = ok and bool(jnp.allclose(out, ref, atol=2e-3, rtol=2e-3))

    assert ok, "Pallas BottleNeckt output does not match reference"
    print("KERNEL_OK")
</pallas_src>

<mosaic_0001>
module attributes {stable_mosaic.version = 11 : i64} {
  func.func @k(%arg0: i32, %arg1: memref<8x128xf32, #tpu.memory_space<vmem>>, %arg2: memref<8x128xf32, #tpu.memory_space<vmem>>, %arg3: memref<8x128xf32, #tpu.memory_space<vmem>>) attributes {dimension_semantics = [#tpu.dimension_semantics<arbitrary>], iteration_bounds = array<i64: 2>, scalar_prefetch = 0 : i64, scratch_operands = 0 : i64, tpu.core_type = #tpu.core_type<tc>, window_params = [{transform_indices = @transform_0, window_bounds = array<i64: 8, 128>}, {pipeline_mode = #tpu.pipeline_mode<synchronous>, transform_indices = @transform_1, window_bounds = array<i64: 8, 128>}, {transform_indices = @transform_2, window_bounds = array<i64: 8, 128>}]} {
    %c0 = arith.constant 0 : index
    %c0_0 = arith.constant 0 : index
    %0 = vector.load %arg1[%c0, %c0_0] : memref<8x128xf32, #tpu.memory_space<vmem>>, vector<8x128xf32>
    %c0_1 = arith.constant 0 : index
    %c0_2 = arith.constant 0 : index
    %1 = vector.load %arg2[%c0_1, %c0_2] : memref<8x128xf32, #tpu.memory_space<vmem>>, vector<8x128xf32>
    %2 = arith.addf %0, %1 : vector<8x128xf32>
    %c0_3 = arith.constant 0 : index
    %c0_4 = arith.constant 0 : index
    %3 = vector.load %arg3[%c0_3, %c0_4] : memref<8x128xf32, #tpu.memory_space<vmem>>, vector<8x128xf32>
    tpu.vector_store %arg3[%c0_3, %c0_4], %2 {strides = array<i32>} : memref<8x128xf32, #tpu.memory_space<vmem>>, vector<8x128xf32>,
    return
  }
  func.func @transform_0(%arg0: i32) -> (i32, i32) {
    %c0_i32 = arith.constant 0 : i32
    %c0_i32_0 = arith.constant 0 : i32
    return %arg0, %c0_i32 : i32, i32
  }
  func.func @transform_1(%arg0: i32) -> (i32, i32) {
    %c0_i32 = arith.constant 0 : i32
    %c0_i32_0 = arith.constant 0 : i32
    %c0_i32_1 = arith.constant 0 : i32
    return %c0_i32, %c0_i32_0 : i32, i32
  }
  func.func @transform_2(%arg0: i32) -> (i32, i32) {
    %c0_i32 = arith.constant 0 : i32
    %c0_i32_0 = arith.constant 0 : i32
    return %arg0, %c0_i32 : i32, i32
  }
}

module attributes {stable_mosaic.version = 11 : i64} {
  func.func @k(%arg0: memref<128x8xf32, #tpu.memory_space<vmem>>, %arg1: memref<8x128xf32, #tpu.memory_space<vmem>>) attributes {dimension_semantics = [], scalar_prefetch = 0 : i64, scratch_operands = 0 : i64, tpu.core_type = #tpu.core_type<tc>} {
    %c0 = arith.constant 0 : index
    %c0_0 = arith.constant 0 : index
    %0 = vector.load %arg0[%c0, %c0_0] : memref<128x8xf32, #tpu.memory_space<vmem>>, vector<128x8xf32>
    %1 = vector.shape_cast %0 : vector<128x8xf32> to vector<8x128xf32>
    %cst = arith.constant 2.000000e+00 : f32
    %2 = vector.broadcast %cst : f32 to vector<8x128xf32>
    %3 = arith.mulf %1, %2 : vector<8x128xf32>
    %c0_1 = arith.constant 0 : index
    %c0_2 = arith.constant 0 : index
    %4 = vector.load %arg1[%c0_1, %c0_2] : memref<8x128xf32, #tpu.memory_space<vmem>>, vector<8x128xf32>
    tpu.vector_store %arg1[%c0_1, %c0_2], %3 {strides = array<i32>} : memref<8x128xf32, #tpu.memory_space<vmem>>, vector<8x128xf32>,
    return
  }
}

module attributes {stable_mosaic.version = 11 : i64} {
  func.func @_bottleneck_frame_kernel(%arg0: i32, %arg1: i32, %arg2: memref<1x256x4xf32, #tpu.memory_space<vmem>>, %arg3: memref<1x256x4xf32, #tpu.memory_space<vmem>>, %arg4: memref<1x256x4xf32, #tpu.memory_space<vmem>>, %arg5: memref<3x4x16xbf16, #tpu.memory_space<vmem>>, %arg6: memref<1x16xf32, #tpu.memory_space<vmem>>, %arg7: memref<3x3x16x16xbf16, #tpu.memory_space<vmem>>, %arg8: memref<1x16xf32, #tpu.memory_space<vmem>>, %arg9: memref<16x8xbf16, #tpu.memory_space<vmem>>, %arg10: memref<1x8xf32, #tpu.memory_space<vmem>>, %arg11: memref<4x8xbf16, #tpu.memory_space<vmem>>, %arg12: memref<1x8xf32, #tpu.memory_space<vmem>>, %arg13: memref<1x256x8xf32, #tpu.memory_space<vmem>>, %arg14: memref<18x18x16xbf16, #tpu.memory_space<vmem>>) attributes {dimension_semantics = [#tpu.dimension_semantics<parallel>, #tpu.dimension_semantics<parallel>], iteration_bounds = array<i64: 2, 8>, scalar_prefetch = 0 : i64, scratch_operands = 1 : i64, tpu.core_type = #tpu.core_type<tc>, window_params = [{transform_indices = @transform_0, window_bounds = array<i64: 1, 256, 4>}, {transform_indices = @transform_1, window_bounds = array<i64: 1, 256, 4>}, {transform_indices = @transform_2, window_bounds = array<i64: 1, 256, 4>}, {pipeline_mode = #tpu.pipeline_mode<synchronous>, transform_indices = @transform_3, window_bounds = array<i64: 3, 4, 16>}, {pipeline_mode = #tpu.pipeline_mode<synchronous>, transform_indices = @transform_4, window_bounds = array<i64: 1, 16>}, {pipeline_mode = #tpu.pipeline_mode<synchronous>, transform_indices = @transform_5, window_bounds = array<i64: 3, 3, 16, 16>}, {pipeline_mode = #tpu.pipeline_mode<synchronous>, transform_indices = @transform_6, window_bounds = array<i64: 1, 16>}, {pipeline_mode = #tpu.pipeline_mode<synchronous>, transform_indices = @transform_7, window_bounds = array<i64: 16, 8>}, {pipeline_mode = #tpu.pipeline_mode<synchronous>, transform_indices = @transform_8, window_bounds = array<i64: 1, 8>}, {pipeline_mode = #tpu.pipeline_mode<synchronous>, transform_indices = @transform_9, window_bounds = array<i64: 4, 8>}, {pipeline_mode = #tpu.pipeline_mode<synchronous>, transform_indices = @transform_10, window_bounds = array<i64: 1, 8>}, {transform_indices = @transform_11, window_bounds = array<i64: 1, 256, 8>}]} {
    %c0 = arith.constant 0 : index
    %c0_0 = arith.constant 0 : index
    %c0_1 = arith.constant 0 : index
    %0 = vector.load %arg2[%c0, %c0_0, %c0_1] : memref<1x256x4xf32, #tpu.memory_space<vmem>>, vector<1x256x4xf32>
    %1 = vector.shape_cast %0 : vector<1x256x4xf32> to vector<256x4xf32>
    %2 = arith.truncf %1 : vector<256x4xf32> to vector<256x4xbf16>
    %c0_2 = arith.constant 0 : index
    %c0_3 = arith.constant 0 : index
    %c0_4 = arith.constant 0 : index
    %3 = vector.load %arg5[%c0_2, %c0_3, %c0_4] : memref<3x4x16xbf16, #tpu.memory_space<vmem>>, vector<1x4x16xbf16>
    %4 = vector.shape_cast %3 : vector<1x4x16xbf16> to vector<4x16xbf16>
    %cst = arith.constant dense<0.000000e+00> : vector<256x16xf32>
    %5 = tpu.matmul %2, %4, %cst {dimension_numbers = #tpu.dot_dimension_numbers<[1], [0], [0], [1], [0, 0, 1, 1], [], []>} : vector<256x4xbf16>, vector<4x16xbf16>, vector<256x16xf32> -> vector<256x16xf32>
    %c0_5 = arith.constant 0 : index
    %c0_6 = arith.constant 0 : index
    %c0_7 = arith.constant 0 : index
    %6 = vector.load %arg3[%c0_5, %c0_6, %c0_7] : memref<1x256x4xf32, #tpu.memory_space<vmem>>, vector<1x256x4xf32>
    %7 = vector.shape_cast %6 : vector<1x256x4xf32> to vector<256x4xf32>
    %8 = arith.truncf %7 : vector<256x4xf32> to vector<256x4xbf16>
    %c1 = arith.constant 1 : index
    %c0_8 = arith.constant 0 : index
    %c0_9 = arith.constant 0 : index
    %9 = vector.load %arg5[%c1, %c0_8, %c0_9] : memref<3x4x16xbf16, #tpu.memory_space<vmem>>, vector<1x4x16xbf16>
    %10 = vector.shape_cast %9 : vector<1x4x16xbf16> to vector<4x16xbf16>
    %cst_10 = arith.constant dense<0.000000e+00> : vector<256x16xf32>
    %11 = tpu.matmul %8, %10, %cst_10 {dimension_numbers = #tpu.dot_dimension_numbers<[1], [0], [0], [1], [0, 0, 1, 1], [], []>} : vector<256x4xbf16>, vector<4x16xbf16>, vector<256x16xf32> -> vector<256x16xf32>
    %12 = arith.addf %5, %11 : vector<256x16xf32>
    %c0_11 = arith.constant 0 : index
    %c0_12 = arith.constant 0 : index
    %c0_13 = arith.constant 0 : index
    %13 = vector.load %arg4[%c0_11, %c0_12, %c0_13] : memref<1x256x4xf32, #tpu.memory_space<vmem>>, vector<1x256x4xf32>
    %14 = vector.shape_cast %13 : vector<1x256x4xf32> to vector<256x4xf32>
    %15 = arith.truncf %14 : vector<256x4xf32> to vector<256x4xbf16>
    %c2 = arith.constant 2 : index
    %c0_14 = arith.constant 0 : index
    %c0_15 = arith.constant 0 : index
    %16 = vector.load %arg5[%c2, %c0_14, %c0_15] : memref<3x4x16xbf16, #tpu.memory_space<vmem>>, vector<1x4x16xbf16>
    %17 = vector.shape_cast %16 : vector<1x4x16xbf16> to vector<4x16xbf16>
    %cst_16 = arith.constant dense<0.000000e+00> : vector<256x16xf32>
    %18 = tpu.matmul %15, %17, %cst_16 {dimension_numbers = #tpu.dot_dimension_numbers<[1], [0], [0], [1], [0, 0, 1, 1], [], []>} : vector<256x4xbf16>, vector<4x16xbf16>, vector<256x16xf32> -> vector<256x16xf32>
    %19 = arith.addf %12, %18 : vector<256x16xf32>
    %c0_17 = arith.constant 0 : index
    %c0_18 = arith.constant 0 : index
    %20 = vector.load %arg6[%c0_17, %c0_18] : memref<1x16xf32, #tpu.memory_space<vmem>>, vector<1x16xf32>
    %21 = vector.broadcast %20 : vector<1x16xf32> to vector<256x16xf32>
    %22 = arith.addf %19, %21 : vector<256x16xf32>
    %cst_19 = arith.constant 0.000000e+00 : f32
    %23 = vector.broadcast %cst_19 : f32 to vector<256x16xf32>
    %24 = arith.maximumf %22, %23 : vector<256x16xf32>
    %25 = arith.truncf %24 : vector<256x16xf32> to vector<256x16xbf16>
    %cst_20 = arith.constant 0.000000e+00 : bf16
    %26 = vector.broadcast %cst_20 : bf16 to vector<18x18x16xbf16>
    %c0_21 = arith.constant 0 : index
    %c0_22 = arith.constant 0 : index
    %c0_23 = arith.constant 0 : index
    %27 = vector.load %arg14[%c0_21, %c0_22, %c0_23] : memref<18x18x16xbf16, #tpu.memory_space<vmem>>, vector<18x18x16xbf16>
    tpu.vector_store %arg14[%c0_21, %c0_22, %c0_23], %26 {strides = array<i32>} : memref<18x18x16xbf16, #tpu.memory_space<vmem>>, vector<18x18x16xbf16>,
    %28 = vector.shape_cast %25 : vector<256x16xbf16> to vector<16x16x16xbf16>
    %c1_24 = arith.constant 1 : index
    %c1_25 = arith.constant 1 : index
    %c0_26 = arith.constant 0 : index
    %29 = vector.load %arg14[%c1_24, %c1_25, %c0_26] : memref<18x18x16xbf16, #tpu.memory_space<vmem>>, vector<16x16x16xbf16>
    tpu.vector_store %arg14[%c1_24, %c1_25, %c0_26], %28 {strides = array<i32>} : memref<18x18x16xbf16, #tpu.memory_space<vmem>>, vector<16x16x16xbf16>,
    %cst_27 = arith.constant 0.000000e+00 : f32
    %30 = vector.broadcast %cst_27 : f32 to vector<256x16xf32>
    %c0_28 = arith.constant 0 : index
    %c0_29 = arith.constant 0 : index
    %c0_30 = arith.constant 0 : index
    %31 = vector.load %arg14[%c0_28, %c0_29, %c0_30] : memref<18x18x16xbf16, #tpu.memory_space<vmem>>, vector<16x16x16xbf16>
    %32 = vector.shape_cast %31 : vector<16x16x16xbf16> to vector<256x16xbf16>
    %c0_31 = arith.constant 0 : index
    %c0_32 = arith.constant 0 : index
    %c0_33 = arith.constant 0 : index
    %c0_34 = arith.constant 0 : index
    %33 = vector.load %arg7[%c0_31, %c0_32, %c0_33, %c0_34] : memref<3x3x16x16xbf16, #tpu.memory_space<vmem>>, vector<1x1x16x16xbf16>
    %34 = vector.shape_cast %33 : vector<1x1x16x16xbf16> to vector<16x16xbf16>
    %cst_35 = arith.constant dense<0.000000e+00> : vector<256x16xf32>
    %35 = tpu.matmul %32, %34, %cst_35 {dimension_numbers = #tpu.dot_dimension_numbers<[1], [0], [0], [1], [0, 0, 1, 1], [], []>} : vector<256x16xbf16>, vector<16x16xbf16>, vector<256x16xf32> -> vector<256x16xf32>
    %36 = arith.addf %30, %35 : vector<256x16xf32>
    %c0_36 = arith.constant 0 : index
    %c1_37 = arith.constant 1 : index
    %c0_38 = arith.constant 0 : index
    %37 = vector.load %arg14[%c0_36, %c1_37, %c0_38] : memref<18x18x16xbf16, #tpu.memory_space<vmem>>, vector<16x16x16xbf16>
    %38 = vector.shape_cast %37 : vector<16x16x16xbf16> to vector<256x16xbf16>
    %c0_39 = arith.constant 0 : index
    %c1_40 = arith.constant 1 : index
    %c0_41 = arith.constant 0 : index
    %c0_42 = arith.constant 0 : index
    %39 = vector.load %arg7[%c0_39, %c1_40, %c0_41, %c0_42] : memref<3x3x16x16xbf16, #tpu.memory_space<vmem>>, vector<1x1x16x16xbf16>
    %40 = vector.shape_cast %39 : vector<1x1x16x16xbf16> to vector<16x16xbf16>
    %cst_43 = arith.constant dense<0.000000e+00> : vector<256x16xf32>
    %41 = tpu.matmul %38, %40, %cst_43 {dimension_numbers = #tpu.dot_dimension_numbers<[1], [0], [0], [1], [0, 0, 1, 1], [], []>} : vector<256x16xbf16>, vector<16x16xbf16>, vector<256x16xf32> -> vector<256x16xf32>
    %42 = arith.addf %36, %41 : vector<256x16xf32>
    %c0_44 = arith.constant 0 : index
    %c2_45 = arith.constant 2 : index
    %c0_46 = arith.constant 0 : index
    %43 = vector.load %arg14[%c0_44, %c2_45, %c0_46] : memref<18x18x16xbf16, #tpu.memory_space<vmem>>, vector<16x16x16xbf16>
    %44 = vector.shape_cast %43 : vector<16x16x16xbf16> to vector<256x16xbf16>
    %c0_47 = arith.constant 0 : index
    %c2_48 = arith.constant 2 : index
    %c0_49 = arith.constant 0 : index
    %c0_50 = arith.constant 0 : index
    %45 = vector.load %arg7[%c0_47, %c2_48, %c0_49, %c0_50] : memref<3x3x16x16xbf16, #tpu.memory_space<vmem>>, vector<1x1x16x16xbf16>
    %46 = vector.shape_cast %45 : vector<1x1x16x16xbf16> to vector<16x16xbf16>
    %cst_51 = arith.constant dense<0.000000e+00> : vector<256x16xf32>
    %47 = tpu.matmul %44, %46, %cst_51 {dimension_numbers = #tpu.dot_dimension_numbers<[1], [0], [0], [1], [0, 0, 1, 1], [], []>} : vector<256x16xbf16>, vector<16x16xbf16>, vector<256x16xf32> -> vector<256x16xf32>
    %48 = arith.addf %42, %47 : vector<256x16xf32>
    %c1_52 = arith.constant 1 : index
    %c0_53 = arith.constant 0 : index
    %c0_54 = arith.constant 0 : index
    %49 = vector.load %arg14[%c1_52, %c0_53, %c0_54] : memref<18x18x16xbf16, #tpu.memory_space<vmem>>, vector<16x16x16xbf16>
    %50 = vector.shape_cast %49 : vector<16x16x16xbf16> to vector<256x16xbf16>
    %c1_55 = arith.constant 1 : index
    %c0_56 = arith.constant 0 : index
    %c0_57 = arith.constant 0 : index
    %c0_58 = arith.constant 0 : index
    %51 = vector.load %arg7[%c1_55, %c0_56, %c0_57, %c0_58] : memref<3x3x16x16xbf16, #tpu.memory_space<vmem>>, vector<1x1x16x16xbf16>
    %52 = vector.shape_cast %51 : vector<1x1x16x16xbf16> to vector<16x16xbf16>
    %cst_59 = arith.constant dense<0.000000e+00> : vector<256x16xf32>
    %53 = tpu.matmul %50, %52, %cst_59 {dimension_numbers = #tpu.dot_dimension_numbers<[1], [0], [0], [1], [0, 0, 1, 1], [], []>} : vector<256x16xbf16>, vector<16x16xbf16>, vector<256x16xf32> -> vector<256x16xf32>
    %54 = arith.addf %48, %53 : vector<256x16xf32>
    %c1_60 = arith.constant 1 : index
    %c1_61 = arith.constant 1 : index
    %c0_62 = arith.constant 0 : index
    %55 = vector.load %arg14[%c1_60, %c1_61, %c0_62] : memref<18x18x16xbf16, #tpu.memory_space<vmem>>, vector<16x16x16xbf16>
    %56 = vector.shape_cast %55 : vector<16x16x16xbf16> to vector<256x16xbf16>
    %c1_63 = arith.constant 1 : index
    %c1_64 = arith.constant 1 : index
    %c0_65 = arith.constant 0 : index
    %c0_66 = arith.constant 0 : index
    %57 = vector.load %arg7[%c1_63, %c1_64, %c0_65, %c0_66] : memref<3x3x16x16xbf16, #tpu.memory_space<vmem>>, vector<1x1x16x16xbf16>
    %58 = vector.shape_cast %57 : vector<1x1x16x16xbf16> to vector<16x16xbf16>
    %cst_67 = arith.constant dense<0.000000e+00> : vector<256x16xf32>
    %59 = tpu.matmul %56, %58, %cst_67 {dimension_numbers = #tpu.dot_dimension_numbers<[1], [0], [0], [1], [0, 0, 1, 1], [], []>} : vector<256x16xbf16>, vector<16x16xbf16>, vector<256x16xf32> -> vector<256x16xf32>
    %60 = arith.addf %54, %59 : vector<256x16xf32>
    %c1_68 = arith.constant 1 : index
    %c2_69 = arith.constant 2 : index
    %c0_70 = arith.constant 0 : index
    %61 = vector.load %arg14[%c1_68, %c2_69, %c0_70] : memref<18x18x16xbf16, #tpu.memory_space<vmem>>, vector<16x16x16xbf16>
    %62 = vector.shape_cast %61 : vector<16x16x16xbf16> to vector<256x16xbf16>
    %c1_71 = arith.constant 1 : index
    %c2_72 = arith.constant 2 : index
    %c0_73 = arith.constant 0 : index
    %c0_74 = arith.constant 0 : index
    %63 = vector.load %arg7[%c1_71, %c2_72, %c0_73, %c0_74] : memref<3x3x16x16xbf16, #tpu.memory_space<vmem>>, vector<1x1x16x16xbf16>
    %64 = vector.shape_cast %63 : vector<1x1x16x16xbf16> to vector<16x16xbf16>
    %cst_75 = arith.constant dense<0.000000e+00> : vector<256x16xf32>
    %65 = tpu.matmul %62, %64, %cst_75 {dimension_numbers = #tpu.dot_dimension_numbers<[1], [0], [0], [1], [0, 0, 1, 1], [], []>} : vector<256x16xbf16>, vector<16x16xbf16>, vector<256x16xf32> -> vector<256x16xf32>
    %66 = arith.addf %60, %65 : vector<256x16xf32>
    %c2_76 = arith.constant 2 : index
    %c0_77 = arith.constant 0 : index
    %c0_78 = arith.constant 0 : index
    %67 = vector.load %arg14[%c2_76, %c0_77, %c0_78] : memref<18x18x16xbf16, #tpu.memory_space<vmem>>, vector<16x16x16xbf16>
    %68 = vector.shape_cast %67 : vector<16x16x16xbf16> to vector<256x16xbf16>
    %c2_79 = arith.constant 2 : index
    %c0_80 = arith.constant 0 : index
    %c0_81 = arith.constant 0 : index
    %c0_82 = arith.constant 0 : index
    %69 = vector.load %arg7[%c2_79, %c0_80, %c0_81, %c0_82] : memref<3x3x16x16xbf16, #tpu.memory_space<vmem>>, vector<1x1x16x16xbf16>
    %70 = vector.shape_cast %69 : vector<1x1x16x16xbf16> to vector<16x16xbf16>
    %cst_83 = arith.constant dense<0.000000e+00> : vector<256x16xf32>
    %71 = tpu.matmul %68, %70, %cst_83 {dimension_numbers = #tpu.dot_dimension_numbers<[1], [0], [0], [1], [0, 0, 1, 1], [], []>} : vector<256x16xbf16>, vector<16x16xbf16>, vector<256x16xf32> -> vector<256x16xf32>
    %72 = arith.addf %66, %71 : vector<256x16xf32>
    %c2_84 = arith.constant 2 : index
    %c1_85 = arith.constant 1 : index
    %c0_86 = arith.constant 0 : index
    %73 = vector.load %arg14[%c2_84, %c1_85, %c0_86] : memref<18x18x16xbf16, #tpu.memory_space<vmem>>, vector<16x16x16xbf16>
    %74 = vector.shape_cast %73 : vector<16x16x16xbf16> to vector<256x16xbf16>
    %c2_87 = arith.constant 2 : index
    %c1_88 = arith.constant 1 : index
    %c0_89 = arith.constant 0 : index
    %c0_90 = arith.constant 0 : index
    %75 = vector.load %arg7[%c2_87, %c1_88, %c0_89, %c0_90] : memref<3x3x16x16xbf16, #tpu.memory_space<vmem>>, vector<1x1x16x16xbf16>
    %76 = vector.shape_cast %75 : vector<1x1x16x16xbf16> to vector<16x16xbf16>
    %cst_91 = arith.constant dense<0.000000e+00> : vector<256x16xf32>
    %77 = tpu.matmul %74, %76, %cst_91 {dimension_numbers = #tpu.dot_dimension_numbers<[1], [0], [0], [1], [0, 0, 1, 1], [], []>} : vector<256x16xbf16>, vector<16x16xbf16>, vector<256x16xf32> -> vector<256x16xf32>
    %78 = arith.addf %72, %77 : vector<256x16xf32>
    %c2_92 = arith.constant 2 : index
    %c2_93 = arith.constant 2 : index
    %c0_94 = arith.constant 0 : index
    %79 = vector.load %arg14[%c2_92, %c2_93, %c0_94] : memref<18x18x16xbf16, #tpu.memory_space<vmem>>, vector<16x16x16xbf16>
    %80 = vector.shape_cast %79 : vector<16x16x16xbf16> to vector<256x16xbf16>
    %c2_95 = arith.constant 2 : index
    %c2_96 = arith.constant 2 : index
    %c0_97 = arith.constant 0 : index
    %c0_98 = arith.constant 0 : index
    %81 = vector.load %arg7[%c2_95, %c2_96, %c0_97, %c0_98] : memref<3x3x16x16xbf16, #tpu.memory_space<vmem>>, vector<1x1x16x16xbf16>
    %82 = vector.shape_cast %81 : vector<1x1x16x16xbf16> to vector<16x16xbf16>
    %cst_99 = arith.constant dense<0.000000e+00> : vector<256x16xf32>
    %83 = tpu.matmul %80, %82, %cst_99 {dimension_numbers = #tpu.dot_dimension_numbers<[1], [0], [0], [1], [0, 0, 1, 1], [], []>} : vector<256x16xbf16>, vector<16x16xbf16>, vector<256x16xf32> -> vector<256x16xf32>
    %84 = arith.addf %78, %83 : vector<256x16xf32>
    %c0_100 = arith.constant 0 : index
    %c0_101 = arith.constant 0 : index
    %85 = vector.load %arg8[%c0_100, %c0_101] : memref<1x16xf32, #tpu.memory_space<vmem>>, vector<1x16xf32>
    %86 = vector.broadcast %85 : vector<1x16xf32> to vector<256x16xf32>
    %87 = arith.addf %84, %86 : vector<256x16xf32>
    %cst_102 = arith.constant 0.000000e+00 : f32
    %88 = vector.broadcast %cst_102 : f32 to vector<256x16xf32>
    %89 = arith.maximumf %87, %88 : vector<256x16xf32>
    %90 = arith.truncf %89 : vector<256x16xf32> to vector<256x16xbf16>
    %c0_103 = arith.constant 0 : index
    %c0_104 = arith.constant 0 : index
    %91 = vector.load %arg9[%c0_103, %c0_104] : memref<16x8xbf16, #tpu.memory_space<vmem>>, vector<16x8xbf16>
    %cst_105 = arith.constant dense<0.000000e+00> : vector<256x8xf32>
    %92 = tpu.matmul %90, %91, %cst_105 {dimension_numbers = #tpu.dot_dimension_numbers<[1], [0], [0], [1], [0, 0, 1, 1], [], []>} : vector<256x16xbf16>, vector<16x8xbf16>, vector<256x8xf32> -> vector<256x8xf32>
    %c0_106 = arith.constant 0 : index
    %c0_107 = arith.constant 0 : index
    %93 = vector.load %arg10[%c0_106, %c0_107] : memref<1x8xf32, #tpu.memory_space<vmem>>, vector<1x8xf32>
    %94 = vector.broadcast %93 : vector<1x8xf32> to vector<256x8xf32>
    %95 = arith.addf %92, %94 : vector<256x8xf32>
    %cst_108 = arith.constant 0.000000e+00 : f32
    %96 = vector.broadcast %cst_108 : f32 to vector<256x8xf32>
    %97 = arith.maximumf %95, %96 : vector<256x8xf32>
    %c0_109 = arith.constant 0 : index
    %c0_110 = arith.constant 0 : index
    %c0_111 = arith.constant 0 : index
    %98 = vector.load %arg3[%c0_109, %c0_110, %c0_111] : memref<1x256x4xf32, #tpu.memory_space<vmem>>, vector<1x256x4xf32>
    %99 = vector.shape_cast %98 : vector<1x256x4xf32> to vector<256x4xf32>
    %100 = arith.truncf %99 : vector<256x4xf32> to vector<256x4xbf16>
    %c0_112 = arith.constant 0 : index
    %c0_113 = arith.constant 0 : index
    %101 = vector.load %arg11[%c0_112, %c0_113] : memref<4x8xbf16, #tpu.memory_space<vmem>>, vector<4x8xbf16>
    %cst_114 = arith.constant dense<0.000000e+00> : vector<256x8xf32>
    %102 = tpu.matmul %100, %101, %cst_114 {dimension_numbers = #tpu.dot_dimension_numbers<[1], [0], [0], [1], [0, 0, 1, 1], [], []>} : vector<256x4xbf16>, vector<4x8xbf16>, vector<256x8xf32> -> vector<256x8xf32>
    %c0_115 = arith.constant 0 : index
    %c0_116 = arith.constant 0 : index
    %103 = vector.load %arg12[%c0_115, %c0_116] : memref<1x8xf32, #tpu.memory_space<vmem>>, vector<1x8xf32>
    %104 = vector.broadcast %103 : vector<1x8xf32> to vector<256x8xf32>
    %105 = arith.addf %102, %104 : vector<256x8xf32>
    %106 = arith.addf %97, %105 : vector<256x8xf32>
    %c0_117 = arith.constant 0 : index
    %c0_118 = arith.constant 0 : index
    %c0_119 = arith.constant 0 : index
    %107 = vector.load %arg13[%c0_117, %c0_118, %c0_119] : memref<1x256x8xf32, #tpu.memory_space<vmem>>, vector<1x256x8xf32>
    %108 = vector.shape_cast %107 : vector<1x256x8xf32> to vector<256x8xf32>
    %109 = vector.shape_cast %106 : vector<256x8xf32> to vector<1x256x8xf32>
    tpu.vector_store %arg13[%c0_117, %c0_118, %c0_119], %109 {strides = array<i32>} : memref<1x256x8xf32, #tpu.memory_space<vmem>>, vector<1x256x8xf32>,
    return
  }
  func.func @transform_0(%arg0: i32, %arg1: i32) -> (i32, i32, i32) {
    %c10_i32 = arith.constant 10 : i32
    %0 = arith.muli %arg0, %c10_i32 : i32
    %1 = arith.addi %0, %arg1 : i32
    %c0_i32 = arith.constant 0 : i32
    %2 = arith.addi %1, %c0_i32 : i32
    %c0_i32_0 = arith.constant 0 : i32
    %c0_i32_1 = arith.constant 0 : i32
    %c0_i32_2 = arith.constant 0 : i32
    return %2, %c0_i32_0, %c0_i32_1 : i32, i32, i32
  }
  func.func @transform_1(%arg0: i32, %arg1: i32) -> (i32, i32, i32) {
    %c10_i32 = arith.constant 10 : i32
    %0 = arith.muli %arg0, %c10_i32 : i32
    %1 = arith.addi %0, %arg1 : i32
    %c1_i32 = arith.constant 1 : i32
    %2 = arith.addi %1, %c1_i32 : i32
    %c0_i32 = arith.constant 0 : i32
    %c0_i32_0 = arith.constant 0 : i32
    %c0_i32_1 = arith.constant 0 : i32
    return %2, %c0_i32, %c0_i32_0 : i32, i32, i32
  }
  func.func @transform_2(%arg0: i32, %arg1: i32) -> (i32, i32, i32) {
    %c10_i32 = arith.constant 10 : i32
    %0 = arith.muli %arg0, %c10_i32 : i32
    %1 = arith.addi %0, %arg1 : i32
    %c2_i32 = arith.constant 2 : i32
    %2 = arith.addi %1, %c2_i32 : i32
    %c0_i32 = arith.constant 0 : i32
    %c0_i32_0 = arith.constant 0 : i32
    %c0_i32_1 = arith.constant 0 : i32
    return %2, %c0_i32, %c0_i32_0 : i32, i32, i32
  }
  func.func @transform_3(%arg0: i32, %arg1: i32) -> (i32, i32, i32) {
    %c0_i32 = arith.constant 0 : i32
    %c0_i32_0 = arith.constant 0 : i32
    %c0_i32_1 = arith.constant 0 : i32
    %c0_i32_2 = arith.constant 0 : i32
    return %c0_i32, %c0_i32_0, %c0_i32_1 : i32, i32, i32
  }
  func.func @transform_4(%arg0: i32, %arg1: i32) -> (i32, i32) {
    %c0_i32 = arith.constant 0 : i32
    %c0_i32_0 = arith.constant 0 : i32
    %c0_i32_1 = arith.constant 0 : i32
    return %c0_i32, %c0_i32_0 : i32, i32
  }
  func.func @transform_5(%arg0: i32, %arg1: i32) -> (i32, i32, i32, i32) {
    %c0_i32 = arith.constant 0 : i32
    %c0_i32_0 = arith.constant 0 : i32
    %c0_i32_1 = arith.constant 0 : i32
    %c0_i32_2 = arith.constant 0 : i32
    %c0_i32_3 = arith.constant 0 : i32
    return %c0_i32, %c0_i32_0, %c0_i32_1, %c0_i32_2 : i32, i32, i32, i32
  }
  func.func @transform_6(%arg0: i32, %arg1: i32) -> (i32, i32) {
    %c0_i32 = arith.constant 0 : i32
    %c0_i32_0 = arith.constant 0 : i32
    %c0_i32_1 = arith.constant 0 : i32
    return %c0_i32, %c0_i32_0 : i32, i32
  }
  func.func @transform_7(%arg0: i32, %arg1: i32) -> (i32, i32) {
    %c0_i32 = arith.constant 0 : i32
    %c0_i32_0 = arith.constant 0 : i32
    %c0_i32_1 = arith.constant 0 : i32
    return %c0_i32, %c0_i32_0 : i32, i32
  }
  func.func @transform_8(%arg0: i32, %arg1: i32) -> (i32, i32) {
    %c0_i32 = arith.constant 0 : i32
    %c0_i32_0 = arith.constant 0 : i32
    %c0_i32_1 = arith.constant 0 : i32
    return %c0_i32, %c0_i32_0 : i32, i32
  }
  func.func @transform_9(%arg0: i32, %arg1: i32) -> (i32, i32) {
    %c0_i32 = arith.constant 0 : i32
    %c0_i32_0 = arith.constant 0 : i32
    %c0_i32_1 = arith.constant 0 : i32
    return %c0_i32, %c0_i32_0 : i32, i32
  }
  func.func @transform_10(%arg0: i32, %arg1: i32) -> (i32, i32) {
    %c0_i32 = arith.constant 0 : i32
    %c0_i32_0 = arith.constant 0 : i32
    %c0_i32_1 = arith.constant 0 : i32
    return %c0_i32, %c0_i32_0 : i32, i32
  }
  func.func @transform_11(%arg0: i32, %arg1: i32) -> (i32, i32, i32) {
    %c8_i32 = arith.constant 8 : i32
    %0 = arith.muli %arg0, %c8_i32 : i32
    %1 = arith.addi %0, %arg1 : i32
    %c0_i32 = arith.constant 0 : i32
    %c0_i32_0 = arith.constant 0 : i32
    %c0_i32_1 = arith.constant 0 : i32
    return %1, %c0_i32, %c0_i32_0 : i32, i32, i32
  }
}

</mosaic_0001>

<bundles_post_ra>
// kernel: tpu_custom_call.1
= control target key start
LH: loop header
LB: loop body
LE: loop exit
PB: predicated region body
PF: predicated region fallthrough
CT: control target
= control target key end

     0   :  { %7 = vsyncpa [#allocation3], 0  ;;  %s690_s0 = inlined_call_operand.hbm [shape: f32[16,128], index: 0, kind: input, shape index: {}]   ;;  %s691_s1 = inlined_call_operand.hbm [shape: f32[8,128], index: 1, kind: input, shape index: {}]   ;;  %s692_s2 = inlined_call_operand.hbm [shape: f32[16,128], index: 2, kind: output, shape index: {}]  }
   0x1   :  { %9 = vsyncpa [#allocation3 + $0x1], 0 }
   0x2   :  { %10 = vsyncpa [#allocation6], 0 }
   0x3   :  { %11 = vsyncpa [#allocation4], 0 }
   0x4   :  { %13 = vsyncpa [#allocation4 + $0x1], 0  ;;  %s489_s9 = smov 0   ;;  %s491_s10 = smov 0  }
   0x5   :  { %s493_s11 = smov 0   ;;  %s495_s12 = smov 0  }
   0x6 LB: > { %s510_s13 = sadd.s32 4294967295, %s469_s12   ;;  %s270_s14 = sadd.s32 4294967294, %s469_s12   ;;  %s469_s12 = sphi %s495_s12, %s716_s12   ;;  %s465_s11 = sphi %s493_s11, %s715_s11   ;;  %s461_s10 = sphi %s491_s10, %s714_s10   ;;  %s457_s9 = sphi %s489_s9, %s713_s9  }
   0x7   : > { %p39_p0 = scmp.ne.s32.totalorder %s461_s10, %s457_s9  ;;  %p693_p1 = scmp.eq.s32.totalorder %s510_s13, 0 }
   0x8   : > { %p90_p3 = scmp.eq.s32.totalorder %s270_s14, 1  ;;  %p271_p5 = scmp.ge.s32.totalorder %s469_s12, 1 }
   0x9   : > { %p519_p4 = por %p693_p1, %p39_p0  ;;  %p97_p7 = scmp.lt.s32.totalorder %s469_s12, 3 }
   0xa   : > { %p524_p6 = por %p90_p3, %p39_p0  ;;  %s471_s18 = smov [#allocation5]  }
   0xb   : > { %s696_s15 = scalar_select %p519_p4, 1, 0 }
   0xc   : > { %s697_s16 = scalar_select %p524_p6, 1, 0 }
   0xd   : > { %p529_p8 = pnand %p271_p5, %p97_p7  ;;  %s110_s19 = sshll.u32 %s471_s18, 4  ;;  %s111_s19 = int_to_ptr.vmem [resolvable:$true] %s110_s19 }
   0xe   : > { %s537_s20 = sadd.s32 1, %s469_s12   ;;  %s26_s24 = sadd.s32 1, %s465_s11 }
   0xf   : > { %s698_s17 = scalar_select %p529_p8, 1, 0 }
  0x10   : > { %p292_p10 = pneg %p529_p8  ;;  %s23_s22 = ssub.s32 %s469_s12, %s537_s20 }
  0x11   : > { %p547_p12 = scmp.eq.s32.totalorder %s23_s22, 0  ;;  %s341_s27 = scalar_lea.hbm %s691_s1, 128 }
  0x12   : > { %p541_p11 = pnand %p292_p10, %p693_p1  ;;  %p342_p0 = scmp.ne.s32.totalorder %s691_s1, %s341_s27 }
  0x13   : > { %s700_s23 = scalar_select %p547_p12, 1, 0 }
  0x14   : > { %p343_p3 = pneg %p541_p11  ;;  %p348_p10 = scmp.lt.u32.totalorder %s341_s27, %s691_s1 }
  0x16   : > { %p344_p5 = pnand %p343_p3, %p342_p0 }
  0x18   : > { %p345_p7 = pneg %p344_p5 }
  0x1a   : > { %p350_p9 = pnand %p348_p10, %p345_p7 }
  0x1c   : > { %353 = shalt.err (!%p350_p9)
}
  0x1d   : > { %s354_s4 = scalar_lea.vmem %s111_s19, 128  ;;  %p362_p6 = scmp.lt.s32.totalorder %s111_s19, %s111_s19 }
  0x1e   : > { %p355_p1 = scmp.ne.s32.totalorder %s111_s19, %s354_s4  ;;  %p363_p4 = scmp.lt.s32.totalorder %s354_s4, %s354_s4 }
  0x20   : > { %p357_p2 = pnand %p355_p1, %p343_p3  ;;  %p364_p8 = por %p363_p4, %p362_p6 }
  0x22   : > { %p358_p13 = pneg %p357_p2 }
  0x24   : > { %p365_p12 = pnand %p364_p8, %p358_p13 }
  0x26   : > { %368 = shalt.err (!%p365_p12)
}
  0x27   : > { %295 = dma.hbm_to_vmem [thread:$0]  (!%p541_p11), %s691_s1, 128, %s111_s19, [#allocation6]  }
  0x28   : > { %p701_p1 = scmp.ne.s32.totalorder %s700_s23, 0  ;;  %p34_p2 = scmp.eq.s32.totalorder %s469_s12, 0 }
  0x29   : > { %p702_p4 = scmp.ne.s32.totalorder %s465_s11, %s461_s10  ;;  %p703_p6 = scmp.eq.s32.totalorder %s510_s13, 1 }
  0x2a   : > { %s573_s7 = scalar_select %p701_p1, %s465_s11, %s26_s24  }
  0x2b   : > { %p581_p8 = por %p703_p6, %p702_p4  ;;  %p305_p9 = scmp.lt.s32.totalorder %s469_s12, 2 }
  0x2c   : > { %s121_s14 = sand.u32 1, %s465_s11   ;;  %p705_p12 = pmov %p702_p4 }
  0x2d   : > { %s274_s18 = sshll.u32 %s121_s14, 3  ;;  %s275_s21 = sshll.u32 %s469_s12, 7 }
  0x2e   : > { %p35_p13 = por %p34_p2, %p705_p12  ;;  %s594_s19 = scalar_lea.hbm %s690_s0, %s275_s21 }
  0x2f   : > { %s125_s23 = scalar_lea.vmem [#allocation2], %s274_s18  ;;  %s122_s27 = scalar_lea.sflag [#allocation3], %s121_s14 }
  0x30   : > { %s132_s24 = sshll.u32 %s125_s23, 4  ;;  %p596_p11 = pnand %p305_p9, %p35_p13  ;;  %s600_s24 = int_to_ptr.vmem [resolvable:$true] %s132_s24 }
  0x31   : > { %s369_s28 = scalar_lea.hbm %s594_s19, 128  ;;  %s374_s3 = scalar_lea.hbm %s690_s0, 256 }
  0x32   : > { %p370_p0 = scmp.ne.s32.totalorder %s594_s19, %s369_s28  ;;  %p371_p3 = pneg %p596_p11 }
  0x33   : > { %p375_p10 = scmp.lt.u32.totalorder %s594_s19, %s690_s0  ;;  %p376_p1 = scmp.lt.u32.totalorder %s374_s3, %s369_s28 }
  0x34   : > { %p372_p5 = pnand %p371_p3, %p370_p0  ;;  %p378_p4 = scmp.lt.u32.totalorder %s369_s28, %s594_s19 }
  0x35   : > { %p377_p2 = por %p376_p1, %p375_p10 }
  0x36   : > { %p373_p7 = pneg %p372_p5 }
  0x37   : > { %p379_p6 = por %p378_p4, %p377_p2 }
  0x39   : > { %p380_p9 = pnand %p379_p6, %p373_p7 }
  0x3b   : > { %383 = shalt.err (!%p380_p9)
}
  0x3c   : > { %s384_s6 = scalar_lea.vmem %s600_s24, 128  ;;  %s472_s14 = smov [#allocation2]  }
  0x3d   : > { %p385_p12 = scmp.ne.s32.totalorder %s600_s24, %s384_s6  ;;  %s389_s18 = sshll.u32 %s472_s14, 4  ;;  %s390_s18 = int_to_ptr.vmem [resolvable:$false] %s389_s18 }
  0x3e   : > { %s391_s21 = scalar_lea.vmem %s390_s18, 256  ;;  %p392_p5 = scmp.lt.s32.totalorder %s600_s24, %s390_s18 }
  0x3f   : > { %p387_p13 = pnand %p385_p12, %p371_p3  ;;  %p393_p10 = scmp.lt.s32.totalorder %s391_s21, %s384_s6 }
  0x41   : > { %p388_p0 = pneg %p387_p13  ;;  %p394_p1 = por %p393_p10, %p392_p5 }
  0x43   : > { %p395_p2 = pnand %p394_p1, %p388_p0 }
  0x45   : > { %398 = shalt.err (!%p395_p2)
}
  0x46   : > { %299 = dma.hbm_to_vmem [thread:$0]  (!%p596_p11), %s594_s19, 128, %s600_s24, %s122_s27  }
  0x47   : > { %p707_p7 = scmp.ne.s32.totalorder %s698_s17, 0 }
  0x48   : > { %s630_s22 = sand.u32 (!%p707_p7), 1, %s461_s10   ;;  %p708_p3 = scmp.ne.s32.totalorder (!%p707_p7), %s696_s15, 0 }
  0x49   : > { %141 = sbr.rel (%p707_p7) target bundleno = 109 (0x6d), region = 28  ;;  %s277_s25 = sshll.u32 (!%p707_p7), %s630_s22, 3 }
  0x4a   : > { %s144_s23 = scalar_lea.sflag (!%p707_p7), [#allocation3], %s630_s22  ;;  %s147_s28 = scalar_lea.vmem (!%p707_p7), [#allocation2], %s277_s25 }
  0x50   : > { %444 = dma.done.wait (%p708_p3), %s144_s23, 128  }
  0x51   : > { %446 = vsyncadd (%p708_p3), %s144_s23, 4294967168  ;;  %p709_p4 = scmp.eq.s32.totalorder %s510_s13, 0 }
  0x53   : > { %448 = dma.done.wait (%p709_p4), [#allocation6], 128   ;;  %p710_p11 = pmov %p709_p4 }
  0x54   : > { %s171_s17 = scalar_lea.vmem [#allocation7], %s277_s25  ;;  %s281_s24 = sshll.u32 %s510_s13, 7  ;;  %v172_v0 = vld [vmem:[%s147_s28] sm:$0xff]  ;;  %v173_v1 = vld [vmem:[#allocation5] sm:$0xff] }
  0x55   : > { %450 = vsyncadd (%p710_p11), [#allocation6], 4294967168  ;;  %s190_s19 = sshll.u32 %s171_s17, 4  ;;  %v174_v2 = vadd.f32 %v173_v1, %v172_v0  ;;  %s648_s27 = scalar_lea.hbm %s692_s2, %s281_s24  ;;  %s643_s19 = int_to_ptr.vmem [resolvable:$true] %s190_s19 }
  0x56   : > { %s177_s29 = scalar_lea.sflag [#allocation4], %s630_s22  ;;  %s399_s30 = scalar_lea.vmem %s643_s19, 128 }
  0x57   : > { %175 = vst [vmem:[%s171_s17] sm:$0xff] %v174_v2  ;;  %p400_p6 = scmp.ne.s32.totalorder %s643_s19, %s399_s30  ;;  %s473_s13 = smov [#allocation7]  }
  0x58   : > { %s403_s3 = sshll.u32 %s473_s13, 4  ;;  %s404_s3 = int_to_ptr.vmem [resolvable:$false] %s403_s3 }
  0x59   : > { %p401_p9 = pnand %p400_p6, %p581_p8  ;;  %s405_s4 = scalar_lea.vmem %s404_s3, 256 }
  0x5a   : > { %p406_p13 = scmp.lt.s32.totalorder %s643_s19, %s404_s3  ;;  %p407_p0 = scmp.lt.s32.totalorder %s405_s4, %s399_s30 }
  0x5b   : > { %p402_p12 = pneg %p401_p9 }
  0x5c   : > { %p408_p5 = por %p407_p0, %p406_p13 }
  0x5e   : > { %p409_p10 = pnand %p408_p5, %p402_p12 }
  0x60   : > { %412 = shalt.err (!%p409_p10)
}
  0x61   : > { %s413_s5 = scalar_lea.hbm %s648_s27, 128  ;;  %s417_s18 = scalar_lea.hbm %s692_s2, 256 }
  0x62   : > { %p414_p1 = scmp.ne.s32.totalorder %s648_s27, %s413_s5  ;;  %p418_p3 = scmp.lt.u32.totalorder %s648_s27, %s692_s2 }
  0x63   : > { %p419_p4 = scmp.lt.u32.totalorder %s417_s18, %s413_s5  ;;  %p421_p6 = scmp.lt.u32.totalorder %s413_s5, %s648_s27 }
  0x64   : > { %p415_p2 = pnand %p414_p1, %p581_p8 }
  0x65   : > { %p420_p11 = por %p419_p4, %p418_p3 }
  0x66   : > { %p416_p7 = pneg %p415_p2 }
  0x67   : > { %p422_p9 = por %p421_p6, %p420_p11 }
  0x69   : > { %p423_p12 = pnand %p422_p9, %p416_p7 }
  0x6b   : > { %426 = shalt.err (!%p423_p12)
}
  0x6c   : > { %290 = dma.vmem_to_hbm [thread:$0]  (%p581_p8), %s643_s19, 128, %s648_s27, %s177_s29  }
  0x6d PF: > { %s202_s25 = sand.u32 1, %s457_s9   ;;  %p711_p13 = scmp.ne.s32.totalorder %s697_s16, 0 }
  0x6e   : > { %p712_p0 = scmp.ge.s32.totalorder %s469_s12, 2  ;;  %s203_s23 = scalar_lea.sflag [#allocation4], %s202_s25 }
  0x70   : > { %p301_p5 = pnand %p712_p0, %p711_p13 }
  0x72   : > { %452 = dma.done.wait (!%p301_p5), %s203_s23, 128  }
  0x73   : > { %454 = vsyncadd (!%p301_p5), %s203_s23, 4294967168  ;;  %p16_p10 = scmp.ge.s32.totalorder %s537_s20, 4   ;;  %s713_s9 = smov %s461_s10 }
  0x74   : > { %s714_s10 = smov %s465_s11  ;;  %s715_s11 = smov %s573_s7 }
  0x75   : > { %s716_s12 = smov %s537_s20  ;;  %18 = sbr.rel (!%p16_p10) target bundleno = 6 (0x6), region = 77 }
  0x7c   :  { %208 = vsyncpa [#allocation3], 1 }
  0x7d   :  { %210 = vsyncpa [#allocation3 + $0x1], 1 }
  0x7e   :  { %211 = vsyncpa [#allocation6], 1 }
  0x7f   :  { %212 = vsyncpa [#allocation4], 1 }
  0x80   :  { %214 = vsyncpa [#allocation4 + $0x1], 1 }

// kernel: tpu_custom_call.1
= control target key start
LH: loop header
LB: loop body
LE: loop exit
PB: predicated region body
PF: predicated region fallthrough
CT: control target
= control target key end

     0   :  { %s9133_s17 = smov 0   ;;  %s9135_s18 = smov 0   ;;  %s11624_s0 = inlined_call_operand.vmem [shape: f32[20,256,4], index: 0, kind: input, shape index: {}]   ;;  %s11625_s1 = inlined_call_operand.vmem [shape: f32[20,256,4], index: 1, kind: input, shape index: {}]   ;;  %s11626_s2 = inlined_call_operand.vmem [shape: f32[20,256,4], index: 2, kind: input, shape index: {}]   ;;  %s11627_s3 = inlined_call_operand.vmem [shape: bf16[3,4,16], index: 3, kind: input, shape index: {}]   ;;  %s11628_s4 = inlined_call_operand.vmem [shape: f32[1,16], index: 4, kind: input, shape index: {}]   ;;  %s11629_s5 = inlined_call_operand.vmem [shape: bf16[3,3,16,16], index: 5, kind: input, shape index: {}]   ;;  %s11630_s6 = inlined_call_operand.vmem [shape: f32[1,16], index: 6, kind: input, shape index: {}]   ;;  %s11631_s7 = inlined_call_operand.vmem [shape: bf16[16,8], index: 7, kind: input, shape index: {}]   ;;  %s11632_s8 = inlined_call_operand.vmem [shape: f32[1,8], index: 8, kind: input, shape index: {}]   ;;  %s11633_s9 = inlined_call_operand.vmem [shape: bf16[4,8], index: 9, kind: input, shape index: {}]   ;;  %s11634_s10 = inlined_call_operand.vmem [shape: f32[1,8], index: 10, kind: input, shape index: {}]   ;;  %s11635_s11 = inlined_call_operand.vmem [shape: f32[16,256,8], index: 11, kind: output, shape index: {}]  }
   0x1   :  { %s9137_s19 = smov 0   ;;  %s9139_s20 = smov 0  }
   0x2   :  { %s9141_s21 = smov 0  }
   0x3 LB: > { %s30_s22 = sadd.s32 1, %s9062_s19  ;;  %s33_s23 = sadd.s32 1, %s9066_s20  ;;  %s9070_s21 = sphi %s9141_s21, %s21_s21   ;;  %s9066_s20 = sphi %s9139_s20, %s11837_s20   ;;  %s9062_s19 = sphi %s9137_s19, %s11836_s19   ;;  %s9058_s18 = sphi %s9135_s18, %s11835_s18   ;;  %s9054_s17 = sphi %s9133_s17, %s11834_s17  }
   0x4   : > { %p31_p0 = scmp.ge.s32.totalorder %s30_s22, 8  ;;  %p7361_p1 = scmp.ge.s32.totalorder %s9070_s21, 1 }
   0x5   : > { %p405_p2 = scmp.lt.s32.totalorder %s9070_s21, 17 }
   0x6   : > { %s11839_s22 = smov (%p31_p0, %s30_s22), 0  ;;  %s11841_s23 = smov (!%p31_p0, %s33_s23), %s9066_s20 }
   0x7   : > { %p406_p3 = pnand %p7361_p1, %p405_p2  ;;  %p35_p4 = scmp.ge.s32.totalorder %s11841_s23, 2 }
   0x9   : > { %s11843_s23 = smov (%p35_p4, %s11841_s23), 0  ;;  %409 = sbr.rel (%p406_p3) target bundleno = 1431 (0x597), region = 64 }
  0x10   : > { %v7371_v0 = vld [vmem:[%s11627_s3 + $0x2] sm:$0x3]  ;;  %vm654_vm0 = vcmask 1041408   ;;  %s465_s26 = smul.u32 10, %s9058_s18  ;;  %v554_v2 = vld [vmem:[%s11627_s3] sm:$0x3] }
  0x11   : > { %8923 = vmatprep.subr.msk.bf16.mxu0 %vm654_vm0, %v7371_v0  ;;  %v656_v1 = vsel %vm654_vm0, %v7371_v0, 0  ;;  %vm605_vm1 = vcmask 31744   ;;  %v868_v11 = vsel %vm654_vm0, %v554_v2, 0  ;;  %v9197_v13 = vld [vmem:[%s11627_s3 + $0x4] sm:$0x3]  ;;  %vm1412_vm2 = vcmask 125952  }
  0x12   : > { %8128 = vmatpush3.bf16.msra.mxu0 %v656_v1  ;;  %s9177_s29 = sadd.s32 %s9054_s17, %s465_s26  ;;  %v1130_v62 = vsel %vm654_vm0, %v9197_v13, 0  ;;  %vm1415_vm3 = vcmask 122880   ;;  %vm3036_vm4 = vcmask 1042432   ;;  %vm3037_vm5 = vcmask 1046532  }
  0x13   : > { %s476_s30 = sadd.s32 1, %s9177_s29  ;;  %8924 = vmatprep.subr.msk.bf16.mxu0 %vm654_vm0, %v554_v2  ;;  %p467_p6 = scmp.lt.s32.totalorder %s9177_s29, 19  ;;  %vm9410_vm6 = vmor %vm3036_vm4, %vm3037_vm5  ;;  %vm2483_vm7 = vcmask 130048   ;;  %vm2039_vm8 = vsmask.f32 3328 }
  0x14   : > { %p477_p5 = scmp.lt.s32.totalorder %s476_s30, 19  ;;  %vm2040_vm9 = vsmask.f32 7440  ;;  %vm1873_vm11 = vsmask.f32 7938 }
  0x15   : > { %s468_s25 = scalar_select %p467_p6, %s9177_s29, 19  ;;  %vm9428_vm10 = vmor %vm2039_vm8, %vm2040_vm9  ;;  %vm1548_vm12 = vsmask.f32 256  ;;  %vm1549_vm13 = vsmask.f32 4368 }
  0x16   : > { %s11845_s30 = smov (!%p477_p5, %s476_s30), 19  ;;  %vm9449_vm14 = vmand %vm1412_vm2, %vm1873_vm11 }
  0x17   : > { %s7854_s12 = sshll.u32 %s11845_s30, 8  ;;  %s7853_s26 = sshll.u32 %s468_s25, 8  ;;  %vm9456_vm15 = vmor %vm1548_vm12, %vm1549_vm13 }
  0x18   : > { %s9184_s15 = scalar_lea.vmem %s11625_s1, %s7854_s12  ;;  %s9242_s30 = scalar_lea.vmem %s11624_s0, %s7853_s26  ;;  %vm9462_vm4 = vmand %vm1415_vm3, %vm1548_vm12 }
  0x19   : > { %v555_v3 = vld [vmem:[%s9184_s15] sm:$0xff]  ;;  %v556_v4 = vld [vmem:[%s9184_s15 + $0x8] sm:$0xff]  ;;  %v557_v5 = vld [vmem:[%s9184_s15 + $0x10] sm:$0xff]  ;;  %s487_s12 = sadd.s32 2, %s9177_s29 }
  0x1a   : > { %v587_v6 = vpack.c.bf16 %v556_v4, %v555_v3  ;;  %v558_v7 = vld [vmem:[%s9184_s15 + $0x18] sm:$0xff]  ;;  %v559_v8 = vld [vmem:[%s9184_s15 + $0x20] sm:$0xff]  ;;  %v560_v9 = vld [vmem:[%s9184_s15 + $0x28] sm:$0xff]  ;;  %p488_p7 = scmp.lt.s32.totalorder %s487_s12, 19 }
  0x1b   : > { %v588_v10 = vpack.c.bf16 %v558_v7, %v557_v5  ;;  %v589_v12 = vpack.c.bf16 %v560_v9, %v559_v8  ;;  %v561_v14 = vld [vmem:[%s9184_s15 + $0x30] sm:$0xff]  ;;  %v562_v15 = vld [vmem:[%s9184_s15 + $0x38] sm:$0xff]  ;;  %v563_v16 = vld [vmem:[%s9184_s15 + $0x40] sm:$0xff] }
  0x1c   : > { %8129 = vmatprep.mubr.msk.bf16.mxu0 %vm605_vm1, %v587_v6  ;;  %v564_v17 = vld [vmem:[%s9184_s15 + $0x48] sm:$0xff]  ;;  %v590_v18 = vpack.c.bf16 %v562_v15, %v561_v14  ;;  %v565_v20 = vld [vmem:[%s9184_s15 + $0x50] sm:$0xff]  ;;  %v566_v21 = vld [vmem:[%s9184_s15 + $0x58] sm:$0xff]  ;;  %s11847_s12 = smov (!%p488_p7, %s487_s12), 19 }
  0x1d   : > { %8130 = vmatmul.mubr.msk.bf16.vlgmr.msra.gmra.mrb[0].mxu0 %vm605_vm1, %v588_v10  ;;  %v591_v19 = vpack.c.bf16 %v564_v17, %v563_v16  ;;  %v567_v22 = vld [vmem:[%s9184_s15 + $0x60] sm:$0xff]  ;;  %v568_v23 = vld [vmem:[%s9184_s15 + $0x68] sm:$0xff]  ;;  %v592_v24 = vpack.c.bf16 %v566_v21, %v565_v20  ;;  %v569_v26 = vld [vmem:[%s9184_s15 + $0x70] sm:$0xff]  ;;  %s7855_s13 = sshll.u32 %s11847_s12, 8 }
  0x1e   : > { %8162 = vmatpush3.bf16.msra.mxu0 %v868_v11  ;;  %8133 = vmatprep.mubr.msk.bf16.mxu0 %vm605_vm1, %v589_v12  ;;  %v593_v25 = vpack.c.bf16 %v568_v23, %v567_v22  ;;  %v570_v27 = vld [vmem:[%s9184_s15 + $0x78] sm:$0xff]  ;;  %v571_v28 = vld [vmem:[%s9184_s15 + $0x80] sm:$0xff]  ;;  %v572_v29 = vld [vmem:[%s9184_s15 + $0x88] sm:$0xff]  ;;  %s9298_s16 = scalar_lea.vmem %s11626_s2, %s7855_s13 }
  0x1f   : > { %8925 = vmatprep.subr.msk.bf16.mxu0 %vm654_vm0, %v9197_v13  ;;  %v594_v30 = vpack.c.bf16 %v570_v27, %v569_v26  ;;  %v595_v31 = vpack.c.bf16 %v572_v29, %v571_v28  ;;  %v573_v32 = vld [vmem:[%s9184_s15 + $0x90] sm:$0xff]  ;;  %v574_v33 = vld [vmem:[%s9184_s15 + $0x98] sm:$0xff]  ;;  %v575_v34 = vld [vmem:[%s9184_s15 + $0xa0] sm:$0xff] }
  0x20   : > { %v576_v35 = vld [vmem:[%s9184_s15 + $0xa8] sm:$0xff]  ;;  %v596_v36 = vpack.c.bf16 %v574_v33, %v573_v32  ;;  %v577_v38 = vld [vmem:[%s9184_s15 + $0xb0] sm:$0xff]  ;;  %v578_v39 = vld [vmem:[%s9184_s15 + $0xb8] sm:$0xff] }
  0x21   : > { %v597_v37 = vpack.c.bf16 %v576_v35, %v575_v34  ;;  %v579_v40 = vld [vmem:[%s9184_s15 + $0xc0] sm:$0xff]  ;;  %v580_v41 = vld [vmem:[%s9184_s15 + $0xc8] sm:$0xff]  ;;  %v598_v42 = vpack.c.bf16 %v578_v39, %v577_v38  ;;  %v581_v44 = vld [vmem:[%s9184_s15 + $0xd0] sm:$0xff] }
  0x22   : > { %v599_v43 = vpack.c.bf16 %v580_v41, %v579_v40  ;;  %v582_v45 = vld [vmem:[%s9184_s15 + $0xd8] sm:$0xff]  ;;  %v583_v46 = vld [vmem:[%s9184_s15 + $0xe0] sm:$0xff]  ;;  %v584_v47 = vld [vmem:[%s9184_s15 + $0xe8] sm:$0xff] }
  0x23   : > { %v600_v48 = vpack.c.bf16 %v582_v45, %v581_v44  ;;  %v601_v49 = vpack.c.bf16 %v584_v47, %v583_v46  ;;  %v585_v50 = vld [vmem:[%s9184_s15 + $0xf0] sm:$0xff]  ;;  %v586_v51 = vld [vmem:[%s9184_s15 + $0xf8] sm:$0xff]  ;;  %v506_v52 = vld [vmem:[%s9242_s30] sm:$0xff] }
  0x24   : > { %v507_v53 = vld [vmem:[%s9242_s30 + $0x8] sm:$0xff]  ;;  %v602_v54 = vpack.c.bf16 %v586_v51, %v585_v50  ;;  %v508_v56 = vld [vmem:[%s9242_s30 + $0x10] sm:$0xff]  ;;  %v509_v57 = vld [vmem:[%s9242_s30 + $0x18] sm:$0xff] }
  0x25   : > { %8134 = vmatmul.mubr.msk.bf16.gmra.mrb[4].mxu0 %vm605_vm1, %v590_v18  ;;  %v538_v55 = vpack.c.bf16 %v507_v53, %v506_v52  ;;  %v510_v58 = vld [vmem:[%s9242_s30 + $0x20] sm:$0xff]  ;;  %v511_v59 = vld [vmem:[%s9242_s30 + $0x28] sm:$0xff]  ;;  %v539_v60 = vpack.c.bf16 %v509_v57, %v508_v56  ;;  %v512_v63 = vld [vmem:[%s9242_s30 + $0x30] sm:$0xff] }
  0x26   : > { %8137 = vmatprep.mubr.msk.bf16.mxu0 %vm605_vm1, %v591_v19  ;;  %v540_v61 = vpack.c.bf16 %v511_v59, %v510_v58  ;;  %v513_v0 = vld [vmem:[%s9242_s30 + $0x38] sm:$0xff]  ;;  %v514_v1 = vld [vmem:[%s9242_s30 + $0x40] sm:$0xff]  ;;  %v515_v2 = vld [vmem:[%s9242_s30 + $0x48] sm:$0xff] }
  0x27   : > { %v541_v3 = vpack.c.bf16 %v513_v0, %v512_v63  ;;  %v542_v4 = vpack.c.bf16 %v515_v2, %v514_v1  ;;  %v516_v5 = vld [vmem:[%s9242_s30 + $0x50] sm:$0xff]  ;;  %v517_v6 = vld [vmem:[%s9242_s30 + $0x58] sm:$0xff]  ;;  %v518_v7 = vld [vmem:[%s9242_s30 + $0x60] sm:$0xff] }
  0x28   : > { %v519_v8 = vld [vmem:[%s9242_s30 + $0x68] sm:$0xff]  ;;  %v543_v9 = vpack.c.bf16 %v517_v6, %v516_v5  ;;  %v520_v11 = vld [vmem:[%s9242_s30 + $0x70] sm:$0xff]  ;;  %v521_v12 = vld [vmem:[%s9242_s30 + $0x78] sm:$0xff] }
  0x29   : > { %v544_v10 = vpack.c.bf16 %v519_v8, %v518_v7  ;;  %v522_v13 = vld [vmem:[%s9242_s30 + $0x80] sm:$0xff]  ;;  %v523_v14 = vld [vmem:[%s9242_s30 + $0x88] sm:$0xff]  ;;  %v545_v15 = vpack.c.bf16 %v521_v12, %v520_v11  ;;  %v524_v17 = vld [vmem:[%s9242_s30 + $0x90] sm:$0xff] }
  0x2a   : > { %v546_v16 = vpack.c.bf16 %v523_v14, %v522_v13  ;;  %v525_v18 = vld [vmem:[%s9242_s30 + $0x98] sm:$0xff]  ;;  %v526_v19 = vld [vmem:[%s9242_s30 + $0xa0] sm:$0xff]  ;;  %v527_v20 = vld [vmem:[%s9242_s30 + $0xa8] sm:$0xff] }
  0x2b   : > { %v547_v21 = vpack.c.bf16 %v525_v18, %v524_v17  ;;  %v548_v22 = vpack.c.bf16 %v527_v20, %v526_v19  ;;  %v528_v23 = vld [vmem:[%s9242_s30 + $0xb0] sm:$0xff]  ;;  %v531_v26 = vld [vmem:[%s9242_s30 + $0xc8] sm:$0xff]  ;;  %v1050_v2 = vld [vmem:[%s9298_s16 + $0x98] sm:$0xff] }
  0x2c   : > { %v532_v29 = vld [vmem:[%s9242_s30 + $0xd0] sm:$0xff]  ;;  %v535_v32 = vld [vmem:[%s9242_s30 + $0xe8] sm:$0xff]  ;;  %v1054_v8 = vld [vmem:[%s9298_s16 + $0xb8] sm:$0xff] }
  0x2d   : > { %8138 = vmatmul.mubr.msk.bf16.gmra.mrb[8].mxu0 %vm605_vm1, %v592_v24  ;;  %v529_v24 = vld [vmem:[%s9242_s30 + $0xb8] sm:$0xff]  ;;  %v536_v35 = vld [vmem:[%s9242_s30 + $0xf0] sm:$0xff]  ;;  %v1032_v38 = vld [vmem:[%s9298_s16 + $0x8] sm:$0xff] }
  0x2e   : > { %8141 = vmatprep.mubr.msk.bf16.mxu0 %vm605_vm1, %v593_v25  ;;  %v530_v25 = vld [vmem:[%s9242_s30 + $0xc0] sm:$0xff]  ;;  %v549_v27 = vpack.c.bf16 %v529_v24, %v528_v23  ;;  %v1033_v41 = vld [vmem:[%s9298_s16 + $0x10] sm:$0xff]  ;;  %v1036_v44 = vld [vmem:[%s9298_s16 + $0x28] sm:$0xff] }
  0x2f   : > { %v550_v28 = vpack.c.bf16 %v531_v26, %v530_v25  ;;  %v1037_v47 = vld [vmem:[%s9298_s16 + $0x30] sm:$0xff]  ;;  %v1040_v50 = vld [vmem:[%s9298_s16 + $0x48] sm:$0xff]  ;;  %v1058_v14 = vld [vmem:[%s9298_s16 + $0xd8] sm:$0xff] }
  0x30   : > { %v1041_v53 = vld [vmem:[%s9298_s16 + $0x50] sm:$0xff]  ;;  %v1044_v56 = vld [vmem:[%s9298_s16 + $0x68] sm:$0xff]  ;;  %v1062_v20 = vld [vmem:[%s9298_s16 + $0xf8] sm:$0xff] }
  0x31   : > { %v1045_v59 = vld [vmem:[%s9298_s16 + $0x70] sm:$0xff] }
  0x32   : > { %v1049_v1 = vld [vmem:[%s9298_s16 + $0x90] sm:$0xff] }
  0x33   : > { %v1072_v5 = vpack.c.bf16 %v1050_v2, %v1049_v1  ;;  %v1053_v7 = vld [vmem:[%s9298_s16 + $0xb0] sm:$0xff] }
  0x34   : > { %v1074_v11 = vpack.c.bf16 %v1054_v8, %v1053_v7  ;;  %v1057_v13 = vld [vmem:[%s9298_s16 + $0xd0] sm:$0xff] }
  0x35   : > { %8142 = vmatmul.mubr.msk.bf16.gmra.mrb[12].mxu0 %vm605_vm1, %v594_v30  ;;  %v533_v30 = vld [vmem:[%s9242_s30 + $0xd8] sm:$0xff]  ;;  %v1076_v17 = vpack.c.bf16 %v1058_v14, %v1057_v13  ;;  %v1061_v19 = vld [vmem:[%s9298_s16 + $0xf0] sm:$0xff] }
  0x36   : > { %8145 = vmatprep.mubr.msk.bf16.mxu0 %vm605_vm1, %v595_v31  ;;  %v534_v31 = vld [vmem:[%s9242_s30 + $0xe0] sm:$0xff]  ;;  %v551_v33 = vpack.c.bf16 %v533_v30, %v532_v29 }
  0x37   : > { %v552_v34 = vpack.c.bf16 %v535_v32, %v534_v31 }
  0x3d   : > { %8146 = vmatmul.mubr.msk.bf16.gmra.mrb[16].mxu0 %vm605_vm1, %v596_v36  ;;  %v537_v36 = vld [vmem:[%s9242_s30 + $0xf8] sm:$0xff] }
  0x3e   : > { %8149 = vmatprep.mubr.msk.bf16.mxu0 %vm605_vm1, %v597_v37  ;;  %v1031_v37 = vld [vmem:[%s9298_s16] sm:$0xff]  ;;  %v553_v39 = vpack.c.bf16 %v537_v36, %v536_v35  ;;  %v8970_v35 = vld [vmem:[%s11629_s5 + $0x8] sm:$0xff]   ;;  %v9425_v36 = vld [vmem:[%s11629_s5 + $0x18] sm:$0xff]  }
  0x3f   : > { %v1063_v40 = vpack.c.bf16 %v1032_v38, %v1031_v37 }
  0x45   : > { %8150 = vmatmul.mubr.msk.bf16.gmra.mrb[20].mxu0 %vm605_vm1, %v598_v42  ;;  %v1034_v42 = vld [vmem:[%s9298_s16 + $0x18] sm:$0xff] }
  0x46   : > { %8153 = vmatprep.mubr.msk.bf16.mxu0 %vm605_vm1, %v599_v43  ;;  %v1035_v43 = vld [vmem:[%s9298_s16 + $0x20] sm:$0xff]  ;;  %v1064_v45 = vpack.c.bf16 %v1034_v42, %v1033_v41 }
  0x47   : > { %v1065_v46 = vpack.c.bf16 %v1036_v44, %v1035_v43 }
  0x4d   : > { %8154 = vmatmul.mubr.msk.bf16.gmra.mrb[24].mxu0 %vm605_vm1, %v600_v48  ;;  %v1038_v48 = vld [vmem:[%s9298_s16 + $0x38] sm:$0xff] }
  0x4e   : > { %8157 = vmatprep.mubr.msk.bf16.mxu0 %vm605_vm1, %v601_v49  ;;  %v1039_v49 = vld [vmem:[%s9298_s16 + $0x40] sm:$0xff]  ;;  %v1066_v51 = vpack.c.bf16 %v1038_v48, %v1037_v47 }
  0x4f   : > { %v1067_v52 = vpack.c.bf16 %v1040_v50, %v1039_v49 }
  0x55   : > { %8158 = vmatmul.mubr.msk.bf16.gmra.mrb[28].mxu0 %vm605_vm1, %v602_v54  ;;  %v1042_v54 = vld [vmem:[%s9298_s16 + $0x58] sm:$0xff] }
  0x56   : > { %8163 = vmatprep.mubr.msk.bf16.mxu0 %vm605_vm1, %v538_v55  ;;  %v1043_v55 = vld [vmem:[%s9298_s16 + $0x60] sm:$0xff]  ;;  %v1068_v57 = vpack.c.bf16 %v1042_v54, %v1041_v53 }
  0x57   : > { %v1069_v58 = vpack.c.bf16 %v1044_v56, %v1043_v55  ;;  %v9440_v56 = vld [vmem:[%s11628_s4] ss:$0 sm:$0xff] }
  0x5d   : > { %8164 = vmatmul.mubr.msk.bf16.vlgmr.msra.gmra.mrb[0].mxu0 %vm605_vm1, %v539_v60  ;;  %v1046_v60 = vld [vmem:[%s9298_s16 + $0x78] sm:$0xff] }
  0x5e   : > { %8196 = vmatpush3.bf16.msra.mxu0 %v1130_v62  ;;  %8167 = vmatprep.mubr.msk.bf16.mxu0 %vm605_vm1, %v540_v61  ;;  %v1047_v61 = vld [vmem:[%s9298_s16 + $0x80] sm:$0xff]  ;;  %v1048_v62 = vld [vmem:[%s9298_s16 + $0x88] sm:$0xff]  ;;  %v1070_v63 = vpack.c.bf16 %v1046_v60, %v1045_v59 }
  0x5f   : > { %v1071_v0 = vpack.c.bf16 %v1048_v62, %v1047_v61  ;;  %8229 = vmatprep.subr.bf16.mxu0 %v8970_v35 }
  0x65   : > { %8168 = vmatmul.mubr.msk.bf16.gmra.mrb[4].mxu0 %vm605_vm1, %v541_v3  ;;  %v1051_v3 = vld [vmem:[%s9298_s16 + $0xa0] sm:$0xff] }
  0x66   : > { %8171 = vmatprep.mubr.msk.bf16.mxu0 %vm605_vm1, %v542_v4  ;;  %v1052_v4 = vld [vmem:[%s9298_s16 + $0xa8] sm:$0xff] }
  0x67   : > { %v1073_v6 = vpack.c.bf16 %v1052_v4, %v1051_v3 }
  0x6d   : > { %8172 = vmatmul.mubr.msk.bf16.gmra.mrb[8].mxu0 %vm605_vm1, %v543_v9  ;;  %v1055_v9 = vld [vmem:[%s9298_s16 + $0xc0] sm:$0xff] }
  0x6e   : > { %8175 = vmatprep.mubr.msk.bf16.mxu0 %vm605_vm1, %v544_v10  ;;  %v1056_v10 = vld [vmem:[%s9298_s16 + $0xc8] sm:$0xff] }
  0x6f   : > { %v1075_v12 = vpack.c.bf16 %v1056_v10, %v1055_v9 }
  0x75   : > { %8176 = vmatmul.mubr.msk.bf16.gmra.mrb[12].mxu0 %vm605_vm1, %v545_v15  ;;  %v1059_v15 = vld [vmem:[%s9298_s16 + $0xe0] sm:$0xff] }
  0x76   : > { %8179 = vmatprep.mubr.msk.bf16.mxu0 %vm605_vm1, %v546_v16  ;;  %v1060_v16 = vld [vmem:[%s9298_s16 + $0xe8] sm:$0xff] }
  0x77   : > { %v1077_v18 = vpack.c.bf16 %v1060_v16, %v1059_v15 }
  0x7d   : > { %8180 = vmatmul.mubr.msk.bf16.gmra.mrb[16].mxu0 %vm605_vm1, %v547_v21  ;;  %v1078_v21 = vpack.c.bf16 %v1062_v20, %v1061_v19 }
  0x7e   : > { %8183 = vmatprep.mubr.msk.bf16.mxu0 %vm605_vm1, %v548_v22  ;;  %v9072_v22 = vmov 0  }
  0x7f   : > { %1420 = vst.msk [vmem:[#allocation2 + $0x18] sm:$0xf] %vm1412_vm2, %v9072_v22  ;;  %1413 = vst.msk [vmem:[#allocation2] sm:$0xf] %vm1412_vm2, %v9072_v22 }
  0x80   : > { %1414 = vst.msk [vmem:[#allocation2 + $0x4] sm:$0xf] %vm1412_vm2, %v9072_v22  ;;  %1417 = vst.msk [vmem:[#allocation2 + $0xc] sm:$0xf] %vm1412_vm2, %v9072_v22 }
  0x81   : > { %1418 = vst.msk [vmem:[#allocation2 + $0x10] sm:$0xf] %vm1412_vm2, %v9072_v22  ;;  %1421 = vst.msk [vmem:[#allocation2 + $0x1c] sm:$0xf] %vm1412_vm2, %v9072_v22 }
  0x82   : > { %1423 = vst.msk [vmem:[#allocation2 + $0x24] sm:$0xf] %vm1412_vm2, %v9072_v22  ;;  %1424 = vst.msk [vmem:[#allocation2 + $0x28] sm:$0xf] %vm1412_vm2, %v9072_v22 }
  0x83   : > { %1426 = vst.msk [vmem:[#allocation2 + $0x30] sm:$0xf] %vm1412_vm2, %v9072_v22  ;;  %1427 = vst.msk [vmem:[#allocation2 + $0x34] sm:$0xf] %vm1412_vm2, %v9072_v22 }
  0x84   : > { %1429 = vst.msk [vmem:[#allocation2 + $0x3c] sm:$0xf] %vm1412_vm2, %v9072_v22  ;;  %1430 = vst.msk [vmem:[#allocation2 + $0x40] sm:$0xf] %vm1412_vm2, %v9072_v22 }
  0x85   : > { %8184 = vmatmul.mubr.msk.bf16.gmra.mrb[20].mxu0 %vm605_vm1, %v549_v27  ;;  %1432 = vst.msk [vmem:[#allocation2 + $0x48] sm:$0xf] %vm1412_vm2, %v9072_v22  ;;  %1433 = vst.msk [vmem:[#allocation2 + $0x4c] sm:$0xf] %vm1412_vm2, %v9072_v22  ;;  %v8968_v27 = vld [vmem:[%s11629_s5 + $0x10] sm:$0xff]  }
  0x86   : > { %8187 = vmatprep.mubr.msk.bf16.mxu0 %vm605_vm1, %v550_v28  ;;  %1435 = vst.msk [vmem:[#allocation2 + $0x54] sm:$0xf] %vm1412_vm2, %v9072_v22  ;;  %1436 = vst.msk [vmem:[#allocation2 + $0x58] sm:$0xf] %vm1412_vm2, %v9072_v22  ;;  %v2988_v26 = vld [vmem:[#allocation2] sm:$0xe]  ;;  %8297 = vmatprep.subr.bf16.mxu1 %v8968_v27 }
  0x87   : > { %1438 = vst.msk [vmem:[#allocation2 + $0x60] sm:$0xf] %vm1412_vm2, %v9072_v22  ;;  %1439 = vst.msk [vmem:[#allocation2 + $0x64] sm:$0xf] %vm1412_vm2, %v9072_v22  ;;  %v1990_v23 = vld [vmem:[#allocation2 + $0x4] sm:$0xf]  ;;  %8298 = vmatpush3.bf16.msra.mxu1 %v8968_v27 }
  0x88   : > { %1441 = vst.msk [vmem:[#allocation2 + $0x6c] sm:$0xf] %vm1412_vm2, %v9072_v22  ;;  %1442 = vst.msk [vmem:[#allocation2 + $0x70] sm:$0xf] %vm1412_vm2, %v9072_v22  ;;  %v3041_v24 = vrot.slane %v1990_v23, 5  ;;  %v7522_v28 = vrot.slane %v2988_v26, 9  ;;  %8331 = vmatprep.subr.bf16.mxu1 %v9425_v36 }
  0x89   : > { %1444 = vst.msk [vmem:[#allocation2 + $0x78] sm:$0xf] %vm1412_vm2, %v9072_v22  ;;  %1445 = vst.msk [vmem:[#allocation2 + $0x7c] sm:$0xf] %vm1412_vm2, %v9072_v22  ;;  %v2056_v37 = vshrl.u32 %v1990_v23, 16  ;;  %v2052_v42 = vshll.u32 %v1990_v23, 16 }
  0x8a   : > { %1447 = vst.msk [vmem:[#allocation2 + $0x84] sm:$0xf] %vm1412_vm2, %v9072_v22  ;;  %1448 = vst.msk [vmem:[#allocation2 + $0x88] sm:$0xf] %vm1412_vm2, %v9072_v22  ;;  %v3043_v29 = vrot.slane %v3041_v24, 4  ;;  %v3042_v32 = vsel %vm9410_vm6, %v7522_v28, %v3041_v24 }
  0x8b   : > { %1450 = vst.msk [vmem:[#allocation2 + $0x90] sm:$0xf] %vm1412_vm2, %v9072_v22  ;;  %1451 = vst.msk [vmem:[#allocation2 + $0x94] sm:$0xf] %vm1412_vm2, %v9072_v22  ;;  %v1884_v20 = vld [vmem:[#allocation2 + $0x18] sm:$0xf] }
  0x8c   : > { %1453 = vst.msk [vmem:[#allocation2 + $0x9c] sm:$0xf] %vm1412_vm2, %v9072_v22  ;;  %1454 = vst.msk [vmem:[#allocation2 + $0xa0] sm:$0xf] %vm1412_vm2, %v9072_v22  ;;  %v1875_v28 = vld [vmem:[#allocation2 + $0xc] sm:$0xf] }
  0x8d   : > { %8188 = vmatmul.mubr.msk.bf16.gmra.mrb[24].mxu0 %vm605_vm1, %v551_v33  ;;  %1456 = vst.msk [vmem:[#allocation2 + $0xa8] sm:$0xf] %vm1412_vm2, %v9072_v22  ;;  %1457 = vst.msk [vmem:[#allocation2 + $0xac] sm:$0xf] %vm1412_vm2, %v9072_v22 }
  0x8e   : > { %8191 = vmatprep.mubr.msk.bf16.mxu0 %vm605_vm1, %v552_v34  ;;  %1459 = vst.msk [vmem:[#allocation2 + $0xb4] sm:$0xf] %vm1412_vm2, %v9072_v22  ;;  %1460 = vst.msk [vmem:[#allocation2 + $0xb8] sm:$0xf] %vm1412_vm2, %v9072_v22 }
  0x8f   : > { %1462 = vst.msk [vmem:[#allocation2 + $0xc0] sm:$0xf] %vm1412_vm2, %v9072_v22  ;;  %1463 = vst.msk [vmem:[#allocation2 + $0xc4] sm:$0xf] %vm1412_vm2, %v9072_v22 }
  0x90   : > { %1465 = vst.msk [vmem:[#allocation2 + $0xcc] sm:$0xf] %vm1412_vm2, %v9072_v22  ;;  %1466 = vst.msk [vmem:[#allocation2 + $0xd0] sm:$0xf] %vm1412_vm2, %v9072_v22 }
  0x91   : > { %1422 = vst.msk [vmem:[#allocation2 + $0x20] sm:$0x1] %vm1415_vm3, %v9072_v22  ;;  %1416 = vst.msk [vmem:[#allocation2 + $0x8] sm:$0x1] %vm1415_vm3, %v9072_v22 }
  0x92   : > { %1419 = vst.msk [vmem:[#allocation2 + $0x14] sm:$0x1] %vm1415_vm3, %v9072_v22  ;;  %1425 = vst.msk [vmem:[#allocation2 + $0x2c] sm:$0x1] %vm1415_vm3, %v9072_v22 }
  0x93   : > { %1428 = vst.msk [vmem:[#allocation2 + $0x38] sm:$0x1] %vm1415_vm3, %v9072_v22  ;;  %1431 = vst.msk [vmem:[#allocation2 + $0x44] sm:$0x1] %vm1415_vm3, %v9072_v22 }
  0x94   : > { %1434 = vst.msk [vmem:[#allocation2 + $0x50] sm:$0x1] %vm1415_vm3, %v9072_v22  ;;  %1437 = vst.msk [vmem:[#allocation2 + $0x5c] sm:$0x1] %vm1415_vm3, %v9072_v22 }
  0x95   : > { %8192 = vmatmul.mubr.msk.bf16.gmra.mrb[28].mxu0 %vm605_vm1, %v553_v39  ;;  %1440 = vst.msk [vmem:[#allocation2 + $0x68] sm:$0x1] %vm1415_vm3, %v9072_v22  ;;  %1443 = vst.msk [vmem:[#allocation2 + $0x74] sm:$0x1] %vm1415_vm3, %v9072_v22  ;;  %v1989_v39 = vld [vmem:[#allocation2] sm:$0xf] }
  0x96   : > { %8197 = vmatprep.mubr.msk.bf16.mxu0 %vm605_vm1, %v1063_v40  ;;  %1446 = vst.msk [vmem:[#allocation2 + $0x80] sm:$0x1] %vm1415_vm3, %v9072_v22  ;;  %1449 = vst.msk [vmem:[#allocation2 + $0x8c] sm:$0x1] %vm1415_vm3, %v9072_v22  ;;  %v2043_v40 = vshrl.u32 %v1989_v39, 16  ;;  %v2046_v41 = vshll.u32 %v1989_v39, 16 }
  0x97   : > { %1452 = vst.msk [vmem:[#allocation2 + $0x98] sm:$0x1] %vm1415_vm3, %v9072_v22  ;;  %1455 = vst.msk [vmem:[#allocation2 + $0xa4] sm:$0x1] %vm1415_vm3, %v9072_v22 }
  0x98   : > { %1458 = vst.msk [vmem:[#allocation2 + $0xb0] sm:$0x1] %vm1415_vm3, %v9072_v22  ;;  %1461 = vst.msk [vmem:[#allocation2 + $0xbc] sm:$0x1] %vm1415_vm3, %v9072_v22  ;;  %v2023_v25 = vld [vmem:[#allocation2 + $0x8] sm:$0x1] }
  0x99   : > { %1464 = vst.msk [vmem:[#allocation2 + $0xc8] sm:$0x1] %vm1415_vm3, %v9072_v22  ;;  %1467 = vst.msk [vmem:[#allocation2 + $0xd4] sm:$0x1] %vm1415_vm3, %v9072_v22  ;;  %v3044_v30 = vrot.slane %v2023_v25, 5  ;;  %v2062_v38 = vshll.u32 %v2023_v25, 16 }
  0x9a   : > { %v2045_v43 = vrot.slane %v2043_v40, 4  ;;  %v2048_v44 = vrot.slane %v2046_v41, 5 }
  0x9b   : > { %v3045_v33 = vsel %vm9410_vm6, %v3043_v29, %v3044_v30  ;;  %v2064_v47 = vrot.slane %v2062_v38, 5  ;;  %v1888_v38 = vld [vmem:[#allocation2 + $0x20] sm:$0x1] }
  0x9c   : > { %v7540_v34 = vcombine.low %v3042_v32, %v3045_v33  ;;  %v2049_v48 = vor.u32 %v2048_v44, %v2045_v43  ;;  %v1881_v44 = vld [vmem:[#allocation2 + $0x14] sm:$0x1] }
  0x9d   : > { %8198 = vmatmul.mubr.msk.bf16.vlgmr.msra.gmra.mrb[0].mxu0 %vm605_vm1, %v1064_v45  ;;  %v2054_v45 = vrot.slane %v2052_v42, 5 }
  0x9e   : > { %8201 = vmatprep.mubr.msk.bf16.mxu0 %vm605_vm1, %v1065_v46  ;;  %8299 = vmatprep.mubr.msk.bf16.mxu1 %vm2483_vm7, %v7540_v34  ;;  %v2058_v46 = vrot.slane %v2056_v37, 4  ;;  %v2050_v50 = vrot.slane %v2049_v48, 4 }
  0x9f   : > { %8230 = vmatpush3.bf16.msra.mxu0 %v8970_v35 }
  0xa0   : > { %v2059_v49 = vor.u32 %v2058_v46, %v2054_v45  ;;  %v2055_v53 = vsel %vm9428_vm10, %v2050_v50, %v2054_v45 }
  0xa5   : > { %8202 = vmatmul.mubr.msk.bf16.gmra.mrb[4].mxu0 %vm605_vm1, %v1066_v51  ;;  %v2060_v51 = vrot.slane %v2059_v49, 4 }
  0xa6   : > { %8205 = vmatprep.mubr.msk.bf16.mxu0 %vm605_vm1, %v1067_v52 }
  0xa7   : > { %v2065_v54 = vsel %vm9428_vm10, %v2060_v51, %v2064_v47 }
  0xa8   : > { %v7456_v55 = vcombine.low %v2055_v53, %v2065_v54 }
  0xad   : > { %8206 = vmatmul.mubr.msk.bf16.gmra.mrb[8].mxu0 %vm605_vm1, %v1068_v57 }
  0xae   : > { %8209 = vmatprep.mubr.msk.bf16.mxu0 %vm605_vm1, %v1069_v58 }
  0xb5   : > { %8210 = vmatmul.mubr.msk.bf16.gmra.mrb[12].mxu0 %vm605_vm1, %v1070_v63 }
  0xb6   : > { %8213 = vmatprep.mubr.msk.bf16.mxu0 %vm605_vm1, %v1071_v0 }
  0xbd   : > { %8214 = vmatmul.mubr.msk.bf16.gmra.mrb[16].mxu0 %vm605_vm1, %v1072_v5 }
  0xbe   : > { %8217 = vmatprep.mubr.msk.bf16.mxu0 %vm605_vm1, %v1073_v6 }
  0xc5   : > { %8218 = vmatmul.mubr.msk.bf16.gmra.mrb[20].mxu0 %vm605_vm1, %v1074_v11 }
  0xc6   : > { %8221 = vmatprep.mubr.msk.bf16.mxu0 %vm605_vm1, %v1075_v12 }
  0xcd   : > { %8222 = vmatmul.mubr.msk.bf16.gmra.mrb[24].mxu0 %vm605_vm1, %v1076_v17 }
  0xce   : > { %8225 = vmatprep.mubr.msk.bf16.mxu0 %vm605_vm1, %v1077_v18 }
  0xd5   : > { %8226 = vmatmul.mubr.msk.bf16.gmra.mrb[28].mxu0 %vm605_vm1, %v1078_v21 }
  0xd6   : > { %8231 = vmatprep.mubr.msk.bf16.mxu0 %vm2483_vm7, %v7456_v55 }
 0x170   : > { %v8199_v57 = vpop.f32.mrb[0].mxu0 }
 0x171   : > { %v1334_v58 = vadd.f32 %v8199_v57, %v9440_v56  ;;  %v1166_v59 = vpop.f32.mrb[1].mxu0 }
 0x172   : > { %v1332_v60 = vadd.f32 %v9440_v56, %v1166_v59  ;;  %v8200_v61 = vpop.f32.mrb[2].mxu0 }
 0x173   : > { %v1366_v62 = vmax.f32 %v1334_v58, 0.0  ;;  %v1335_v63 = vadd.f32 %v8200_v61, %v9440_v56  ;;  %v1169_v0 = vpop.f32.mrb[3].mxu0 }
 0x174   : > { %v1364_v1 = vmax.f32 %v1332_v60, 0.0  ;;  %v1333_v2 = vadd.f32 %v9440_v56, %v1169_v0 }
 0x175   : > { %v7859_v3 = vpack.c.bf16 %v1366_v62, %v1366_v62  ;;  %v1367_v4 = vmax.f32 %v1335_v63, 0.0 }
 0x176   : > { %v7857_v5 = vpack.c.bf16 %v1364_v1, %v1364_v1  ;;  %v1365_v6 = vmax.f32 %v1333_v2, 0.0  ;;  %v1898_v1 = vld [vmem:[#allocation2 + $0x30] sm:$0xf] }
 0x177   : > { %v1569_v7 = vshrl.u32 %v7859_v3, 16  ;;  %v7860_v8 = vpack.c.bf16 %v1367_v4, %v1367_v4  ;;  %v1572_v9 = vshll.u32 %v7859_v3, 16 }
 0x178   : > { %v1552_v10 = vshrl.u32 %v7857_v5, 16  ;;  %v1555_v11 = vshll.u32 %v7857_v5, 16  ;;  %v7858_v12 = vpack.c.bf16 %v1365_v6, %v1365_v6  ;;  %v8203_v13 = vpop.f32.mrb[4].mxu0 }
 0x179   : > { %v1571_v14 = vrot.slane %v1569_v7, 7  ;;  %v1577_v15 = vshrl.u32 %v7860_v8, 16  ;;  %v1580_v16 = vshll.u32 %v7860_v8, 16  ;;  %v1338_v17 = vadd.f32 %v8203_v13, %v9440_v56  ;;  %v1182_v18 = vpop.f32.mrb[5].mxu0  ;;  %v1891_v8 = vld [vmem:[#allocation2 + $0x24] sm:$0xf] }
 0x17a   : > { %v1554_v21 = vrot.slane %v1552_v10, 7  ;;  %v1560_v22 = vshrl.u32 %v7858_v12, 16  ;;  %v1563_v23 = vshll.u32 %v7858_v12, 16  ;;  %v1336_v24 = vadd.f32 %v9440_v56, %v1182_v18  ;;  %v8204_v25 = vpop.f32.mrb[6].mxu0 }
 0x17b   : > { %v1574_v26 = vor.u32 %v1572_v9, %v1571_v14  ;;  %v1575_v27 = vrot.slane %v1571_v14, 4  ;;  %v1579_v30 = vrot.slane %v1577_v15, 7  ;;  %v1370_v32 = vmax.f32 %v1338_v17, 0.0  ;;  %v1185_v33 = vpop.f32.mrb[7].mxu0 }
 0x17c   : > { %v1557_v34 = vor.u32 %v1555_v11, %v1554_v21  ;;  %v1558_v35 = vrot.slane %v1554_v21, 4  ;;  %v1562_v39 = vrot.slane %v1560_v22, 7  ;;  %v1368_v40 = vmax.f32 %v1336_v24, 0.0 }
 0x17d   : > { %v1885_v41 = vsel %vm9449_vm14, %v1574_v26, %v1884_v20  ;;  %v1582_v42 = vor.u32 %v1580_v16, %v1579_v30  ;;  %v1584_v43 = vrot.slane %v1579_v30, 4  ;;  %v7863_v45 = vpack.c.bf16 %v1370_v32, %v1370_v32  ;;  %v1902_v30 = vld [vmem:[#allocation2 + $0x38] sm:$0x1]  ;;  %v1895_v32 = vld [vmem:[#allocation2 + $0x2c] sm:$0x1] }
 0x17e   : > { %1886 = vst [vmem:[#allocation2 + $0x18] sm:$0xf] %v1885_v41  ;;  %v1876_v46 = vsel %vm9449_vm14, %v1557_v34, %v1875_v28  ;;  %v1565_v47 = vor.u32 %v1563_v23, %v1562_v39  ;;  %v1567_v48 = vrot.slane %v1562_v39, 4  ;;  %v7861_v49 = vpack.c.bf16 %v1368_v40, %v1368_v40 }
 0x17f   : > { %1877 = vst [vmem:[#allocation2 + $0xc] sm:$0xf] %v1876_v46  ;;  %v1583_v50 = vsel %vm9456_vm15, %v1575_v27, %v1582_v42  ;;  %v1889_v51 = vsel %vm9462_vm4, %v1584_v43, %v1888_v38  ;;  %v1603_v53 = vshrl.u32 %v7863_v45, 16  ;;  %v1606_v57 = vshll.u32 %v7863_v45, 16  ;;  %v1912_v46 = vld [vmem:[#allocation2 + $0x48] sm:$0xf] }
 0x180   : > { %1887 = vst.msk [vmem:[#allocation2 + $0x1c] sm:$0xf] %vm1412_vm2, %v1583_v50  ;;  %1890 = vst [vmem:[#allocation2 + $0x20] sm:$0x1] %v1889_v51  ;;  %v1566_v54 = vsel %vm9456_vm15, %v1558_v35, %v1565_v47  ;;  %v1882_v55 = vsel %vm9462_vm4, %v1567_v48, %v1881_v44  ;;  %v1586_v58 = vshrl.u32 %v7861_v49, 16  ;;  %v8207_v59 = vpop.f32.mrb[8].mxu0  ;;  %v1339_v61 = vadd.f32 %v8204_v25, %v9440_v56 }
 0x181   : > { %1878 = vst.msk [vmem:[#allocation2 + $0x10] sm:$0xf] %vm1412_vm2, %v1566_v54  ;;  %1883 = vst [vmem:[#allocation2 + $0x14] sm:$0x1] %v1882_v55  ;;  %v9480_v60 = vrot.slane %v1603_v53, 7  ;;  %v1337_v62 = vadd.f32 %v9440_v56, %v1185_v33  ;;  %v1342_v63 = vadd.f32 %v8207_v59, %v9440_v56  ;;  %v1198_v0 = vpop.f32.mrb[9].mxu0 }
 0x182   : > { %v1588_v2 = vrot.slane %v1586_v58, 7  ;;  %v1589_v3 = vshll.u32 %v7861_v49, 16  ;;  %v1340_v4 = vadd.f32 %v9440_v56, %v1198_v0  ;;  %v8208_v5 = vpop.f32.mrb[10].mxu0  ;;  %v1371_v9 = vmax.f32 %v1339_v61, 0.0 }
 0x183   : > { %v1608_v6 = vor.u32 %v1606_v57, %v9480_v60  ;;  %v1609_v7 = vrot.slane %v9480_v60, 4  ;;  %v1369_v10 = vmax.f32 %v1337_v62, 0.0  ;;  %v1201_v11 = vpop.f32.mrb[11].mxu0  ;;  %v1374_v14 = vmax.f32 %v1342_v63, 0.0  ;;  %v1905_v57 = vld [vmem:[#allocation2 + $0x3c] sm:$0xf] }
 0x184   : > { %v1591_v12 = vor.u32 %v1589_v3, %v1588_v2  ;;  %v1592_v13 = vrot.slane %v1588_v2, 4  ;;  %v1372_v15 = vmax.f32 %v1340_v4, 0.0  ;;  %v7864_v17 = vpack.c.bf16 %v1371_v9, %v1371_v9 }
 0x185   : > { %v1899_v16 = vsel %vm9449_vm14, %v1608_v6, %v1898_v1  ;;  %v7862_v18 = vpack.c.bf16 %v1369_v10, %v1369_v10  ;;  %v1343_v20 = vadd.f32 %v8208_v5, %v9440_v56  ;;  %v7867_v22 = vpack.c.bf16 %v1374_v14, %v1374_v14 }
 0x186   : > { %1900 = vst [vmem:[#allocation2 + $0x30] sm:$0xf] %v1899_v16  ;;  %v1892_v21 = vsel %vm9449_vm14, %v1591_v12, %v1891_v8  ;;  %v7865_v23 = vpack.c.bf16 %v1372_v15, %v1372_v15  ;;  %v1341_v24 = vadd.f32 %v9440_v56, %v1201_v11  ;;  %v1611_v25 = vshrl.u32 %v7864_v17, 16 }
 0x187   : > { %1893 = vst [vmem:[#allocation2 + $0x24] sm:$0xf] %v1892_v21  ;;  %v1614_v26 = vshll.u32 %v7864_v17, 16  ;;  %v1594_v27 = vshrl.u32 %v7862_v18, 16  ;;  %v1597_v28 = vshll.u32 %v7862_v18, 16  ;;  %v1637_v33 = vshrl.u32 %v7867_v22, 16 }
 0x188   : > { %v1640_v34 = vshll.u32 %v7867_v22, 16  ;;  %v1620_v35 = vshrl.u32 %v7865_v23, 16  ;;  %v1623_v38 = vshll.u32 %v7865_v23, 16  ;;  %v8211_v39 = vpop.f32.mrb[12].mxu0  ;;  %v1613_v40 = vrot.slane %v1611_v25, 7 }
 0x189   : > { %v1596_v41 = vrot.slane %v1594_v27, 7  ;;  %v1375_v42 = vmax.f32 %v1343_v20, 0.0  ;;  %v1373_v43 = vmax.f32 %v1341_v24, 0.0  ;;  %v1214_v44 = vpop.f32.mrb[13].mxu0  ;;  %v9494_v45 = vrot.slane %v1637_v33, 7 }
 0x18a   : > { %v9496_v47 = vrot.slane %v1620_v35, 7  ;;  %v1346_v48 = vadd.f32 %v8211_v39, %v9440_v56  ;;  %v1344_v49 = vadd.f32 %v9440_v56, %v1214_v44  ;;  %v8212_v50 = vpop.f32.mrb[14].mxu0  ;;  %v1616_v51 = vor.u32 %v1614_v26, %v1613_v40  ;;  %v1916_v17 = vld [vmem:[#allocation2 + $0x50] sm:$0x1]  ;;  %v1909_v18 = vld [vmem:[#allocation2 + $0x44] sm:$0x1] }
 0x18b   : > { %v1618_v53 = vrot.slane %v1613_v40, 4  ;;  %v1599_v54 = vor.u32 %v1597_v28, %v1596_v41  ;;  %v1601_v55 = vrot.slane %v1596_v41, 4  ;;  %v1217_v58 = vpop.f32.mrb[15].mxu0  ;;  %v1642_v59 = vor.u32 %v1640_v34, %v9494_v45 }
 0x18c   : > { %v1643_v60 = vrot.slane %v9494_v45, 4  ;;  %v1625_v61 = vor.u32 %v1623_v38, %v9496_v47  ;;  %v1626_v62 = vrot.slane %v9496_v47, 4  ;;  %v1617_v63 = vsel %vm9456_vm15, %v1609_v7, %v1616_v51  ;;  %v9518_v7 = vld [vmem:[#allocation2 + $0x10] sm:$0xf]  ;;  %v1926_v51 = vld [vmem:[#allocation2 + $0x60] sm:$0xf] }
 0x18d   : > { %v1903_v0 = vsel %vm9462_vm4, %v1618_v53, %v1902_v30  ;;  %v1600_v1 = vsel %vm9456_vm15, %v1592_v13, %v1599_v54  ;;  %v1896_v2 = vsel %vm9462_vm4, %v1601_v55, %v1895_v32  ;;  %1901 = vst.msk [vmem:[#allocation2 + $0x34] sm:$0xf] %vm1412_vm2, %v1617_v63  ;;  %v1913_v3 = vsel %vm9449_vm14, %v1642_v59, %v1912_v46  ;;  %v1919_v53 = vld [vmem:[#allocation2 + $0x54] sm:$0xf] }
 0x18e   : > { %1904 = vst [vmem:[#allocation2 + $0x38] sm:$0x1] %v1903_v0  ;;  %1894 = vst.msk [vmem:[#allocation2 + $0x28] sm:$0xf] %vm1412_vm2, %v1600_v1  ;;  %v1906_v4 = vsel %vm9449_vm14, %v1625_v61, %v1905_v57  ;;  %v7868_v5 = vpack.c.bf16 %v1375_v42, %v1375_v42  ;;  %v7866_v6 = vpack.c.bf16 %v1373_v43, %v1373_v43  ;;  %v1378_v8 = vmax.f32 %v1346_v48, 0.0 }
 0x18f   : > { %1897 = vst [vmem:[#allocation2 + $0x2c] sm:$0x1] %v1896_v2  ;;  %1914 = vst [vmem:[#allocation2 + $0x48] sm:$0xf] %v1913_v3  ;;  %v1376_v9 = vmax.f32 %v1344_v49, 0.0  ;;  %v1347_v10 = vadd.f32 %v8212_v50, %v9440_v56  ;;  %v1345_v11 = vadd.f32 %v9440_v56, %v1217_v58  ;;  %v2076_v28 = vshll.u32 %v9518_v7, 16 }
 0x190   : > { %1907 = vst [vmem:[#allocation2 + $0x3c] sm:$0xf] %v1906_v4  ;;  %v1645_v12 = vshrl.u32 %v7868_v5, 16  ;;  %v1648_v13 = vshll.u32 %v7868_v5, 16  ;;  %v1628_v14 = vshrl.u32 %v7866_v6, 16  ;;  %v1631_v15 = vshll.u32 %v7866_v6, 16 }
 0x191   : > { %v8215_v16 = vpop.f32.mrb[16].mxu0  ;;  %v7871_v20 = vpack.c.bf16 %v1378_v8, %v1378_v8  ;;  %v7869_v21 = vpack.c.bf16 %v1376_v9, %v1376_v9  ;;  %v1379_v22 = vmax.f32 %v1347_v10, 0.0  ;;  %v1377_v23 = vmax.f32 %v1345_v11, 0.0  ;;  %v2024_v59 = vld [vmem:[#allocation2 + $0x14] sm:$0x1] }
 0x192   : > { %v9522_v24 = vpop.f32.mrb[17].mxu0  ;;  %v1647_v25 = vrot.slane %v1645_v12, 7  ;;  %v1630_v26 = vrot.slane %v1628_v14, 7  ;;  %v1350_v27 = vadd.f32 %v8215_v16, %v9440_v56  ;;  %v1930_v4 = vld [vmem:[#allocation2 + $0x68] sm:$0x1]  ;;  %v9546_v8 = vrot.slane %v2076_v28, 5 }
 0x193   : > { %v9526_v30 = vpop.f32.mrb[18].mxu0  ;;  %v1671_v32 = vshrl.u32 %v7871_v20, 16  ;;  %v1674_v33 = vshll.u32 %v7871_v20, 16  ;;  %v1654_v34 = vshrl.u32 %v7869_v21, 16  ;;  %v1657_v35 = vshll.u32 %v7869_v21, 16 }
 0x194   : > { %v9528_v38 = vpop.f32.mrb[19].mxu0  ;;  %v1650_v39 = vor.u32 %v1648_v13, %v1647_v25  ;;  %v1652_v40 = vrot.slane %v1647_v25, 4  ;;  %v1633_v41 = vor.u32 %v1631_v15, %v1630_v26  ;;  %v1635_v42 = vrot.slane %v1630_v26, 4  ;;  %v1923_v5 = vld [vmem:[#allocation2 + $0x5c] sm:$0x1] }
 0x195   : > { %v1673_v43 = vrot.slane %v1671_v32, 7  ;;  %v1656_v44 = vrot.slane %v1654_v34, 7  ;;  %v7872_v45 = vpack.c.bf16 %v1379_v22, %v1379_v22  ;;  %v7870_v46 = vpack.c.bf16 %v1377_v23, %v1377_v23  ;;  %v9554_v20 = vld [vmem:[#allocation2 + $0x1c] sm:$0xf]  ;;  %v9556_v21 = vld [vmem:[#allocation2 + $0x20] sm:$0x1] }
 0x196   : > { %v1651_v47 = vsel %vm9456_vm15, %v1643_v60, %v1650_v39  ;;  %v1917_v48 = vsel %vm9462_vm4, %v1652_v40, %v1916_v17  ;;  %v1634_v49 = vsel %vm9456_vm15, %v1626_v62, %v1633_v41  ;;  %v1910_v50 = vsel %vm9462_vm4, %v1635_v42, %v1909_v18  ;;  %v2989_v60 = vld [vmem:[#allocation2 + $0xc] sm:$0xe]  ;;  %v2990_v22 = vld [vmem:[#allocation2 + $0x18] sm:$0xe] }
 0x197   : > { %1915 = vst.msk [vmem:[#allocation2 + $0x4c] sm:$0xf] %vm1412_vm2, %v1651_v47  ;;  %1918 = vst [vmem:[#allocation2 + $0x50] sm:$0x1] %v1917_v48  ;;  %v1676_v54 = vor.u32 %v1674_v33, %v1673_v43  ;;  %v1677_v55 = vrot.slane %v1673_v43, 4  ;;  %v1659_v57 = vor.u32 %v1657_v35, %v1656_v44  ;;  %v1660_v58 = vrot.slane %v1656_v44, 4 }
 0x198   : > { %1908 = vst.msk [vmem:[#allocation2 + $0x40] sm:$0xf] %vm1412_vm2, %v1634_v49  ;;  %1911 = vst [vmem:[#allocation2 + $0x44] sm:$0x1] %v1910_v50  ;;  %v1679_v61 = vshrl.u32 %v7872_v45, 16  ;;  %v1682_v63 = vshll.u32 %v7872_v45, 16 }
 0x199   : > { %v1662_v62 = vshrl.u32 %v7870_v46, 16  ;;  %v1665_v0 = vshll.u32 %v7870_v46, 16  ;;  %v9540_v1 = vpop.f32.mrb[20].mxu0  ;;  %v1927_v2 = vsel %vm9449_vm14, %v1676_v54, %v1926_v51  ;;  %v1920_v3 = vsel %vm9449_vm14, %v1659_v57, %v1919_v53  ;;  %v1940_v42 = vld [vmem:[#allocation2 + $0x78] sm:$0xf] }
 0x19a   : > { %v1382_v6 = vmax.f32 %v1350_v27, 0.0  ;;  %v9548_v9 = vpop.f32.mrb[21].mxu0  ;;  %1928 = vst [vmem:[#allocation2 + $0x60] sm:$0xf] %v1927_v2  ;;  %1921 = vst [vmem:[#allocation2 + $0x54] sm:$0xf] %v1920_v3  ;;  %v1348_v46 = vadd.f32 %v9440_v56, %v9522_v24  ;;  %v1351_v51 = vadd.f32 %v9526_v30, %v9440_v56  ;;  %v1349_v3 = vadd.f32 %v9440_v56, %v9528_v38 }
 0x19b   : > { %v1681_v10 = vrot.slane %v1679_v61, 7  ;;  %v1664_v11 = vrot.slane %v1662_v62, 7  ;;  %v2080_v12 = vshrl.u32 %v9518_v7, 16  ;;  %v2086_v13 = vshll.u32 %v2024_v59, 16  ;;  %v9551_v14 = vpop.f32.mrb[22].mxu0  ;;  %v8972_v30 = vld [vmem:[%s11629_s5 + $0x20] sm:$0xff]  }
 0x19c   : > { %v7875_v15 = vpack.c.bf16 %v1382_v6, %v1382_v6  ;;  %v7523_v16 = vrot.slane %v2989_v60, 9  ;;  %v3048_v17 = vrot.slane %v9518_v7, 5  ;;  %v3051_v18 = vrot.slane %v2024_v59, 5  ;;  %v9558_v23 = vpop.f32.mrb[23].mxu0  ;;  %v1991_v47 = vld [vmem:[#allocation2 + $0xc] sm:$0xf] }
 0x19d   : > { %v1684_v25 = vor.u32 %v1682_v63, %v1681_v10  ;;  %v1686_v26 = vrot.slane %v1681_v10, 4  ;;  %v1667_v27 = vor.u32 %v1665_v0, %v1664_v11  ;;  %v1669_v28 = vrot.slane %v1664_v11, 4 }
 0x19e   : > { %v1705_v32 = vshrl.u32 %v7875_v15, 16  ;;  %v1708_v33 = vshll.u32 %v7875_v15, 16  ;;  %v2082_v34 = vrot.slane %v2080_v12, 4  ;;  %v9560_v35 = vrot.slane %v2086_v13, 5  ;;  %v9610_v15 = vld [vmem:[%s11629_s5] sm:$0xff]  }
 0x19f   : > { %v1685_v7 = vsel %vm9456_vm15, %v1677_v55, %v1684_v25  ;;  %v1931_v39 = vsel %vm9462_vm4, %v1686_v26, %v1930_v4  ;;  %v1668_v40 = vsel %vm9456_vm15, %v1660_v58, %v1667_v27  ;;  %v1924_v41 = vsel %vm9462_vm4, %v1669_v28, %v1923_v5  ;;  %v1993_v5 = vld [vmem:[#allocation2 + $0x18] sm:$0xf]  ;;  %8263 = vmatprep.subr.bf16.mxu0 %v9610_v15 }
 0x1a0   : > { %1929 = vst.msk [vmem:[#allocation2 + $0x64] sm:$0xf] %vm1412_vm2, %v1685_v7  ;;  %1932 = vst [vmem:[#allocation2 + $0x68] sm:$0x1] %v1931_v39  ;;  %v9572_v43 = vrot.slane %v1705_v32, 7  ;;  %v3049_v44 = vsel %vm9410_vm6, %v7523_v16, %v3048_v17  ;;  %v3050_v45 = vrot.slane %v3048_v17, 4  ;;  %v2083_v13 = vor.u32 %v2082_v34, %v9546_v8 }
 0x1a1   : > { %1922 = vst.msk [vmem:[#allocation2 + $0x58] sm:$0xf] %vm1412_vm2, %v1668_v40  ;;  %1925 = vst [vmem:[#allocation2 + $0x5c] sm:$0x1] %v1924_v41  ;;  %v7524_v48 = vrot.slane %v2990_v22, 9  ;;  %v3055_v49 = vrot.slane %v9554_v20, 5 }
 0x1a2   : > { %v3058_v50 = vrot.slane %v9556_v21, 5  ;;  %v9582_v53 = vpop.f32.mrb[24].mxu0  ;;  %v1710_v54 = vor.u32 %v1708_v33, %v9572_v43  ;;  %v1711_v55 = vrot.slane %v9572_v43, 4  ;;  %v3052_v57 = vsel %vm9410_vm6, %v3050_v45, %v3051_v18  ;;  %v1933_v7 = vld [vmem:[#allocation2 + $0x6c] sm:$0xf] }
 0x1a3   : > { %v1380_v58 = vmax.f32 %v1348_v46, 0.0  ;;  %v9588_v24 = vpop.f32.mrb[25].mxu0  ;;  %v7541_v59 = vcombine.low %v3049_v44, %v3052_v57  ;;  %v3056_v60 = vsel %vm9410_vm6, %v7524_v48, %v3055_v49  ;;  %v3057_v61 = vrot.slane %v3055_v49, 4  ;;  %v1944_v46 = vld [vmem:[#allocation2 + $0x80] sm:$0x1] }
 0x1a4   : > { %v1383_v63 = vmax.f32 %v1351_v51, 0.0  ;;  %v9592_v62 = vpop.f32.mrb[26].mxu0  ;;  %v1941_v0 = vsel %vm9449_vm14, %v1710_v54, %v1940_v42  ;;  %v2067_v4 = vshrl.u32 %v1991_v47, 16  ;;  %v2070_v12 = vshll.u32 %v1991_v47, 16  ;;  %v1937_v54 = vld [vmem:[#allocation2 + $0x74] sm:$0x1] }
 0x1a5   : > { %v7873_v2 = vpack.c.bf16 %v1380_v58, %v1380_v58  ;;  %v9601_v6 = vpop.f32.mrb[27].mxu0  ;;  %1942 = vst [vmem:[#allocation2 + $0x78] sm:$0xf] %v1941_v0  ;;  %8300 = vmatmul.mubr.msk.bf16.vlgmr.msra.gmra.mrb[0].mxu1 %vm2483_vm7, %v7541_v59  ;;  %v3059_v10 = vsel %vm9410_vm6, %v3057_v61, %v3058_v50  ;;  %v1381_v18 = vmax.f32 %v1349_v3, 0.0  ;;  %v2084_v33 = vrot.slane %v2083_v13, 4 }
 0x1a6   : > { %v7876_v11 = vpack.c.bf16 %v1383_v63, %v1383_v63  ;;  %8332 = vmatpush3.bf16.msra.mxu1 %v9425_v36  ;;  %v7542_v17 = vcombine.low %v3056_v60, %v3059_v10  ;;  %v2069_v26 = vrot.slane %v2067_v4, 4  ;;  %v2072_v27 = vrot.slane %v2070_v12, 5  ;;  %v2991_v59 = vld [vmem:[#allocation2 + $0x24] sm:$0xe] }
 0x1a7   : > { %v1688_v38 = vshrl.u32 %v7873_v2, 16  ;;  %v1691_v16 = vshll.u32 %v7873_v2, 16  ;;  %8365 = vmatprep.subr.bf16.mxu1 %v8972_v30  ;;  %v7874_v32 = vpack.c.bf16 %v1381_v18, %v1381_v18  ;;  %v2091_v34 = vshrl.u32 %v1993_v5, 16  ;;  %v9627_v2 = vld [vmem:[#allocation2 + $0x28] sm:$0xf] }
 0x1a8   : > { %v1713_v22 = vshrl.u32 %v7876_v11, 16  ;;  %v1716_v25 = vshll.u32 %v7876_v11, 16  ;;  %8303 = vmatprep.mubr.msk.bf16.mxu1 %vm2483_vm7, %v7542_v17  ;;  %v2073_v36 = vor.u32 %v2072_v27, %v2069_v26  ;;  %v2094_v40 = vshll.u32 %v1993_v5, 16  ;;  %v9616_v42 = vpop.f32.mrb[28].mxu0  ;;  %v9640_v11 = vld [vmem:[#allocation2 + $0x2c] sm:$0x1] }
 0x1a9   : > { %v1690_v28 = vrot.slane %v1688_v38, 7  ;;  %v2100_v41 = vshll.u32 %v9554_v20, 16  ;;  %v1696_v47 = vshrl.u32 %v7874_v32, 16  ;;  %v1699_v48 = vshll.u32 %v7874_v32, 16  ;;  %v9618_v49 = vpop.f32.mrb[29].mxu0 }
 0x1aa   : > { %v1715_v39 = vrot.slane %v1713_v22, 7  ;;  %v2074_v57 = vrot.slane %v2073_v36, 4  ;;  %v2089_v58 = vsel %vm9428_vm10, %v2084_v33, %v9560_v35  ;;  %v9623_v60 = vpop.f32.mrb[30].mxu0  ;;  %v2093_v30 = vrot.slane %v2091_v34, 4  ;;  %v9653_v27 = vld [vmem:[#allocation2 + $0x34] sm:$0xf] }
 0x1ab   : > { %v1693_v44 = vor.u32 %v1691_v16, %v1690_v28  ;;  %v1694_v45 = vrot.slane %v1690_v28, 4  ;;  %v1698_v63 = vrot.slane %v1696_v47, 7  ;;  %v2096_v0 = vrot.slane %v2094_v40, 5  ;;  %v9629_v3 = vpop.f32.mrb[31].mxu0  ;;  %v9657_v33 = vld [vmem:[#allocation2 + $0x38] sm:$0x1] }
 0x1ac   : > { %v1718_v50 = vor.u32 %v1716_v25, %v1715_v39  ;;  %v1720_v51 = vrot.slane %v1715_v39, 4  ;;  %v2079_v5 = vsel %vm9428_vm10, %v2074_v57, %v9546_v8  ;;  %v2102_v10 = vrot.slane %v2100_v41, 5 }
 0x1ad   : > { %v1934_v61 = vsel %vm9449_vm14, %v1693_v44, %v1933_v7  ;;  %v1701_v12 = vor.u32 %v1699_v48, %v1698_v63  ;;  %v1703_v13 = vrot.slane %v1698_v63, 4  ;;  %v7457_v38 = vcombine.low %v2079_v5, %v2089_v58  ;;  %v1954_v5 = vld [vmem:[#allocation2 + $0x90] sm:$0xf] }
 0x1ae   : > { %1935 = vst [vmem:[#allocation2 + $0x6c] sm:$0xf] %v1934_v61  ;;  %v1719_v4 = vsel %vm9456_vm15, %v1711_v55, %v1718_v50  ;;  %v1945_v35 = vsel %vm9462_vm4, %v1720_v51, %v1944_v46  ;;  %v2097_v43 = vor.u32 %v2096_v0, %v2093_v30  ;;  %v2104_v16 = vshrl.u32 %v9554_v20, 16  ;;  %v2992_v20 = vld [vmem:[#allocation2 + $0x30] sm:$0xe] }
 0x1af   : > { %1943 = vst.msk [vmem:[#allocation2 + $0x7c] sm:$0xf] %vm1412_vm2, %v1719_v4  ;;  %1946 = vst [vmem:[#allocation2 + $0x80] sm:$0x1] %v1945_v35  ;;  %v2110_v55 = vshll.u32 %v9556_v21, 16  ;;  %v1354_v17 = vadd.f32 %v9540_v1, %v9440_v56  ;;  %v7525_v18 = vrot.slane %v2991_v59, 9  ;;  %v1702_v8 = vsel %vm9456_vm15, %v1694_v45, %v1701_v12  ;;  %8232 = vmatmul.mubr.msk.bf16.vlgmr.msra.gmra.mrb[32].mxu0 %vm2483_vm7, %v7457_v38 }
 0x1b0   : > { %v1938_v22 = vsel %vm9462_vm4, %v1703_v13, %v1937_v54  ;;  %v2098_v25 = vrot.slane %v2097_v43, 4  ;;  %v3062_v26 = vrot.slane %v9627_v2, 5  ;;  %1936 = vst.msk [vmem:[#allocation2 + $0x70] sm:$0xf] %vm1412_vm2, %v1702_v8  ;;  %v2106_v21 = vrot.slane %v2104_v16, 4  ;;  %8264 = vmatpush3.bf16.msra.mxu0 %v9610_v15 }
 0x1b1   : > { %1939 = vst [vmem:[#allocation2 + $0x74] sm:$0x1] %v1938_v22  ;;  %v2112_v1 = vrot.slane %v2110_v55, 5  ;;  %v1386_v28 = vmax.f32 %v1354_v17, 0.0  ;;  %v3065_v32 = vrot.slane %v9640_v11, 5  ;;  %v1352_v36 = vadd.f32 %v9440_v56, %v9548_v9 }
 0x1b2   : > { %v2103_v34 = vsel %vm9428_vm10, %v2098_v25, %v2102_v10  ;;  %v3063_v7 = vsel %vm9410_vm6, %v7525_v18, %v3062_v26  ;;  %v3064_v39 = vrot.slane %v3062_v26, 4  ;;  %v2107_v40 = vor.u32 %v2106_v21, %v2102_v10  ;;  %v1995_v50 = vld [vmem:[#allocation2 + $0x24] sm:$0xf] }
 0x1b3   : > { %v7879_v41 = vpack.c.bf16 %v1386_v28, %v1386_v28  ;;  %v7526_v44 = vrot.slane %v2992_v20, 9  ;;  %v3069_v45 = vrot.slane %v9653_v27, 5  ;;  %v1384_v47 = vmax.f32 %v1352_v36, 0.0  ;;  %v1947_v25 = vld [vmem:[#allocation2 + $0x84] sm:$0xf] }
 0x1b4   : > { %v3066_v46 = vsel %vm9410_vm6, %v3064_v39, %v3065_v32  ;;  %v3072_v15 = vrot.slane %v9657_v33, 5  ;;  %v1355_v48 = vadd.f32 %v9551_v14, %v9440_v56  ;;  %v2108_v51 = vrot.slane %v2107_v40, 4 }
 0x1b5   : > { %v1739_v54 = vshrl.u32 %v7879_v41, 16  ;;  %v1742_v57 = vshll.u32 %v7879_v41, 16  ;;  %v7543_v58 = vcombine.low %v3063_v7, %v3066_v46  ;;  %v7877_v9 = vpack.c.bf16 %v1384_v47, %v1384_v47  ;;  %v1997_v41 = vld [vmem:[#allocation2 + $0x30] sm:$0xf] }
 0x1b6   : > { %v3070_v59 = vsel %vm9410_vm6, %v7526_v44, %v3069_v45  ;;  %v3071_v61 = vrot.slane %v3069_v45, 4  ;;  %v1387_v63 = vmax.f32 %v1355_v48, 0.0  ;;  %v2113_v30 = vsel %vm9428_vm10, %v2108_v51, %v2112_v1  ;;  %v1958_v45 = vld [vmem:[#allocation2 + $0x98] sm:$0x1]  ;;  %v9846_v29 = vld [vmem:[#allocation2 + $0x7c] sm:$0xf] }
 0x1b7   : > { %v1741_v0 = vrot.slane %v1739_v54, 7  ;;  %8304 = vmatmul.mubr.msk.bf16.gmra.mrb[4].mxu1 %vm2483_vm7, %v7543_v58  ;;  %v1353_v14 = vadd.f32 %v9440_v56, %v9558_v23  ;;  %v2115_v4 = vshrl.u32 %v1995_v50, 16  ;;  %v7458_v35 = vcombine.low %v2103_v34, %v2113_v30 }
 0x1b8   : > { %v1722_v10 = vshrl.u32 %v7877_v9, 16  ;;  %v1725_v12 = vshll.u32 %v7877_v9, 16  ;;  %v3073_v13 = vsel %vm9410_vm6, %v3071_v61, %v3072_v15  ;;  %v7880_v55 = vpack.c.bf16 %v1387_v63, %v1387_v63  ;;  %v1951_v61 = vld [vmem:[#allocation2 + $0x8c] sm:$0x1] }
 0x1b9   : > { %v1744_v38 = vor.u32 %v1742_v57, %v1741_v0  ;;  %v1745_v43 = vrot.slane %v1741_v0, 4  ;;  %v7544_v16 = vcombine.low %v3070_v59, %v3073_v13  ;;  %8235 = vmatprep.mubr.msk.bf16.mxu0 %vm2483_vm7, %v7458_v35  ;;  %v1385_v18 = vmax.f32 %v1353_v14, 0.0 }
 0x1ba   : > { %v1724_v17 = vrot.slane %v1722_v10, 7  ;;  %v2117_v8 = vrot.slane %v2115_v4, 4  ;;  %v2118_v22 = vshll.u32 %v1995_v50, 16  ;;  %v1747_v26 = vshrl.u32 %v7880_v55, 16 }
 0x1bb   : > { %v1955_v23 = vsel %vm9449_vm14, %v1744_v38, %v1954_v5  ;;  %8307 = vmatprep.mubr.msk.bf16.mxu1 %vm2483_vm7, %v7544_v16  ;;  %v1750_v20 = vshll.u32 %v7880_v55, 16  ;;  %v2124_v21 = vshll.u32 %v9627_v2, 16  ;;  %v7878_v32 = vpack.c.bf16 %v1385_v18, %v1385_v18  ;;  %v2993_v5 = vld [vmem:[#allocation2 + $0x3c] sm:$0xe] }
 0x1bc   : > { %1956 = vst [vmem:[#allocation2 + $0x90] sm:$0xf] %v1955_v23  ;;  %v1727_v1 = vor.u32 %v1725_v12, %v1724_v17  ;;  %v1728_v28 = vrot.slane %v1724_v17, 4  ;;  %v2120_v34 = vrot.slane %v2118_v22, 5  ;;  %v1749_v7 = vrot.slane %v1747_v26, 7 }
 0x1bd   : > { %v2126_v39 = vrot.slane %v2124_v21, 5  ;;  %v2128_v36 = vshrl.u32 %v9627_v2, 16  ;;  %v2134_v40 = vshll.u32 %v9640_v11, 16  ;;  %v1730_v46 = vshrl.u32 %v7878_v32, 16  ;;  %v2994_v26 = vld [vmem:[#allocation2 + $0x48] sm:$0xe] }
 0x1be   : > { %v1948_v44 = vsel %vm9449_vm14, %v1727_v1, %v1947_v25  ;;  %v1733_v47 = vshll.u32 %v7878_v32, 16  ;;  %v2121_v15 = vor.u32 %v2120_v34, %v2117_v8  ;;  %v1752_v48 = vor.u32 %v1750_v20, %v1749_v7  ;;  %v9708_v8 = vld [vmem:[#allocation2 + $0x44] sm:$0x1] }
 0x1bf   : > { %1949 = vst [vmem:[#allocation2 + $0x84] sm:$0xf] %v1948_v44  ;;  %v1754_v50 = vrot.slane %v1749_v7, 4  ;;  %v2130_v51 = vrot.slane %v2128_v36, 4  ;;  %v2136_v54 = vrot.slane %v2134_v40, 5  ;;  %v1732_v57 = vrot.slane %v1730_v46, 7 }
 0x1c0   : > { %v2122_v58 = vrot.slane %v2121_v15, 4  ;;  %v2139_v9 = vshrl.u32 %v1997_v41, 16  ;;  %v2142_v59 = vshll.u32 %v1997_v41, 16  ;;  %v1753_v2 = vsel %vm9456_vm15, %v1745_v43, %v1752_v48  ;;  %v9699_v43 = vld [vmem:[#allocation2 + $0x40] sm:$0xf] }
 0x1c1   : > { %v1959_v11 = vsel %vm9462_vm4, %v1754_v50, %v1958_v45  ;;  %v2131_v63 = vor.u32 %v2130_v51, %v2126_v39  ;;  %v2148_v30 = vshll.u32 %v9653_v27, 16  ;;  %1957 = vst.msk [vmem:[#allocation2 + $0x94] sm:$0xf] %vm1412_vm2, %v1753_v2  ;;  %v1735_v0 = vor.u32 %v1733_v47, %v1732_v57 }
 0x1c2   : > { %1960 = vst [vmem:[#allocation2 + $0x98] sm:$0x1] %v1959_v11  ;;  %v1737_v14 = vrot.slane %v1732_v57, 4  ;;  %v2127_v4 = vsel %vm9428_vm10, %v2122_v58, %v2126_v39  ;;  %v2141_v35 = vrot.slane %v2139_v9, 4  ;;  %v2144_v12 = vrot.slane %v2142_v59, 5 }
 0x1c3   : > { %v2132_v10 = vrot.slane %v2131_v63, 4  ;;  %v2150_v13 = vrot.slane %v2148_v30, 5  ;;  %v2152_v38 = vshrl.u32 %v9653_v27, 16  ;;  %v1736_v16 = vsel %vm9456_vm15, %v1728_v28, %v1735_v0  ;;  %v9714_v28 = vld [vmem:[#allocation2 + $0x4c] sm:$0xf] }
 0x1c4   : > { %v1952_v55 = vsel %vm9462_vm4, %v1737_v14, %v1951_v61  ;;  %v2158_v17 = vshll.u32 %v9657_v33, 16  ;;  %v1358_v18 = vadd.f32 %v9582_v53, %v9440_v56  ;;  %1950 = vst.msk [vmem:[#allocation2 + $0x88] sm:$0xf] %vm1412_vm2, %v1736_v16  ;;  %v2145_v22 = vor.u32 %v2144_v12, %v2141_v35  ;;  %v9719_v39 = vld [vmem:[#allocation2 + $0x50] sm:$0x1] }
 0x1c5   : > { %1953 = vst [vmem:[#allocation2 + $0x8c] sm:$0x1] %v1952_v55  ;;  %v2137_v27 = vsel %vm9428_vm10, %v2132_v10, %v2136_v54  ;;  %v2154_v23 = vrot.slane %v2152_v38, 4  ;;  %v7527_v25 = vrot.slane %v2993_v5, 9  ;;  %v3076_v33 = vrot.slane %v9699_v43, 5 }
 0x1c6   : > { %v7459_v20 = vcombine.low %v2127_v4, %v2137_v27  ;;  %v2160_v21 = vrot.slane %v2158_v17, 5  ;;  %v1390_v1 = vmax.f32 %v1358_v18, 0.0  ;;  %v2146_v53 = vrot.slane %v2145_v22, 4  ;;  %v1999_v54 = vld [vmem:[#allocation2 + $0x3c] sm:$0xf] }
 0x1c7   : > { %v2155_v32 = vor.u32 %v2154_v23, %v2150_v13  ;;  %v3079_v34 = vrot.slane %v9708_v8, 5  ;;  %v1356_v7 = vadd.f32 %v9440_v56, %v9588_v24  ;;  %v3077_v40 = vsel %vm9410_vm6, %v7527_v25, %v3076_v33  ;;  %v1968_v61 = vld [vmem:[#allocation2 + $0xa8] sm:$0xf]  ;;  %v9740_v4 = vld [vmem:[%s11628_s4] ss:$0 sm:$0xff] }
 0x1c8   : > { %8236 = vmatmul.mubr.msk.bf16.gmra.mrb[36].mxu0 %vm2483_vm7, %v7459_v20  ;;  %v7883_v36 = vpack.c.bf16 %v1390_v1, %v1390_v1  ;;  %v3078_v41 = vrot.slane %v3076_v33, 4  ;;  %v7528_v44 = vrot.slane %v2994_v26, 9  ;;  %v2151_v45 = vsel %vm9428_vm10, %v2146_v53, %v2150_v13  ;;  %v1961_v18 = vld [vmem:[#allocation2 + $0x9c] sm:$0xf] }
 0x1c9   : > { %v2156_v46 = vrot.slane %v2155_v32, 4  ;;  %v1388_v47 = vmax.f32 %v1356_v7, 0.0  ;;  %v3083_v15 = vrot.slane %v9714_v28, 5  ;;  %v3086_v51 = vrot.slane %v9719_v39, 5  ;;  %v1972_v7 = vld [vmem:[#allocation2 + $0xb0] sm:$0x1] }
 0x1ca   : > { %v1773_v48 = vshrl.u32 %v7883_v36, 16  ;;  %v1776_v50 = vshll.u32 %v7883_v36, 16  ;;  %v3080_v24 = vsel %vm9410_vm6, %v3078_v41, %v3079_v34  ;;  %v1359_v30 = vadd.f32 %v9592_v62, %v9440_v56 }
 0x1cb   : > { %v2161_v57 = vsel %vm9428_vm10, %v2156_v46, %v2160_v21  ;;  %v7545_v58 = vcombine.low %v3077_v40, %v3080_v24  ;;  %v7881_v9 = vpack.c.bf16 %v1388_v47, %v1388_v47  ;;  %v3084_v59 = vsel %vm9410_vm6, %v7528_v44, %v3083_v15  ;;  %v9752_v21 = vld [vmem:[#allocation2 + $0x48] sm:$0xf] }
 0x1cc   : > { %v7460_v2 = vcombine.low %v2151_v45, %v2161_v57  ;;  %v1775_v11 = vrot.slane %v1773_v48, 7  ;;  %v3085_v63 = vrot.slane %v3083_v15, 4  ;;  %v1357_v35 = vadd.f32 %v9740_v4, %v9601_v6  ;;  %v1965_v45 = vld [vmem:[#allocation2 + $0xa4] sm:$0x1] }
 0x1cd   : > { %8308 = vmatmul.mubr.msk.bf16.gmra.mrb[8].mxu1 %vm2483_vm7, %v7545_v58  ;;  %v1756_v0 = vshrl.u32 %v7881_v9, 16  ;;  %v1759_v14 = vshll.u32 %v7881_v9, 16  ;;  %v2163_v5 = vshrl.u32 %v1999_v54, 16  ;;  %v1391_v62 = vmax.f32 %v1359_v30, 0.0  ;;  %v2995_v9 = vld [vmem:[#allocation2 + $0x54] sm:$0xe] }
 0x1ce   : > { %8239 = vmatprep.mubr.msk.bf16.mxu0 %vm2483_vm7, %v7460_v2  ;;  %v1778_v10 = vor.u32 %v1776_v50, %v1775_v11  ;;  %v1779_v12 = vrot.slane %v1775_v11, 4  ;;  %v3087_v56 = vsel %vm9410_vm6, %v3085_v63, %v3086_v51  ;;  %v1389_v16 = vmax.f32 %v1357_v35, 0.0  ;;  %v9768_v35 = vld [vmem:[#allocation2 + $0x5c] sm:$0x1] }
 0x1cf   : > { %v1758_v13 = vrot.slane %v1756_v0, 7  ;;  %v7546_v38 = vcombine.low %v3084_v59, %v3087_v56  ;;  %v2165_v55 = vrot.slane %v2163_v5, 4  ;;  %v7884_v27 = vpack.c.bf16 %v1391_v62, %v1391_v62  ;;  %v2996_v62 = vld [vmem:[#allocation2 + $0x60] sm:$0xe] }
 0x1d0   : > { %v1969_v17 = vsel %vm9449_vm14, %v1778_v10, %v1968_v61  ;;  %v2166_v22 = vshll.u32 %v1999_v54, 16  ;;  %v2172_v6 = vshll.u32 %v9699_v43, 16  ;;  %v7882_v26 = vpack.c.bf16 %v1389_v16, %v1389_v16 }
 0x1d1   : > { %1970 = vst [vmem:[#allocation2 + $0xa8] sm:$0xf] %v1969_v17  ;;  %v1761_v23 = vor.u32 %v1759_v14, %v1758_v13  ;;  %v1762_v25 = vrot.slane %v1758_v13, 4  ;;  %8311 = vmatprep.mubr.msk.bf16.mxu1 %vm2483_vm7, %v7546_v38  ;;  %v2176_v20 = vshrl.u32 %v9699_v43, 16  ;;  %v1781_v1 = vshrl.u32 %v7884_v27, 16 }
 0x1d2   : > { %v1784_v33 = vshll.u32 %v7884_v27, 16  ;;  %v2168_v53 = vrot.slane %v2166_v22, 5  ;;  %v2174_v32 = vrot.slane %v2172_v6, 5  ;;  %v1764_v36 = vshrl.u32 %v7882_v26, 16  ;;  %v9766_v14 = vld [vmem:[#allocation2 + $0x58] sm:$0xf] }
 0x1d3   : > { %v1962_v34 = vsel %vm9449_vm14, %v1761_v23, %v1961_v18  ;;  %v1767_v40 = vshll.u32 %v7882_v26, 16  ;;  %v2178_v41 = vrot.slane %v2176_v20, 4  ;;  %v1783_v44 = vrot.slane %v1781_v1, 7  ;;  %v9784_v6 = vld [vmem:[#allocation2 + $0x64] sm:$0xf] }
 0x1d4   : > { %1963 = vst [vmem:[#allocation2 + $0x9c] sm:$0xf] %v1962_v34  ;;  %v2169_v46 = vor.u32 %v2168_v53, %v2165_v55  ;;  %v2182_v47 = vshll.u32 %v9708_v8, 16  ;;  %v2187_v43 = vshrl.u32 %v9752_v21, 16  ;;  %v1766_v15 = vrot.slane %v1764_v36, 7 }
 0x1d5   : > { %v2179_v48 = vor.u32 %v2178_v41, %v2174_v32  ;;  %v2190_v50 = vshll.u32 %v9752_v21, 16  ;;  %v2196_v24 = vshll.u32 %v9714_v28, 16  ;;  %v1786_v51 = vor.u32 %v1784_v33, %v1783_v44  ;;  %v9789_v20 = vld [vmem:[#allocation2 + $0x68] sm:$0x1] }
 0x1d6   : > { %v1788_v54 = vrot.slane %v1783_v44, 4  ;;  %v2170_v57 = vrot.slane %v2169_v46, 4  ;;  %v2184_v58 = vrot.slane %v2182_v47, 5  ;;  %v1769_v59 = vor.u32 %v1767_v40, %v1766_v15 }
 0x1d7   : > { %v1771_v2 = vrot.slane %v1766_v15, 4  ;;  %v2180_v11 = vrot.slane %v2179_v48, 4  ;;  %v2189_v61 = vrot.slane %v2187_v43, 4  ;;  %v1787_v8 = vsel %vm9456_vm15, %v1779_v12, %v1786_v51 }
 0x1d8   : > { %v1973_v63 = vsel %vm9462_vm4, %v1788_v54, %v1972_v7  ;;  %v2175_v30 = vsel %vm9428_vm10, %v2170_v57, %v2174_v32  ;;  %v2192_v0 = vrot.slane %v2190_v50, 5  ;;  %1971 = vst.msk [vmem:[#allocation2 + $0xac] sm:$0xf] %vm1412_vm2, %v1787_v8  ;;  %v1770_v5 = vsel %vm9456_vm15, %v1762_v25, %v1769_v59 }
 0x1d9   : > { %1974 = vst [vmem:[#allocation2 + $0xb0] sm:$0x1] %v1973_v63  ;;  %v1966_v10 = vsel %vm9462_vm4, %v1771_v2, %v1965_v45  ;;  %v2185_v12 = vsel %vm9428_vm10, %v2180_v11, %v2184_v58  ;;  %v2198_v56 = vrot.slane %v2196_v24, 5  ;;  %1964 = vst.msk [vmem:[#allocation2 + $0xa0] sm:$0xf] %vm1412_vm2, %v1770_v5  ;;  %v2200_v16 = vshrl.u32 %v9714_v28, 16 }
 0x1da   : > { %1967 = vst [vmem:[#allocation2 + $0xa4] sm:$0x1] %v1966_v10  ;;  %v7461_v13 = vcombine.low %v2175_v30, %v2185_v12  ;;  %v2193_v38 = vor.u32 %v2192_v0, %v2189_v61  ;;  %v2206_v55 = vshll.u32 %v9719_v39, 16  ;;  %v1362_v17 = vadd.f32 %v9740_v4, %v9616_v42  ;;  %v9803_v24 = vld [vmem:[#allocation2 + $0x54] sm:$0xf] }
 0x1db   : > { %v7529_v18 = vrot.slane %v2995_v9, 9  ;;  %v3090_v27 = vrot.slane %v9766_v14, 5  ;;  %v3093_v22 = vrot.slane %v9768_v35, 5  ;;  %v2202_v25 = vrot.slane %v2200_v16, 4  ;;  %v1982_v11 = vld [vmem:[#allocation2 + $0xc0] sm:$0xf] }
 0x1dc   : > { %8240 = vmatmul.mubr.msk.bf16.gmra.mrb[40].mxu0 %vm2483_vm7, %v7461_v13  ;;  %v2194_v23 = vrot.slane %v2193_v38, 4  ;;  %v2208_v26 = vrot.slane %v2206_v55, 5  ;;  %v1360_v28 = vadd.f32 %v9740_v4, %v9618_v49  ;;  %v1394_v39 = vmax.f32 %v1362_v17, 0.0  ;;  %v1975_v10 = vld [vmem:[#allocation2 + $0xb4] sm:$0xf] }
 0x1dd   : > { %v3091_v42 = vsel %vm9410_vm6, %v7529_v18, %v3090_v27  ;;  %v3092_v1 = vrot.slane %v3090_v27, 4  ;;  %v7530_v33 = vrot.slane %v2996_v62, 9  ;;  %v2203_v32 = vor.u32 %v2202_v25, %v2198_v56  ;;  %v1986_v62 = vld [vmem:[#allocation2 + $0xc8] sm:$0x1]  ;;  %v9815_v16 = vld [vmem:[#allocation2 + $0x60] sm:$0xf] }
 0x1de   : > { %v2199_v53 = vsel %vm9428_vm10, %v2194_v23, %v2198_v56  ;;  %v1392_v34 = vmax.f32 %v1360_v28, 0.0  ;;  %v3097_v7 = vrot.slane %v9784_v6, 5  ;;  %v7887_v36 = vpack.c.bf16 %v1394_v39, %v1394_v39 }
 0x1df   : > { %v3094_v40 = vsel %vm9410_vm6, %v3092_v1, %v3093_v22  ;;  %v3100_v49 = vrot.slane %v9789_v20, 5  ;;  %v1363_v41 = vadd.f32 %v9740_v4, %v9623_v60  ;;  %v2204_v44 = vrot.slane %v2203_v32, 4 }
 0x1e0   : > { %v7547_v45 = vcombine.low %v3091_v42, %v3094_v40  ;;  %v7885_v46 = vpack.c.bf16 %v1392_v34, %v1392_v34  ;;  %v3098_v47 = vsel %vm9410_vm6, %v7530_v33, %v3097_v7  ;;  %v1807_v43 = vshrl.u32 %v7887_v36, 16 }
 0x1e1   : > { %v1810_v15 = vshll.u32 %v7887_v36, 16  ;;  %v3099_v48 = vrot.slane %v3097_v7, 4  ;;  %v1395_v50 = vmax.f32 %v1363_v41, 0.0  ;;  %v2209_v51 = vsel %vm9428_vm10, %v2204_v44, %v2208_v26  ;;  %v2997_v41 = vld [vmem:[#allocation2 + $0x6c] sm:$0xe] }
 0x1e2   : > { %8312 = vmatmul.mubr.msk.bf16.gmra.mrb[12].mxu1 %vm2483_vm7, %v7547_v45  ;;  %v1790_v54 = vshrl.u32 %v7885_v46, 16  ;;  %v1793_v57 = vshll.u32 %v7885_v46, 16  ;;  %v1361_v60 = vadd.f32 %v9740_v4, %v9629_v3  ;;  %v7462_v58 = vcombine.low %v2199_v53, %v2209_v51  ;;  %v1979_v53 = vld [vmem:[#allocation2 + $0xbc] sm:$0x1]  ;;  %v2032_v51 = vld [vmem:[#allocation2 + $0x74] sm:$0x1] }
 0x1e3   : > { %v1809_v9 = vrot.slane %v1807_v43, 7  ;;  %v3101_v59 = vsel %vm9410_vm6, %v3099_v48, %v3100_v49  ;;  %v7888_v2 = vpack.c.bf16 %v1395_v50, %v1395_v50  ;;  %v2211_v30 = vshrl.u32 %v9803_v24, 16 }
 0x1e4   : > { %v1792_v61 = vrot.slane %v1790_v54, 7  ;;  %v7548_v8 = vcombine.low %v3098_v47, %v3101_v59  ;;  %v1393_v63 = vmax.f32 %v1361_v60, 0.0  ;;  %8243 = vmatprep.mubr.msk.bf16.mxu0 %vm2483_vm7, %v7462_v58  ;;  %v2214_v18 = vshll.u32 %v9803_v24, 16  ;;  %v2998_v54 = vld [vmem:[#allocation2 + $0x78] sm:$0xe] }
 0x1e5   : > { %v1812_v0 = vor.u32 %v1810_v15, %v1809_v9  ;;  %v1813_v5 = vrot.slane %v1809_v9, 4  ;;  %v1815_v12 = vshrl.u32 %v7888_v2, 16  ;;  %v1818_v56 = vshll.u32 %v7888_v2, 16  ;;  %v9840_v59 = vld [vmem:[#allocation2 + $0x6c] sm:$0xf] }
 0x1e6   : > { %v1795_v3 = vor.u32 %v1793_v57, %v1792_v61  ;;  %v1796_v4 = vrot.slane %v1792_v61, 4  ;;  %8315 = vmatprep.mubr.msk.bf16.mxu1 %vm2483_vm7, %v7548_v8  ;;  %v7886_v13 = vpack.c.bf16 %v1393_v63, %v1393_v63  ;;  %v2213_v38 = vrot.slane %v2211_v30, 4 }
 0x1e7   : > { %v1983_v55 = vsel %vm9449_vm14, %v1812_v0, %v1982_v11  ;;  %v1817_v17 = vrot.slane %v1815_v12, 7  ;;  %v2220_v27 = vshll.u32 %v9766_v14, 16  ;;  %v2224_v26 = vshrl.u32 %v9766_v14, 16 }
 0x1e8   : > { %1984 = vst [vmem:[#allocation2 + $0xc0] sm:$0xf] %v1983_v55  ;;  %v1976_v22 = vsel %vm9449_vm14, %v1795_v3, %v1975_v10  ;;  %v1798_v23 = vshrl.u32 %v7886_v13, 16  ;;  %v1801_v25 = vshll.u32 %v7886_v13, 16  ;;  %v2216_v42 = vrot.slane %v2214_v18, 5 }
 0x1e9   : > { %1977 = vst [vmem:[#allocation2 + $0xb4] sm:$0xf] %v1976_v22  ;;  %v1820_v28 = vor.u32 %v1818_v56, %v1817_v17  ;;  %v1822_v39 = vrot.slane %v1817_v17, 4  ;;  %v2222_v1 = vrot.slane %v2220_v27, 5  ;;  %v2226_v32 = vrot.slane %v2224_v26, 4 }
 0x1ea   : > { %v1800_v33 = vrot.slane %v1798_v23, 7  ;;  %v2230_v34 = vshll.u32 %v9768_v35, 16  ;;  %v2235_v7 = vshrl.u32 %v9815_v16, 16  ;;  %v2217_v40 = vor.u32 %v2216_v42, %v2213_v38  ;;  %v9832_v35 = vld [vmem:[#allocation2 + $0x70] sm:$0xf] }
 0x1eb   : > { %v1821_v19 = vsel %vm9456_vm15, %v1813_v5, %v1820_v28  ;;  %v1987_v36 = vsel %vm9462_vm4, %v1822_v39, %v1986_v62  ;;  %v2238_v49 = vshll.u32 %v9815_v16, 16  ;;  %v2227_v46 = vor.u32 %v2226_v32, %v2222_v1  ;;  %v2033_v5 = vld [vmem:[#allocation2 + $0x80] sm:$0x1]  ;;  %v9862_v26 = vld [vmem:[#allocation2 + $0x78] sm:$0xf] }
 0x1ec   : > { %1985 = vst.msk [vmem:[#allocation2 + $0xc4] sm:$0xf] %vm1412_vm2, %v1821_v19  ;;  %1988 = vst [vmem:[#allocation2 + $0xc8] sm:$0x1] %v1987_v36  ;;  %v1803_v44 = vor.u32 %v1801_v25, %v1800_v33  ;;  %v1805_v45 = vrot.slane %v1800_v33, 4  ;;  %v2232_v47 = vrot.slane %v2230_v34, 5 }
 0x1ed   : > { %v2218_v43 = vrot.slane %v2217_v40, 4  ;;  %v2237_v15 = vrot.slane %v2235_v7, 4  ;;  %v2240_v48 = vrot.slane %v2238_v49, 5  ;;  %v2244_v50 = vshll.u32 %v9784_v6, 16 }
 0x1ee   : > { %v1804_v57 = vsel %vm9456_vm15, %v1796_v4, %v1803_v44  ;;  %v1980_v60 = vsel %vm9462_vm4, %v1805_v45, %v1979_v53  ;;  %v2228_v58 = vrot.slane %v2227_v46, 4  ;;  %v2248_v9 = vshrl.u32 %v9784_v6, 16  ;;  %v9874_v46 = vld [vmem:[#allocation2 + $0x88] sm:$0xf] }
 0x1ef   : > { %1978 = vst.msk [vmem:[#allocation2 + $0xb8] sm:$0xf] %vm1412_vm2, %v1804_v57  ;;  %1981 = vst [vmem:[#allocation2 + $0xbc] sm:$0x1] %v1980_v60  ;;  %v2223_v2 = vsel %vm9428_vm10, %v2218_v43, %v2222_v1  ;;  %v2241_v11 = vor.u32 %v2240_v48, %v2237_v15  ;;  %v2246_v61 = vrot.slane %v2244_v50, 5  ;;  %v2254_v8 = vshll.u32 %v9789_v20, 16 }
 0x1f0   : > { %v2233_v37 = vsel %vm9428_vm10, %v2228_v58, %v2232_v47  ;;  %v2250_v63 = vrot.slane %v2248_v9, 4  ;;  %v7531_v30 = vrot.slane %v2997_v41, 9  ;;  %v3104_v0 = vrot.slane %v9832_v35, 5  ;;  %v2999_v47 = vld [vmem:[#allocation2 + $0x84] sm:$0xe] }
 0x1f1   : > { %v7463_v10 = vcombine.low %v2223_v2, %v2233_v37  ;;  %v2242_v12 = vrot.slane %v2241_v11, 4  ;;  %v2256_v56 = vrot.slane %v2254_v8, 5  ;;  %v3107_v3 = vrot.slane %v2032_v51, 5  ;;  %v2034_v9 = vld [vmem:[#allocation2 + $0x8c] sm:$0x1] }
 0x1f2   : > { %v2251_v4 = vor.u32 %v2250_v63, %v2246_v61  ;;  %v3105_v62 = vsel %vm9410_vm6, %v7531_v30, %v3104_v0  ;;  %v3106_v13 = vrot.slane %v3104_v0, 4  ;;  %v7532_v20 = vrot.slane %v2998_v54, 9  ;;  %v3000_v54 = vld [vmem:[#allocation2 + $0x90] sm:$0xe]  ;;  %v9881_v37 = vld [vmem:[#allocation2 + $0x94] sm:$0xf] }
 0x1f3   : > { %8244 = vmatmul.mubr.msk.bf16.gmra.mrb[44].mxu0 %vm2483_vm7, %v7463_v10  ;;  %v2247_v38 = vsel %vm9428_vm10, %v2242_v12, %v2246_v61  ;;  %v3111_v55 = vrot.slane %v9846_v29, 5  ;;  %v3114_v17 = vrot.slane %v2033_v5, 5  ;;  %v2259_v18 = vshrl.u32 %v9840_v59, 16  ;;  %v2035_v12 = vld [vmem:[#allocation2 + $0x98] sm:$0x1] }
 0x1f4   : > { %v2252_v27 = vrot.slane %v2251_v4, 4  ;;  %v3108_v22 = vsel %vm9410_vm6, %v3106_v13, %v3107_v3  ;;  %v2262_v23 = vshll.u32 %v9840_v59, 16  ;;  %v2268_v25 = vshll.u32 %v9832_v35, 16 }
 0x1f5   : > { %v7549_v28 = vcombine.low %v3105_v62, %v3108_v22  ;;  %v3112_v39 = vsel %vm9410_vm6, %v7532_v20, %v3111_v55  ;;  %v3113_v42 = vrot.slane %v3111_v55, 4  ;;  %v2261_v1 = vrot.slane %v2259_v18, 4  ;;  %v9887_v62 = vld [vmem:[#allocation2 + $0x84] sm:$0xf] }
 0x1f6   : > { %v2257_v33 = vsel %vm9428_vm10, %v2252_v27, %v2256_v56  ;;  %v2264_v53 = vrot.slane %v2262_v23, 5  ;;  %v2270_v32 = vrot.slane %v2268_v25, 5  ;;  %v2272_v34 = vshrl.u32 %v9832_v35, 16  ;;  %v9894_v23 = vld [vmem:[#allocation2 + $0x90] sm:$0xf] }
 0x1f7   : > { %v7464_v7 = vcombine.low %v2247_v38, %v2257_v33  ;;  %8316 = vmatmul.mubr.msk.bf16.gmra.mrb[16].mxu1 %vm2483_vm7, %v7549_v28  ;;  %v3115_v19 = vsel %vm9410_vm6, %v3113_v42, %v3114_v17  ;;  %v2278_v36 = vshll.u32 %v2032_v51, 16  ;;  %v2283_v40 = vshrl.u32 %v9862_v26, 16 }
 0x1f8   : > { %v7550_v49 = vcombine.low %v3112_v39, %v3115_v19  ;;  %v2265_v41 = vor.u32 %v2264_v53, %v2261_v1  ;;  %v2274_v44 = vrot.slane %v2272_v34, 4  ;;  %v2286_v45 = vshll.u32 %v9862_v26, 16 }
 0x1f9   : > { %8247 = vmatprep.mubr.msk.bf16.mxu0 %vm2483_vm7, %v7464_v7  ;;  %v2280_v43 = vrot.slane %v2278_v36, 5  ;;  %v2285_v15 = vrot.slane %v2283_v40, 4  ;;  %v2292_v48 = vshll.u32 %v9846_v29, 16  ;;  %v2296_v50 = vshrl.u32 %v9846_v29, 16  ;;  %v3001_v40 = vld [vmem:[#allocation2 + $0x9c] sm:$0xe] }
 0x1fa   : > { %8319 = vmatprep.mubr.msk.bf16.mxu1 %vm2483_vm7, %v7550_v49  ;;  %v2266_v51 = vrot.slane %v2265_v41, 4  ;;  %v2275_v57 = vor.u32 %v2274_v44, %v2270_v32  ;;  %v2288_v60 = vrot.slane %v2286_v45, 5  ;;  %v2302_v58 = vshll.u32 %v2033_v5, 16 }
 0x1fb   : > { %v2294_v2 = vrot.slane %v2292_v48, 5  ;;  %v2298_v11 = vrot.slane %v2296_v50, 4  ;;  %v7533_v61 = vrot.slane %v2999_v47, 9  ;;  %v3118_v8 = vrot.slane %v9874_v46, 5  ;;  %v9910_v47 = vld [vmem:[#allocation2 + $0xa0] sm:$0xf] }
 0x1fc   : > { %v2271_v63 = vsel %vm9428_vm10, %v2266_v51, %v2270_v32  ;;  %v2276_v30 = vrot.slane %v2275_v57, 4  ;;  %v2289_v0 = vor.u32 %v2288_v60, %v2285_v15  ;;  %v2304_v10 = vrot.slane %v2302_v58, 5  ;;  %v9915_v51 = vld [vmem:[#allocation2 + $0xac] sm:$0xf]  ;;  %v3002_v57 = vld [vmem:[#allocation2 + $0xa8] sm:$0xe] }
 0x1fd   : > { %v2299_v56 = vor.u32 %v2298_v11, %v2294_v2  ;;  %v3119_v3 = vsel %vm9410_vm6, %v7533_v61, %v3118_v8  ;;  %v3120_v5 = vrot.slane %v3118_v8, 4  ;;  %v3121_v4 = vrot.slane %v2034_v9, 5 }
 0x1fe   : > { %v2281_v13 = vsel %vm9428_vm10, %v2276_v30, %v2280_v43  ;;  %v2290_v20 = vrot.slane %v2289_v0, 4  ;;  %v7534_v38 = vrot.slane %v3000_v54, 9  ;;  %v3125_v55 = vrot.slane %v9881_v37, 5  ;;  %v2036_v54 = vld [vmem:[#allocation2 + $0xa4] sm:$0x1] }
 0x1ff   : > { %v7465_v17 = vcombine.low %v2271_v63, %v2281_v13  ;;  %v2300_v18 = vrot.slane %v2299_v56, 4  ;;  %v3122_v27 = vsel %vm9410_vm6, %v3120_v5, %v3121_v4  ;;  %v3128_v22 = vrot.slane %v2035_v12, 5 }
 0x200   : > { %v2295_v25 = vsel %vm9428_vm10, %v2290_v20, %v2294_v2  ;;  %v7551_v28 = vcombine.low %v3119_v3, %v3122_v27  ;;  %v3126_v39 = vsel %vm9410_vm6, %v7534_v38, %v3125_v55  ;;  %v3127_v42 = vrot.slane %v3125_v55, 4  ;;  %v2037_v55 = vld [vmem:[#allocation2 + $0xb0] sm:$0x1] }
 0x201   : > { %8248 = vmatmul.mubr.msk.bf16.gmra.mrb[48].mxu0 %vm2483_vm7, %v7465_v17  ;;  %v2305_v1 = vsel %vm9428_vm10, %v2300_v18, %v2304_v10  ;;  %v2307_v33 = vshrl.u32 %v9887_v62, 16  ;;  %v2310_v53 = vshll.u32 %v9887_v62, 16  ;;  %v2316_v32 = vshll.u32 %v9874_v46, 16  ;;  %v9924_v18 = vld [vmem:[#allocation2 + $0x9c] sm:$0xf] }
 0x202   : > { %v7466_v34 = vcombine.low %v2295_v25, %v2305_v1  ;;  %8320 = vmatmul.mubr.msk.bf16.gmra.mrb[20].mxu1 %vm2483_vm7, %v7551_v28  ;;  %v3129_v7 = vsel %vm9410_vm6, %v3127_v42, %v3128_v22  ;;  %v2320_v19 = vshrl.u32 %v9874_v46, 16  ;;  %v2326_v36 = vshll.u32 %v2034_v9, 16 }
 0x203   : > { %v7552_v49 = vcombine.low %v3126_v39, %v3129_v7  ;;  %v2309_v41 = vrot.slane %v2307_v33, 4  ;;  %v2312_v44 = vrot.slane %v2310_v53, 5  ;;  %v2318_v45 = vrot.slane %v2316_v32, 5 }
 0x204   : > { %8251 = vmatprep.mubr.msk.bf16.mxu0 %vm2483_vm7, %v7466_v34  ;;  %v2322_v43 = vrot.slane %v2320_v19, 4  ;;  %v2328_v15 = vrot.slane %v2326_v36, 5  ;;  %v2331_v48 = vshrl.u32 %v9894_v23, 16  ;;  %v2334_v50 = vshll.u32 %v9894_v23, 16 }
 0x205   : > { %8323 = vmatprep.mubr.msk.bf16.mxu1 %vm2483_vm7, %v7552_v49  ;;  %v2313_v60 = vor.u32 %v2312_v44, %v2309_v41  ;;  %v2340_v58 = vshll.u32 %v9881_v37, 16  ;;  %v2344_v9 = vshrl.u32 %v9881_v37, 16  ;;  %v2350_v2 = vshll.u32 %v2035_v12, 16  ;;  %v9942_v41 = vld [vmem:[#allocation2 + $0xa8] sm:$0xf] }
 0x206   : > { %v2323_v11 = vor.u32 %v2322_v43, %v2318_v45  ;;  %v2333_v61 = vrot.slane %v2331_v48, 4  ;;  %v2336_v8 = vrot.slane %v2334_v50, 5  ;;  %v7535_v63 = vrot.slane %v3001_v40, 9 }
 0x207   : > { %v2314_v30 = vrot.slane %v2313_v60, 4  ;;  %v2342_v0 = vrot.slane %v2340_v58, 5  ;;  %v2346_v10 = vrot.slane %v2344_v9, 4  ;;  %v2352_v56 = vrot.slane %v2350_v2, 5  ;;  %v3003_v58 = vld [vmem:[#allocation2 + $0xb4] sm:$0xe] }
 0x208   : > { %v2324_v3 = vrot.slane %v2323_v11, 4  ;;  %v2337_v5 = vor.u32 %v2336_v8, %v2333_v61  ;;  %v3132_v4 = vrot.slane %v9910_v47, 5  ;;  %v3135_v13 = vrot.slane %v2036_v54, 5  ;;  %v9952_v8 = vld [vmem:[#allocation2 + $0xb8] sm:$0xf] }
 0x209   : > { %v2319_v20 = vsel %vm9428_vm10, %v2314_v30, %v2318_v45  ;;  %v2347_v38 = vor.u32 %v2346_v10, %v2342_v0  ;;  %v7536_v17 = vrot.slane %v3002_v57, 9  ;;  %v3139_v12 = vrot.slane %v9915_v51, 5 }
 0x20a   : > { %v2329_v27 = vsel %vm9428_vm10, %v2324_v3, %v2328_v15  ;;  %v2338_v22 = vrot.slane %v2337_v5, 4  ;;  %v3133_v25 = vsel %vm9410_vm6, %v7535_v63, %v3132_v4  ;;  %v3134_v28 = vrot.slane %v3132_v4, 4 }
 0x20b   : > { %v7467_v39 = vcombine.low %v2319_v20, %v2329_v27  ;;  %v2348_v42 = vrot.slane %v2347_v38, 4  ;;  %v3140_v1 = vsel %vm9410_vm6, %v7536_v17, %v3139_v12  ;;  %v3141_v33 = vrot.slane %v3139_v12, 4 }
 0x20c   : > { %v2343_v53 = vsel %vm9428_vm10, %v2338_v22, %v2342_v0  ;;  %v3136_v32 = vsel %vm9410_vm6, %v3134_v28, %v3135_v13  ;;  %v3142_v34 = vrot.slane %v2037_v55, 5  ;;  %v2355_v7 = vshrl.u32 %v9924_v18, 16  ;;  %v9956_v13 = vld [vmem:[#allocation2 + $0xb4] sm:$0xf] }
 0x20d   : > { %8252 = vmatmul.mubr.msk.bf16.gmra.mrb[52].mxu0 %vm2483_vm7, %v7467_v39  ;;  %v2353_v19 = vsel %vm9428_vm10, %v2348_v42, %v2352_v56  ;;  %v7553_v36 = vcombine.low %v3133_v25, %v3136_v32  ;;  %v2358_v40 = vshll.u32 %v9924_v18, 16  ;;  %v2364_v49 = vshll.u32 %v9910_v47, 16 }
 0x20e   : > { %v7468_v44 = vcombine.low %v2343_v53, %v2353_v19  ;;  %v3143_v45 = vsel %vm9410_vm6, %v3141_v33, %v3142_v34  ;;  %v2357_v43 = vrot.slane %v2355_v7, 4  ;;  %v2368_v15 = vshrl.u32 %v9910_v47, 16 }
 0x20f   : > { %8324 = vmatmul.mubr.msk.bf16.gmra.mrb[24].mxu1 %vm2483_vm7, %v7553_v36  ;;  %v7554_v48 = vcombine.low %v3140_v1, %v3143_v45  ;;  %v2360_v50 = vrot.slane %v2358_v40, 5  ;;  %v2366_v57 = vrot.slane %v2364_v49, 5  ;;  %v2374_v60 = vshll.u32 %v2036_v54, 16  ;;  %v2038_v54 = vld [vmem:[#allocation2 + $0xbc] sm:$0x1] }
 0x210   : > { %8255 = vmatprep.mubr.msk.bf16.mxu0 %vm2483_vm7, %v7468_v44  ;;  %v2370_v9 = vrot.slane %v2368_v15, 4  ;;  %v2379_v2 = vshrl.u32 %v9942_v41, 16  ;;  %v2382_v11 = vshll.u32 %v9942_v41, 16  ;;  %v2388_v61 = vshll.u32 %v9915_v51, 16 }
 0x211   : > { %8327 = vmatprep.mubr.msk.bf16.mxu1 %vm2483_vm7, %v7554_v48  ;;  %v2361_v63 = vor.u32 %v2360_v50, %v2357_v43  ;;  %v2376_v30 = vrot.slane %v2374_v60, 5  ;;  %v2392_v0 = vshrl.u32 %v9915_v51, 16  ;;  %v2398_v10 = vshll.u32 %v2037_v55, 16 }
 0x212   : > { %v2371_v56 = vor.u32 %v2370_v9, %v2366_v57  ;;  %v2381_v3 = vrot.slane %v2379_v2, 4  ;;  %v2384_v5 = vrot.slane %v2382_v11, 5  ;;  %v2390_v4 = vrot.slane %v2388_v61, 5 }
 0x213   : > { %v2362_v20 = vrot.slane %v2361_v63, 4  ;;  %v2394_v38 = vrot.slane %v2392_v0, 4  ;;  %v2400_v17 = vrot.slane %v2398_v10, 5  ;;  %v7537_v12 = vrot.slane %v3003_v58, 9  ;;  %v8971_v58 = vld [vmem:[#allocation2 + $0xc] sm:$0xff]   ;;  %v8983_v10 = vld [vmem:[#allocation2 + $0x84] sm:$0xff]  }
 0x214   : > { %v2372_v27 = vrot.slane %v2371_v56, 4  ;;  %v2385_v22 = vor.u32 %v2384_v5, %v2381_v3  ;;  %v3146_v25 = vrot.slane %v9952_v8, 5  ;;  %v3149_v28 = vrot.slane %v2038_v54, 5 }
 0x215   : > { %v2367_v39 = vsel %vm9428_vm10, %v2362_v20, %v2366_v57  ;;  %v2395_v55 = vor.u32 %v2394_v38, %v2390_v4  ;;  %v2403_v42 = vshrl.u32 %v9956_v13, 16  ;;  %v2406_v1 = vshll.u32 %v9956_v13, 16 }
 0x216   : > { %v2377_v33 = vsel %vm9428_vm10, %v2372_v27, %v2376_v30  ;;  %v2386_v53 = vrot.slane %v2385_v22, 4  ;;  %v3147_v32 = vsel %vm9410_vm6, %v7537_v12, %v3146_v25  ;;  %v3148_v34 = vrot.slane %v3146_v25, 4  ;;  %v8974_v12 = vld [vmem:[#allocation2 + $0x18] sm:$0xff]   ;;  %v9018_v27 = vld [vmem:[#allocation2 + $0x4] sm:$0xf] }
 0x217   : > { %v7469_v7 = vcombine.low %v2367_v39, %v2377_v33  ;;  %v2396_v19 = vrot.slane %v2395_v55, 4  ;;  %v2405_v36 = vrot.slane %v2403_v42, 4  ;;  %v2408_v40 = vrot.slane %v2406_v1, 5  ;;  %v9019_v22 = vld [vmem:[#allocation2] sm:$0xf]  ;;  %v10002_v39 = vld [vmem:[%s11629_s5 + $0x28] sm:$0xff]  }
 0x218   : > { %v2391_v49 = vsel %vm9428_vm10, %v2386_v53, %v2390_v4  ;;  %v3150_v44 = vsel %vm9410_vm6, %v3148_v34, %v3149_v28  ;;  %v2412_v45 = vshll.u32 %v9952_v8, 16  ;;  %v2416_v43 = vshrl.u32 %v9952_v8, 16  ;;  %v8975_v55 = vld [vmem:[#allocation2 + $0x24] sm:$0xff]   ;;  %v9021_v1 = vld [vmem:[#allocation2 + $0x10] sm:$0xf] }
 0x219   : > { %8256 = vmatmul.mubr.msk.bf16.gmra.mrb[56].mxu0 %vm2483_vm7, %v7469_v7  ;;  %v2401_v15 = vsel %vm9428_vm10, %v2396_v19, %v2400_v17  ;;  %v7555_v48 = vcombine.low %v3147_v32, %v3150_v44  ;;  %v2409_v50 = vor.u32 %v2408_v40, %v2405_v36  ;;  %v2422_v57 = vshll.u32 %v2038_v54, 16  ;;  %v9020_v42 = vld [vmem:[%s11629_s5 + $0x20] sm:$0xff]   ;;  %v9022_v33 = vld [vmem:[#allocation2 + $0xc] sm:$0xf]  ;;  %v8976_v32 = vld [vmem:[#allocation2 + $0x30] sm:$0xff]  }
 0x21a   : > { %v7470_v60 = vcombine.low %v2391_v49, %v2401_v15  ;;  %v2414_v9 = vrot.slane %v2412_v45, 5  ;;  %v2418_v2 = vrot.slane %v2416_v43, 4  ;;  %v7489_v25 = vcombine.low %v9019_v22, %v9018_v27  ;;  %v9023_v34 = vld [vmem:[#allocation2 + $0x1c] sm:$0xf]  ;;  %v9024_v7 = vld [vmem:[#allocation2 + $0x18] sm:$0xf] }
 0x21b   : > { %8328 = vmatmul.mubr.msk.bf16.gmra.mrb[28].mxu1 %vm2483_vm7, %v7555_v48  ;;  %v2410_v11 = vrot.slane %v2409_v50, 4  ;;  %v2424_v63 = vrot.slane %v2422_v57, 5  ;;  %v7490_v53 = vcombine.low %v9022_v33, %v9021_v1  ;;  %v7491_v19 = vcombine.low %v9024_v7, %v9023_v34  ;;  %v8977_v36 = vld [vmem:[#allocation2 + $0x3c] sm:$0xff]   ;;  %v3811_v40 = vld [vmem:[#allocation2 + $0xc] sm:$0xf] }
 0x21c   : > { %8259 = vmatprep.mubr.msk.bf16.mxu0 %vm2483_vm7, %v7470_v60  ;;  %8333 = vmatprep.mubr.msk.bf16.mxu1 %vm2483_vm7, %v8971_v58  ;;  %v2419_v61 = vor.u32 %v2418_v2, %v2414_v9  ;;  %v10016_v49 = vld [vmem:[#allocation2 + $0x10] sm:$0xf]  ;;  %v3860_v44 = vshrl.u32 %v3811_v40, 16  ;;  %v3863_v45 = vshll.u32 %v3811_v40, 16  ;;  %v3814_v48 = vld [vmem:[#allocation2 + $0x18] sm:$0xf] }
 0x21d   : > { %v2415_v20 = vsel %vm9428_vm10, %v2410_v11, %v2414_v9  ;;  %11682 = vst [vmem:[#allocation3_spill] sm:$0xff] %v10016_v49  ;;  %v3869_v43 = vshll.u32 %v10016_v49, 16  ;;  %v3873_v15 = vshrl.u32 %v10016_v49, 16  ;;  %v10020_v50 = vld [vmem:[#allocation2 + $0x1c] sm:$0xf]  ;;  %v3887_v27 = vshll.u32 %v3814_v48, 16 }
 0x21e   : > { %v2420_v30 = vrot.slane %v2419_v61, 4  ;;  %11683 = vst [vmem:[#allocation4_spill] sm:$0xff] %v10020_v50  ;;  %v9025_v57 = vld [vmem:[#allocation2 + $0x28] sm:$0xf]  ;;  %v9026_v60 = vld [vmem:[#allocation2 + $0x24] sm:$0xf] }
 0x21f   : > { %v7492_v58 = vcombine.low %v9026_v60, %v9025_v57  ;;  %v9027_v9 = vld [vmem:[#allocation2 + $0x34] sm:$0xf]  ;;  %v9028_v2 = vld [vmem:[#allocation2 + $0x30] sm:$0xf]  ;;  %v8978_v61 = vld [vmem:[#allocation2 + $0x48] sm:$0xff]   ;;  %v3897_v1 = vshrl.u32 %v10020_v50, 16 }
 0x220   : > { %v2425_v38 = vsel %vm9428_vm10, %v2420_v30, %v2424_v63  ;;  %v7493_v11 = vcombine.low %v9028_v2, %v9027_v9  ;;  %v3817_v63 = vld [vmem:[#allocation2 + $0x24] sm:$0xf]  ;;  %v10022_v30 = vld [vmem:[#allocation2 + $0x28] sm:$0xf]  ;;  %v10026_v22 = vld [vmem:[#allocation2 + $0x14] sm:$0x1] }
 0x221   : > { %v7471_v17 = vcombine.low %v2415_v20, %v2425_v38  ;;  %v8979_v20 = vld [vmem:[#allocation2 + $0x54] sm:$0xff]   ;;  %v3862_v38 = vrot.slane %v3860_v44, 4  ;;  %11684 = vst [vmem:[#allocation5_spill] sm:$0xff] %v10026_v22  ;;  %v10034_v33 = vld [vmem:[#allocation2 + $0x20] sm:$0x1]  ;;  %v3917_v34 = vshll.u32 %v10022_v30, 16 }
 0x222   : > { %11685 = vst [vmem:[#allocation6_spill] sm:$0xff] %v10034_v33  ;;  %v3921_v7 = vshrl.u32 %v10022_v30, 16  ;;  %v3889_v44 = vrot.slane %v3887_v27, 5  ;;  %v3903_v57 = vshll.u32 %v10034_v33, 16  ;;  %v9031_v27 = vld [vmem:[#allocation2 + $0x4c] sm:$0xf] }
 0x223   : > { %8260 = vmatmul.mubr.msk.bf16.gmra.mrb[60].mxu0 %vm2483_vm7, %v7471_v17  ;;  %8334 = vmatmul.mubr.msk.bf16.vlgmr.msra.gmra.mrb[0].mxu1 %vm2483_vm7, %v8974_v12  ;;  %v3865_v17 = vrot.slane %v3863_v45, 5  ;;  %v3884_v12 = vshrl.u32 %v3814_v48, 16  ;;  %v10039_v45 = vld [vmem:[#allocation2 + $0x34] sm:$0xf]  ;;  %v3899_v48 = vrot.slane %v3897_v1, 4  ;;  %v10045_v9 = vrot.slane %v3917_v34, 5 }
 0x224   : > { %8366 = vmatpush3.bf16.msra.mxu1 %v9020_v42  ;;  %8337 = vmatprep.mubr.msk.bf16.mxu1 %vm2483_vm7, %v8975_v55  ;;  %v3875_v55 = vrot.slane %v3873_v15, 4  ;;  %v3893_v42 = vshll.u32 %v10020_v50, 16  ;;  %v3923_v2 = vrot.slane %v3921_v7, 4  ;;  %v7496_v1 = vcombine.low %v9803_v24, %v9766_v14  ;;  %v3823_v34 = vld [vmem:[#allocation2 + $0x3c] sm:$0xf] }
 0x225   : > { %8265 = vmatprep.mubr.msk.bf16.mxu0 %vm2483_vm7, %v7489_v25  ;;  %8399 = vmatprep.subr.bf16.mxu1 %v10002_v39  ;;  %v10028_v25 = vrot.slane %v3869_v43, 5  ;;  %v3886_v40 = vrot.slane %v3884_v12, 4  ;;  %v3945_v12 = vshrl.u32 %v10039_v45, 16  ;;  %v10055_v28 = vrot.slane %v3903_v57, 5  ;;  %v10057_v4 = vld [vmem:[#allocation2 + $0x40] sm:$0xf] }
 0x226   : > { %v10042_v15 = vrot.slane %v3893_v42, 5  ;;  %v8981_v42 = vld [vmem:[#allocation2 + $0x6c] sm:$0xff]   ;;  %v3924_v24 = vor.u32 %v3923_v2, %v10045_v9  ;;  %v3959_v57 = vshll.u32 %v3823_v34, 16  ;;  %v3841_v33 = vld [vmem:[#allocation2 + $0x84] sm:$0xf]  ;;  %v11691_v50 = vcombine.low %v9887_v62, %v9874_v46 }
 0x227   : > { %v3876_v43 = vor.u32 %v3875_v55, %v10028_v25  ;;  %v7495_v55 = vcombine.low %v9752_v21, %v9031_v27  ;;  %v10061_v21 = vld [vmem:[#allocation2 + $0x2c] sm:$0x1]  ;;  %v3965_v27 = vshll.u32 %v10057_v4, 16 }
 0x228   : > { %v10074_v2 = vld [vmem:[#allocation2 + $0x4c] sm:$0xf]  ;;  %v3961_v54 = vrot.slane %v3959_v57, 5  ;;  %v10096_v57 = vld [vmem:[#allocation2 + $0x58] sm:$0xf] }
 0x229   : > { %v3877_v7 = vrot.slane %v3876_v43, 4  ;;  %v3989_v0 = vshll.u32 %v10074_v2, 16 }
 0x22b   : > { %8266 = vmatmul.mubr.msk.bf16.vlgmr.msra.gmra.mrb[32].mxu0 %vm2483_vm7, %v7490_v53  ;;  %8338 = vmatmul.mubr.msk.bf16.gmra.mrb[4].mxu1 %vm2483_vm7, %v8976_v32  ;;  %v3908_v53 = vshrl.u32 %v3817_v63, 16  ;;  %v3911_v32 = vshll.u32 %v3817_v63, 16 }
 0x22c   : > { %8269 = vmatprep.mubr.msk.bf16.mxu0 %vm2483_vm7, %v7491_v19  ;;  %8341 = vmatprep.mubr.msk.bf16.mxu1 %vm2483_vm7, %v8977_v36  ;;  %v3866_v19 = vor.u32 %v3865_v17, %v3862_v38  ;;  %v3879_v36 = vshll.u32 %v10026_v22, 16  ;;  %v3820_v38 = vld [vmem:[#allocation2 + $0x30] sm:$0xf]  ;;  %v3941_v17 = vshll.u32 %v10039_v45, 16 }
 0x22d   : > { %v3910_v60 = vrot.slane %v3908_v53, 4 }
 0x22e   : > { %v3867_v53 = vrot.slane %v3866_v19, 4  ;;  %v3932_v19 = vshrl.u32 %v3820_v38, 16  ;;  %v10064_v43 = vrot.slane %v3941_v17, 5 }
 0x230   : > { %v3934_v5 = vrot.slane %v3932_v19, 4 }
 0x233   : > { %8270 = vmatmul.mubr.msk.bf16.gmra.mrb[36].mxu0 %vm2483_vm7, %v7492_v58  ;;  %8342 = vmatmul.mubr.msk.bf16.gmra.mrb[8].mxu1 %vm2483_vm7, %v8978_v61  ;;  %v3913_v58 = vrot.slane %v3911_v32, 5  ;;  %v9030_v61 = vld [vmem:[#allocation2 + $0x3c] sm:$0xf]  ;;  %v3890_v32 = vor.u32 %v3889_v44, %v3886_v40  ;;  %v3935_v40 = vshll.u32 %v3820_v38, 16  ;;  %v3826_v44 = vld [vmem:[#allocation2 + $0x48] sm:$0xf] }
 0x234   : > { %8273 = vmatprep.mubr.msk.bf16.mxu0 %vm2483_vm7, %v7493_v11  ;;  %8345 = vmatprep.mubr.msk.bf16.mxu1 %vm2483_vm7, %v8979_v20  ;;  %v9029_v11 = vld [vmem:[#allocation2 + $0x40] sm:$0xf]  ;;  %v3980_v38 = vshrl.u32 %v3826_v44, 16  ;;  %v3983_v17 = vshll.u32 %v3826_v44, 16  ;;  %v3993_v44 = vshrl.u32 %v10074_v2, 16 }
 0x235   : > { %v7494_v63 = vcombine.low %v9030_v61, %v9029_v11  ;;  %v8980_v20 = vld [vmem:[#allocation2 + $0x60] sm:$0xff]   ;;  %v3881_v11 = vrot.slane %v3879_v36, 5  ;;  %v3900_v61 = vor.u32 %v3899_v48, %v10042_v15  ;;  %v3914_v14 = vor.u32 %v3913_v58, %v3910_v60 }
 0x236   : > { %v3947_v36 = vrot.slane %v3945_v12, 4  ;;  %v3956_v48 = vshrl.u32 %v3823_v34, 16  ;;  %v3927_v58 = vshll.u32 %v10061_v21, 16  ;;  %v10076_v34 = vld [vmem:[#allocation2 + $0x38] sm:$0x1]  ;;  %v3985_v19 = vrot.slane %v3983_v17, 5 }
 0x237   : > { %v3882_v60 = vsel %vm9428_vm10, %v3877_v7, %v3881_v11  ;;  %v3901_v12 = vrot.slane %v3900_v61, 4  ;;  %v10079_v7 = vrot.slane %v3965_v27, 5  ;;  %v4017_v17 = vshrl.u32 %v10096_v57, 16 }
 0x238   : > { %v3948_v3 = vor.u32 %v3947_v36, %v10064_v43  ;;  %v3958_v56 = vrot.slane %v3956_v48, 4  ;;  %v3929_v61 = vrot.slane %v3927_v58, 5 }
 0x239   : > { %v3906_v27 = vsel %vm9428_vm10, %v3901_v12, %v10055_v28  ;;  %v4013_v28 = vshll.u32 %v10096_v57, 16 }
 0x23b   : > { %8274 = vmatmul.mubr.msk.bf16.gmra.mrb[40].mxu0 %vm2483_vm7, %v7494_v63  ;;  %8346 = vmatmul.mubr.msk.bf16.gmra.mrb[12].mxu1 %vm2483_vm7, %v8980_v20  ;;  %v3872_v63 = vsel %vm9428_vm10, %v3867_v53, %v10028_v25  ;;  %v3891_v20 = vrot.slane %v3890_v32, 4  ;;  %v3937_v25 = vrot.slane %v3935_v40, 5  ;;  %v8982_v53 = vld [vmem:[#allocation2 + $0x78] sm:$0xff]   ;;  %v3925_v32 = vrot.slane %v3924_v24, 4 }
 0x23c   : > { %8277 = vmatprep.mubr.msk.bf16.mxu0 %vm2483_vm7, %v7495_v55  ;;  %8349 = vmatprep.mubr.msk.bf16.mxu1 %vm2483_vm7, %v8981_v42  ;;  %v3969_v55 = vshrl.u32 %v10057_v4, 16  ;;  %v3915_v42 = vrot.slane %v3914_v14, 4  ;;  %v3951_v14 = vshll.u32 %v10076_v34, 16  ;;  %v3982_v24 = vrot.slane %v3980_v38, 4 }
 0x23d   : > { %v11686_v40 = vcombine.low %v9815_v16, %v9784_v6  ;;  %v10091_v36 = vcombine.low %v3872_v63, %v3882_v60  ;;  %v3938_v48 = vor.u32 %v3937_v25, %v3934_v5  ;;  %v3930_v6 = vsel %vm9428_vm10, %v3925_v32, %v3929_v61  ;;  %v3829_v60 = vld [vmem:[#allocation2 + $0x54] sm:$0xf]  ;;  %v8987_v61 = vld [vmem:[#allocation2 + $0x9c] sm:$0xff]  }
 0x23e   : > { %v3971_v11 = vrot.slane %v3969_v55, 4  ;;  %v3949_v16 = vrot.slane %v3948_v3, 4  ;;  %v10103_v55 = vld [vmem:[#allocation2 + $0x44] sm:$0x1]  ;;  %v3920_v63 = vsel %vm9428_vm10, %v3915_v42, %v10045_v9  ;;  %v10109_v5 = vrot.slane %v3989_v0, 5  ;;  %v8986_v0 = vld [vmem:[#allocation2 + $0x90] sm:$0xff]  }
 0x23f   : > { %v3953_v58 = vrot.slane %v3951_v14, 5  ;;  %v3986_v38 = vor.u32 %v3985_v19, %v3982_v24  ;;  %v3832_v3 = vld [vmem:[#allocation2 + $0x60] sm:$0xf]  ;;  %v3975_v9 = vshll.u32 %v10103_v55, 16  ;;  %v10118_v42 = vld [vmem:[#allocation2 + $0x50] sm:$0x1] }
 0x240   : > { %v4004_v32 = vshrl.u32 %v3829_v60, 16  ;;  %v10129_v19 = vld [vmem:[#allocation2 + $0x5c] sm:$0x1] }
 0x241   : > { %v3954_v25 = vsel %vm9428_vm10, %v3949_v16, %v3953_v58  ;;  %v10139_v16 = vrot.slane %v4013_v28, 5 }
 0x242   : > { %v4006_v58 = vrot.slane %v4004_v32, 4 }
 0x243   : > { %8278 = vmatmul.mubr.msk.bf16.gmra.mrb[44].mxu0 %vm2483_vm7, %v7496_v1  ;;  %8350 = vmatmul.mubr.msk.bf16.gmra.mrb[16].mxu1 %vm2483_vm7, %v8982_v53  ;;  %v3896_v1 = vsel %vm9428_vm10, %v3891_v20, %v10042_v15  ;;  %v3972_v15 = vor.u32 %v3971_v11, %v10079_v7  ;;  %v3995_v20 = vrot.slane %v3993_v44, 4  ;;  %v4007_v11 = vshll.u32 %v3829_v60, 16  ;;  %v10124_v44 = vld [vmem:[#allocation2 + $0x64] sm:$0xf] }
 0x244   : > { %8281 = vmatprep.mubr.msk.bf16.mxu0 %vm2483_vm7, %v11686_v40  ;;  %8353 = vmatprep.mubr.msk.bf16.mxu1 %vm2483_vm7, %v8983_v10  ;;  %v3962_v10 = vor.u32 %v3961_v54, %v3958_v56  ;;  %v10113_v12 = vcombine.low %v3896_v1, %v3906_v27  ;;  %v10115_v54 = vcombine.low %v3920_v63, %v3930_v6  ;;  %v3939_v56 = vrot.slane %v3938_v48, 4 }
 0x245   : > { %v10126_v14 = vrot.slane %v3972_v15, 4  ;;  %v3996_v24 = vor.u32 %v3995_v20, %v10109_v5  ;;  %v4028_v40 = vshrl.u32 %v3832_v3, 16  ;;  %v4031_v1 = vshll.u32 %v3832_v3, 16 }
 0x246   : > { %v10122_v53 = vrot.slane %v3962_v10, 4  ;;  %v11687_v48 = vcombine.low %v9840_v59, %v9832_v35  ;;  %v10136_v27 = vrot.slane %v3986_v38, 4  ;;  %v3999_v6 = vshll.u32 %v10118_v42, 16 }
 0x247   : > { %v4019_v10 = vrot.slane %v4017_v17, 4  ;;  %v11688_v63 = vcombine.low %v9862_v26, %v9846_v29  ;;  %v3944_v35 = vsel %vm9428_vm10, %v3939_v56, %v10064_v43  ;;  %v10149_v59 = vrot.slane %v3975_v9, 5  ;;  %v10156_v26 = vld [vmem:[#allocation2 + $0x70] sm:$0xf]  ;;  %v10164_v56 = vld [vmem:[#allocation2 + $0x7c] sm:$0xf] }
 0x248   : > { %v4037_v15 = vshll.u32 %v10124_v44, 16  ;;  %v4041_v20 = vshrl.u32 %v10124_v44, 16  ;;  %v10153_v60 = vcombine.low %v3944_v35, %v3954_v25  ;;  %v4009_v38 = vrot.slane %v4007_v11, 5  ;;  %11689 = vst [vmem:[#allocation7_spill] sm:$0xff] %v10164_v56  ;;  %v3835_v11 = vld [vmem:[#allocation2 + $0x6c] sm:$0xf] }
 0x249   : > { %v4023_v29 = vshll.u32 %v10129_v19, 16  ;;  %v10162_v43 = vrot.slane %v3996_v24, 4  ;;  %v4030_v17 = vrot.slane %v4028_v40, 4  ;;  %v4033_v3 = vrot.slane %v4031_v1, 5 }
 0x24a   : > { %v3978_v9 = vsel %vm9428_vm10, %v10126_v14, %v10149_v59  ;;  %v4001_v25 = vrot.slane %v3999_v6, 5  ;;  %v4020_v32 = vor.u32 %v4019_v10, %v10139_v16  ;;  %v10175_v24 = vrot.slane %v4037_v15, 5  ;;  %v8990_v14 = vld [vmem:[#allocation2 + $0xa8] sm:$0xff]  }
 0x24b   : > { %8282 = vmatmul.mubr.msk.bf16.gmra.mrb[48].mxu0 %vm2483_vm7, %v11687_v48  ;;  %8354 = vmatmul.mubr.msk.bf16.gmra.mrb[20].mxu1 %vm2483_vm7, %v8986_v0  ;;  %v3992_v0 = vsel %vm9428_vm10, %v10136_v27, %v10109_v5  ;;  %v4043_v40 = vrot.slane %v4041_v20, 4  ;;  %v4061_v1 = vshll.u32 %v10156_v26, 16  ;;  %v4065_v48 = vshrl.u32 %v10156_v26, 16  ;;  %v8991_v27 = vld [vmem:[#allocation2 + $0xb4] sm:$0xff]  }
 0x24c   : > { %8285 = vmatprep.mubr.msk.bf16.mxu0 %vm2483_vm7, %v11688_v63  ;;  %8357 = vmatprep.mubr.msk.bf16.mxu1 %vm2483_vm7, %v8987_v61  ;;  %v3838_v61 = vld [vmem:[#allocation2 + $0x78] sm:$0xf]  ;;  %v10179_v63 = vld [vmem:[#allocation2 + $0x88] sm:$0xf]  ;;  %v4010_v35 = vor.u32 %v4009_v38, %v4006_v58  ;;  %v4025_v59 = vrot.slane %v4023_v29, 5  ;;  %v4085_v28 = vshll.u32 %v10164_v56, 16  ;;  %v4002_v6 = vsel %vm9428_vm10, %v10162_v43, %v4001_v25 }
 0x24d   : > { %11690 = vst [vmem:[#allocation8_spill] sm:$0xff] %v10179_v63  ;;  %v4089_v5 = vshrl.u32 %v10164_v56, 16  ;;  %v4034_v10 = vor.u32 %v4033_v3, %v4030_v17  ;;  %v4052_v15 = vshrl.u32 %v3835_v11, 16  ;;  %v4055_v20 = vshll.u32 %v3835_v11, 16  ;;  %v10191_v58 = vld [vmem:[#allocation2 + $0x68] sm:$0x1] }
 0x24e   : > { %v4076_v38 = vshrl.u32 %v3838_v61, 16  ;;  %v4079_v29 = vshll.u32 %v3838_v61, 16  ;;  %v4109_v22 = vshll.u32 %v10179_v63, 16  ;;  %v4113_v49 = vshrl.u32 %v10179_v63, 16  ;;  %v10203_v3 = vld [vmem:[#allocation2 + $0x74] sm:$0x1] }
 0x24f   : > { %v11692_v43 = vcombine.low %v9894_v23, %v9881_v37  ;;  %v4021_v46 = vrot.slane %v4020_v32, 4  ;;  %v4044_v62 = vor.u32 %v4043_v40, %v10175_v24  ;;  %v4067_v17 = vrot.slane %v4065_v48, 4 }
 0x250   : > { %v10205_v25 = vrot.slane %v4085_v28, 5  ;;  %v4091_v11 = vrot.slane %v4089_v5, 4  ;;  %v4100_v61 = vshrl.u32 %v3841_v33, 16  ;;  %v4011_v63 = vrot.slane %v4010_v35, 4  ;;  %v8994_v35 = vld [vmem:[#allocation2 + $0xc0] sm:$0xff]  }
 0x251   : > { %v4047_v37 = vshll.u32 %v10191_v58, 16  ;;  %v4054_v23 = vrot.slane %v4052_v15, 4  ;;  %v4078_v56 = vrot.slane %v4076_v38, 4  ;;  %v10208_v32 = vrot.slane %v4109_v22, 5 }
 0x252   : > { %v4115_v40 = vrot.slane %v4113_v49, 4  ;;  %v10212_v48 = vrot.slane %v4034_v10, 4  ;;  %v10214_v28 = vrot.slane %v4044_v62, 4  ;;  %v4071_v5 = vshll.u32 %v10203_v3, 16  ;;  %v10233_v62 = vld [vmem:[#allocation2 + $0x8c] sm:$0x1] }
 0x253   : > { %8286 = vmatmul.mubr.msk.bf16.gmra.mrb[52].mxu0 %vm2483_vm7, %v11691_v50  ;;  %8358 = vmatmul.mubr.msk.bf16.gmra.mrb[24].mxu1 %vm2483_vm7, %v8990_v14  ;;  %v10201_v50 = vrot.slane %v4061_v1, 5  ;;  %v4103_v14 = vshll.u32 %v3841_v33, 16  ;;  %v4026_v1 = vsel %vm9428_vm10, %v4021_v46, %v4025_v59  ;;  %v10217_v33 = vld [vmem:[#allocation2 + $0x80] sm:$0x1]  ;;  %v4102_v38 = vrot.slane %v4100_v61, 4 }
 0x254   : > { %8289 = vmatprep.mubr.msk.bf16.mxu0 %vm2483_vm7, %v11692_v43  ;;  %8361 = vmatprep.mubr.msk.bf16.mxu1 %vm2483_vm7, %v8991_v27  ;;  %v4057_v43 = vrot.slane %v4055_v20, 5  ;;  %v4081_v27 = vrot.slane %v4079_v29, 5  ;;  %v4092_v20 = vor.u32 %v4091_v11, %v10205_v25  ;;  %v11693_v49 = vsel %vm9428_vm10, %v10122_v53, %v10079_v7  ;;  %v3847_v61 = vld [vmem:[#allocation2 + $0x9c] sm:$0xf] }
 0x255   : > { %v4068_v15 = vor.u32 %v4067_v17, %v10201_v50  ;;  %v4105_v22 = vrot.slane %v4103_v14, 5  ;;  %v10226_v59 = vcombine.low %v11693_v49, %v3978_v9  ;;  %v10228_v10 = vcombine.low %v3992_v0, %v4002_v6  ;;  %v3844_v0 = vld [vmem:[#allocation2 + $0x90] sm:$0xf]  ;;  %v10242_v6 = vld [vmem:[#allocation2 + $0x94] sm:$0xf] }
 0x256   : > { %v4016_v29 = vsel %vm9428_vm10, %v4011_v63, %v10139_v16  ;;  %v4049_v46 = vrot.slane %v4047_v37, 5  ;;  %v11694_v17 = vcombine.low %v9924_v18, %v9910_v47  ;;  %v4058_v11 = vor.u32 %v4057_v43, %v4054_v23  ;;  %v10260_v23 = vld [vmem:[#allocation2 + $0xa0] sm:$0xf] }
 0x257   : > { %v4082_v7 = vor.u32 %v4081_v27, %v4078_v56  ;;  %v4095_v53 = vshll.u32 %v10217_v33, 16  ;;  %v4116_v9 = vor.u32 %v4115_v40, %v10208_v32  ;;  %v11695_v16 = vcombine.low %v9942_v41, %v9915_v51 }
 0x258   : > { %v10250_v47 = vcombine.low %v4016_v29, %v4026_v1  ;;  %v4040_v18 = vsel %vm9428_vm10, %v10212_v48, %v10175_v24  ;;  %v4050_v56 = vsel %vm9428_vm10, %v10214_v28, %v4049_v46  ;;  %v4073_v63 = vrot.slane %v4071_v5, 5  ;;  %v10273_v46 = vld [vmem:[%s11629_s5 + $0x30] sm:$0xff]  }
 0x259   : > { %v4069_v14 = vrot.slane %v4068_v15, 4  ;;  %v4093_v51 = vrot.slane %v4092_v20, 4  ;;  %v4106_v41 = vor.u32 %v4105_v22, %v4102_v38  ;;  %v4119_v37 = vshll.u32 %v10233_v62, 16 }
 0x25a   : > { %v4127_v43 = vshll.u32 %v3844_v0, 16  ;;  %v4133_v27 = vshll.u32 %v10242_v6, 16  ;;  %v4137_v40 = vshrl.u32 %v10242_v6, 16  ;;  %v4059_v24 = vrot.slane %v4058_v11, 4 }
 0x25b   : > { %8290 = vmatmul.mubr.msk.bf16.gmra.mrb[56].mxu0 %vm2483_vm7, %v11694_v17  ;;  %8362 = vmatmul.mubr.msk.bf16.gmra.mrb[28].mxu1 %vm2483_vm7, %v8994_v35  ;;  %v4083_v1 = vrot.slane %v4082_v7, 4  ;;  %v4097_v48 = vrot.slane %v4095_v53, 5  ;;  %v4117_v35 = vrot.slane %v4116_v9, 4  ;;  %v4148_v28 = vshrl.u32 %v3847_v61, 16 }
 0x25c   : > { %8293 = vmatprep.mubr.msk.bf16.mxu0 %vm2483_vm7, %v11695_v16  ;;  %8367 = vmatprep.mubr.msk.bf16.mxu1 %vm2483_vm7, %v10091_v36  ;;  %v4124_v36 = vshrl.u32 %v3844_v0, 16  ;;  %v4151_v5 = vshll.u32 %v3847_v61, 16  ;;  %v4157_v15 = vshll.u32 %v10260_v23, 16  ;;  %v4161_v20 = vshrl.u32 %v10260_v23, 16  ;;  %v10297_v61 = vld [vmem:[#allocation2 + $0x98] sm:$0x1] }
 0x25d   : > { %v4074_v38 = vsel %vm9428_vm10, %v4069_v14, %v4073_v63  ;;  %v4098_v22 = vsel %vm9428_vm10, %v4093_v51, %v4097_v48  ;;  %v4107_v49 = vrot.slane %v4106_v41, 4  ;;  %v4121_v29 = vrot.slane %v4119_v37, 5  ;;  %v10299_v14 = vld [vmem:[#allocation2 + $0xa4] sm:$0x1]  ;;  %v4543_v51 = vld [vmem:[#allocation2 + $0x24] sm:$0xe] }
 0x25e   : > { %v10275_v17 = vrot.slane %v4124_v36, 4  ;;  %v10277_v11 = vrot.slane %v4127_v43, 5  ;;  %v10279_v7 = vrot.slane %v4133_v27, 5  ;;  %v10281_v53 = vrot.slane %v4137_v40, 4  ;;  %v10331_v40 = vld [vmem:[#allocation2 + $0xac] sm:$0xf] }
 0x25f   : > { %v11696_v9 = vcombine.low %v9956_v13, %v9952_v8  ;;  %v4064_v0 = vsel %vm9428_vm10, %v4059_v24, %v10201_v50  ;;  %v4088_v16 = vsel %vm9428_vm10, %v4083_v1, %v10205_v25  ;;  %v4122_v63 = vsel %vm9428_vm10, %v4117_v35, %v4121_v29  ;;  %v10301_v8 = vld [vmem:[#allocation2 + $0xa8] sm:$0xf]  ;;  %v4555_v35 = vld [vmem:[#allocation2 + $0xb4] sm:$0xe] }
 0x260   : > { %v10306_v13 = vrot.slane %v4148_v28, 4  ;;  %v10310_v50 = vrot.slane %v4157_v15, 5  ;;  %v10312_v25 = vrot.slane %v4161_v20, 4  ;;  %v10314_v41 = vcombine.low %v4040_v18, %v4050_v56  ;;  %v4545_v20 = vld [vmem:[#allocation2 + $0x3c] sm:$0xe] }
 0x261   : > { %v10316_v37 = vcombine.low %v4064_v0, %v4074_v38  ;;  %v10318_v36 = vcombine.low %v4088_v16, %v4098_v22  ;;  %v4621_v48 = vrot.slane %v10022_v30, 5  ;;  %v4628_v15 = vrot.slane %v10039_v45, 5  ;;  %v4546_v30 = vld [vmem:[#allocation2 + $0x48] sm:$0xe]  ;;  %v3853_v1 = vld [vmem:[#allocation2 + $0xb4] sm:$0xf] }
 0x262   : > { %v4624_v29 = vrot.slane %v10061_v21, 5  ;;  %v4631_v16 = vrot.slane %v10076_v34, 5  ;;  %v4635_v45 = vrot.slane %v10057_v4, 5  ;;  %v4638_v21 = vrot.slane %v10103_v55, 5 }
 0x263   : > { %8294 = vmatmul.mubr.msk.bf16.gmra.mrb[60].mxu0 %vm2483_vm7, %v11696_v9  ;;  %8368 = vmatmul.mubr.msk.bf16.vlgmr.msra.gmra.mrb[0].mxu1 %vm2483_vm7, %v10113_v12  ;;  %v10308_v12 = vrot.slane %v4151_v5, 5  ;;  %v4630_v0 = vrot.slane %v4628_v15, 4 }
 0x264   : > { %8400 = vmatpush3.bf16.msra.mxu1 %v10002_v39  ;;  %8371 = vmatprep.mubr.msk.bf16.mxu1 %vm2483_vm7, %v10115_v54  ;;  %v4112_v39 = vsel %vm9428_vm10, %v4107_v49, %v10208_v32  ;;  %v4544_v54 = vld [vmem:[#allocation2 + $0x30] sm:$0xe]  ;;  %v7645_v32 = vrot.slane %v4543_v51, 9  ;;  %v4623_v49 = vrot.slane %v4621_v48, 4  ;;  %v7647_v51 = vrot.slane %v4545_v20, 9 }
 0x265   : > { %8433 = vmatprep.subr.bf16.mxu1 %v10273_v46  ;;  %v10324_v43 = vcombine.low %v4112_v39, %v4122_v63  ;;  %v7646_v5 = vrot.slane %v4544_v54, 9  ;;  %v4642_v39 = vrot.slane %v10074_v2, 5  ;;  %v4547_v54 = vld [vmem:[#allocation2 + $0x54] sm:$0xe]  ;;  %v10367_v4 = vsel %vm9410_vm6, %v4630_v0, %v4631_v16 }
 0x266   : > { %v10344_v22 = vsel %vm9410_vm6, %v7645_v32, %v4621_v48  ;;  %v10357_v63 = vsel %vm9410_vm6, %v4623_v49, %v4624_v29  ;;  %v7648_v32 = vrot.slane %v4546_v30, 9  ;;  %v4548_v48 = vld [vmem:[#allocation2 + $0x60] sm:$0xe]  ;;  %v10373_v2 = vsel %vm9410_vm6, %v7647_v51, %v4635_v45  ;;  %v10445_v30 = vld [vmem:[#allocation2 + $0xb0] sm:$0x1] }
 0x267   : > { %v10349_v9 = vsel %vm9410_vm6, %v7646_v5, %v4628_v15  ;;  %v4644_v55 = vrot.slane %v4642_v39, 4  ;;  %v7649_v49 = vrot.slane %v4547_v54, 9  ;;  %v4649_v29 = vrot.slane %v10096_v57, 5  ;;  %v4550_v54 = vld [vmem:[#allocation2 + $0x78] sm:$0xe] }
 0x268   : > { %v10382_v20 = vsel %vm9410_vm6, %v7648_v32, %v4642_v39  ;;  %v7650_v16 = vrot.slane %v4548_v48, 9  ;;  %v4652_v57 = vrot.slane %v10129_v19, 5  ;;  %v4659_v48 = vrot.slane %v10191_v58, 5 }
 0x269   : > { %v4651_v39 = vrot.slane %v4649_v29, 4  ;;  %v4701_v24 = vrot.slane %v10445_v30, 5 }
 0x26b   : > { %8372 = vmatmul.mubr.msk.bf16.gmra.mrb[4].mxu1 %vm2483_vm7, %v10153_v60  ;;  %v4637_v60 = vrot.slane %v4635_v45, 4  ;;  %v4549_v45 = vld [vmem:[#allocation2 + $0x6c] sm:$0xe] }
 0x26c   : > { %8375 = vmatprep.mubr.msk.bf16.mxu1 %vm2483_vm7, %v10226_v59  ;;  %v4645_v59 = vrot.slane %v10118_v42, 5  ;;  %v4656_v42 = vrot.slane %v10124_v44, 5  ;;  %v4663_v44 = vrot.slane %v10156_v26, 5 }
 0x26d   : > { %v10378_v15 = vsel %vm9410_vm6, %v4637_v60, %v4638_v21  ;;  %v10396_v21 = vsel %vm9410_vm6, %v7649_v49, %v4649_v29  ;;  %v4666_v49 = vrot.slane %v10203_v3, 5  ;;  %v11697_v29 = vld [vmem:[#allocation7_spill] sm:$0xff] }
 0x26e   : > { %v10389_v0 = vsel %vm9410_vm6, %v4644_v55, %v4645_v59  ;;  %v10401_v60 = vsel %vm9410_vm6, %v7650_v16, %v4656_v42  ;;  %v4658_v32 = vrot.slane %v4656_v42, 4  ;;  %v10407_v55 = vsel %vm9410_vm6, %v4651_v39, %v4652_v57  ;;  %v4551_v42 = vld [vmem:[#allocation2 + $0x84] sm:$0xe]  ;;  %v4552_v57 = vld [vmem:[#allocation2 + $0x90] sm:$0xe] }
 0x26f   : > { %v7651_v59 = vrot.slane %v4549_v45, 9  ;;  %v4670_v51 = vrot.slane %v11697_v29, 5  ;;  %v4665_v26 = vrot.slane %v4663_v44, 4  ;;  %v7652_v16 = vrot.slane %v4550_v54, 9 }
 0x270   : > { %v10417_v58 = vsel %vm9410_vm6, %v4658_v32, %v4659_v48  ;;  %v11698_v32 = vld [vmem:[#allocation8_spill] sm:$0xff]  ;;  %v7653_v19 = vrot.slane %v4551_v42, 9  ;;  %v4691_v42 = vrot.slane %v10260_v23, 5 }
 0x271   : > { %v4672_v39 = vrot.slane %v4670_v51, 4  ;;  %v10427_v29 = vsel %vm9410_vm6, %v7651_v59, %v4663_v44  ;;  %v10431_v54 = vsel %vm9410_vm6, %v4665_v26, %v4666_v49  ;;  %v4677_v48 = vrot.slane %v11698_v32, 5  ;;  %v4553_v59 = vld [vmem:[#allocation2 + $0x9c] sm:$0xe] }
 0x272   : > { %v4684_v44 = vrot.slane %v10242_v6, 5  ;;  %v4680_v26 = vrot.slane %v10233_v62, 5  ;;  %v4554_v6 = vld [vmem:[#allocation2 + $0xa8] sm:$0xe]  ;;  %v7655_v62 = vrot.slane %v4553_v59, 9 }
 0x273   : > { %8376 = vmatmul.mubr.msk.bf16.gmra.mrb[8].mxu1 %vm2483_vm7, %v10228_v10  ;;  %v4673_v10 = vrot.slane %v10217_v33, 5  ;;  %v10452_v32 = vsel %vm9410_vm6, %v7653_v19, %v4677_v48  ;;  %v10465_v19 = vld [vmem:[#allocation2 + $0xbc] sm:$0x1]  ;;  %v7656_v59 = vrot.slane %v4554_v6, 9  ;;  %v4556_v6 = vld [vmem:[#allocation2 + $0xc0] sm:$0xe] }
 0x274   : > { %8379 = vmatprep.mubr.msk.bf16.mxu1 %vm2483_vm7, %v10250_v47  ;;  %v10435_v47 = vsel %vm9410_vm6, %v7652_v16, %v4670_v51  ;;  %v4679_v51 = vrot.slane %v4677_v48, 4  ;;  %v7654_v16 = vrot.slane %v4552_v57, 9  ;;  %v4686_v45 = vrot.slane %v4684_v44, 4  ;;  %v10467_v48 = vld [vmem:[#allocation2 + $0xc4] sm:$0xf] }
 0x275   : > { %v10442_v33 = vsel %vm9410_vm6, %v4672_v39, %v4673_v10  ;;  %v4687_v39 = vrot.slane %v10297_v61, 5  ;;  %v3854_v10 = vld [vmem:[#allocation2 + $0xb8] sm:$0xf]  ;;  %v4698_v57 = vrot.slane %v10331_v40, 5  ;;  %v4708_v27 = vrot.slane %v10465_v19, 5 }
 0x276   : > { %v10458_v5 = vsel %vm9410_vm6, %v4679_v51, %v4680_v26  ;;  %v10462_v49 = vsel %vm9410_vm6, %v7654_v16, %v4684_v44  ;;  %v4693_v51 = vrot.slane %v4691_v42, 4  ;;  %v4694_v26 = vrot.slane %v10299_v14, 5 }
 0x277   : > { %v10473_v34 = vsel %vm9410_vm6, %v4686_v45, %v4687_v39  ;;  %v4700_v16 = vrot.slane %v4698_v57, 4  ;;  %v4205_v23 = vshll.u32 %v3854_v10, 16  ;;  %v10483_v45 = vld [vmem:[#allocation2 + $0xc8] sm:$0x1]  ;;  %v10487_v39 = vsel %vm9410_vm6, %v7655_v62, %v4691_v42 }
 0x278   : > { %v4705_v44 = vrot.slane %v3854_v10, 5  ;;  %v4712_v42 = vrot.slane %v10467_v48, 5  ;;  %v4209_v3 = vshrl.u32 %v3854_v10, 16  ;;  %v7658_v38 = vrot.slane %v4556_v6, 9 }
 0x279   : > { %v10501_v28 = vsel %vm9410_vm6, %v4700_v16, %v4701_v24  ;;  %v4715_v18 = vrot.slane %v10483_v45, 5 }
 0x27a   : > { %11699 = vst [vmem:[#allocation7_spill] sm:$0xff] %v10501_v28  ;;  %v4714_v56 = vrot.slane %v4712_v42, 4  ;;  %v10521_v10 = vsel %vm9410_vm6, %v7658_v38, %v4712_v42  ;;  %v11702_v28 = vshll.u32 %v10331_v40, 16  ;;  %v4207_v42 = vrot.slane %v4205_v23, 5 }
 0x27b   : > { %8380 = vmatmul.mubr.msk.bf16.gmra.mrb[12].mxu1 %vm2483_vm7, %v10314_v41  ;;  %v10491_v41 = vsel %vm9410_vm6, %v4693_v51, %v4694_v26  ;;  %v7657_v51 = vrot.slane %v4555_v35, 9  ;;  %v4707_v26 = vrot.slane %v4705_v44, 4  ;;  %v4199_v35 = vshll.u32 %v3853_v1, 16 }
 0x27c   : > { %8383 = vmatprep.mubr.msk.bf16.mxu1 %vm2483_vm7, %v10316_v37  ;;  %v10497_v37 = vsel %vm9410_vm6, %v7656_v59, %v4698_v57  ;;  %v4175_v57 = vshll.u32 %v10301_v8, 16  ;;  %v4196_v59 = vshrl.u32 %v3853_v1, 16  ;;  %v10525_v6 = vsel %vm9410_vm6, %v4714_v56, %v4715_v18 }
 0x27d   : > { %v10511_v24 = vsel %vm9410_vm6, %v7657_v51, %v4705_v44  ;;  %v10515_v16 = vsel %vm9410_vm6, %v4707_v26, %v4708_v27  ;;  %11700 = vst [vmem:[#allocation8_spill] sm:$0xff] %v10525_v6  ;;  %v11701_v44 = vor.u32 %v10281_v53, %v10279_v7  ;;  %v4183_v27 = vrot.slane %v11702_v28, 5 }
 0x27e   : > { %v11703_v1 = vshrl.u32 %v10331_v40, 16  ;;  %v11704_v18 = vor.u32 %v10277_v11, %v10275_v17  ;;  %v11705_v53 = vor.u32 %v10312_v25, %v10310_v50  ;;  %v11706_v40 = vshll.u32 %v10297_v61, 16 }
 0x27f   : > { %v4141_v51 = vrot.slane %v11701_v44, 4  ;;  %v4211_v44 = vrot.slane %v4209_v3, 4  ;;  %v11708_v17 = vor.u32 %v10308_v12, %v10306_v13  ;;  %v4201_v23 = vrot.slane %v4199_v35, 5  ;;  %v3856_v3 = vld [vmem:[#allocation2 + $0xc0] sm:$0xf] }
 0x280   : > { %v4187_v26 = vrot.slane %v11703_v1, 4  ;;  %v4131_v56 = vrot.slane %v11704_v18, 4  ;;  %v4165_v38 = vrot.slane %v11705_v53, 4  ;;  %v4145_v28 = vrot.slane %v11706_v40, 5 }
 0x281   : > { %v11707_v1 = vshrl.u32 %v10301_v8, 16  ;;  %v4155_v11 = vrot.slane %v11708_v17, 4  ;;  %v11709_v18 = vshll.u32 %v10299_v14, 16  ;;  %v4198_v53 = vrot.slane %v4196_v59, 4 }
 0x282   : > { %v4188_v6 = vor.u32 %v4187_v26, %v4183_v27  ;;  %v4229_v61 = vshll.u32 %v10467_v48, 16  ;;  %v4233_v8 = vshrl.u32 %v10467_v48, 16  ;;  %v4212_v14 = vor.u32 %v4211_v44, %v4207_v42 }
 0x283   : > { %8384 = vmatmul.mubr.msk.bf16.gmra.mrb[16].mxu1 %vm2483_vm7, %v10318_v36  ;;  %v4174_v62 = vrot.slane %v11707_v1, 4  ;;  %v4177_v36 = vrot.slane %v4175_v57, 5  ;;  %v4169_v25 = vrot.slane %v11709_v18, 5  ;;  %v4136_v57 = vsel %vm9428_vm10, %v4131_v56, %v10279_v7 }
 0x284   : > { %8387 = vmatprep.mubr.msk.bf16.mxu1 %vm2483_vm7, %v10324_v43  ;;  %v4146_v43 = vsel %vm9428_vm10, %v4141_v51, %v4145_v28  ;;  %v4191_v59 = vshll.u32 %v10445_v30, 16  ;;  %v4220_v35 = vshrl.u32 %v3856_v3, 16  ;;  %v4223_v40 = vshll.u32 %v3856_v3, 16 }
 0x285   : > { %v4170_v13 = vsel %vm9428_vm10, %v4165_v38, %v4169_v25  ;;  %v4178_v12 = vor.u32 %v4177_v36, %v4174_v62  ;;  %v7621_v1 = vcombine.low %v4136_v57, %v4146_v43  ;;  %v4160_v51 = vsel %vm9428_vm10, %v4155_v11, %v10310_v50 }
 0x286   : > { %v4202_v26 = vor.u32 %v4201_v23, %v4198_v53  ;;  %v4215_v48 = vshll.u32 %v10465_v19, 16  ;;  %v7622_v28 = vcombine.low %v4160_v51, %v4170_v13  ;;  %v4189_v17 = vrot.slane %v4188_v6, 4  ;;  %v11710_v6 = vld [vmem:[#allocation3_spill] sm:$0xff] }
 0x287   : > { %v4231_v7 = vrot.slane %v4229_v61, 5  ;;  %v4235_v56 = vrot.slane %v4233_v8, 4  ;;  %v4213_v38 = vrot.slane %v4212_v14, 4  ;;  %v4179_v30 = vrot.slane %v4178_v12, 4 }
 0x288   : > { %v4193_v62 = vrot.slane %v4191_v59, 5  ;;  %v4222_v44 = vrot.slane %v4220_v35, 4  ;;  %v4225_v36 = vrot.slane %v4223_v40, 5  ;;  %v4203_v18 = vrot.slane %v4202_v26, 4  ;;  %v4541_v35 = vld [vmem:[#allocation2 + $0xc] sm:$0xe] }
 0x289   : > { %v4217_v25 = vrot.slane %v4215_v48, 5  ;;  %v4236_v11 = vor.u32 %v4235_v56, %v4231_v7  ;;  %v4607_v53 = vrot.slane %v11710_v6, 5  ;;  %v4184_v23 = vsel %vm9428_vm10, %v4179_v30, %v4183_v27  ;;  %v11711_v40 = vld [vmem:[#allocation5_spill] sm:$0xff]  ;;  %v4542_v30 = vld [vmem:[#allocation2 + $0x18] sm:$0xe] }
 0x28a   : > { %v4194_v50 = vsel %vm9428_vm10, %v4189_v17, %v4193_v62  ;;  %v4226_v3 = vor.u32 %v4225_v36, %v4222_v44  ;;  %v4239_v43 = vshll.u32 %v10483_v45, 16  ;;  %v4208_v8 = vsel %vm9428_vm10, %v4203_v18, %v4207_v42  ;;  %v11712_v45 = vld [vmem:[#allocation4_spill] sm:$0xff]  ;;  %v11713_v62 = vld [vmem:[#allocation6_spill] sm:$0xff] }
 0x28b   : > { %8388 = vmatmul.mubr.msk.bf16.gmra.mrb[20].mxu1 %vm2483_vm7, %v7621_v1  ;;  %v4218_v19 = vsel %vm9428_vm10, %v4213_v38, %v4217_v25  ;;  %v7623_v61 = vcombine.low %v4184_v23, %v4194_v50  ;;  %v4237_v13 = vrot.slane %v4236_v11, 4  ;;  %v4609_v14 = vrot.slane %v4607_v53, 4  ;;  %v10603_v50 = vld [vmem:[%s11629_s5 + $0x38] sm:$0xff]  }
 0x28c   : > { %8391 = vmatprep.mubr.msk.bf16.mxu1 %vm2483_vm7, %v7622_v28  ;;  %v7624_v57 = vcombine.low %v4208_v8, %v4218_v19  ;;  %v4227_v12 = vrot.slane %v4226_v3, 4  ;;  %v4241_v59 = vrot.slane %v4239_v43, 5  ;;  %v4610_v1 = vrot.slane %v11711_v40, 5  ;;  %v6110_v3 = vld [vmem:[#allocation2 + $0x30] sm:$0xe] }
 0x28d   : > { %v4614_v51 = vrot.slane %v11712_v45, 5  ;;  %v7643_v26 = vrot.slane %v4541_v35, 9  ;;  %v4617_v44 = vrot.slane %v11713_v62, 5  ;;  %v7644_v36 = vrot.slane %v4542_v30, 9  ;;  %v10651_v43 = vld [vmem:[#allocation2 + $0x40] sm:$0xf] }
 0x28e   : > { %v4242_v27 = vsel %vm9428_vm10, %v4237_v13, %v4241_v59  ;;  %v4611_v42 = vsel %vm9410_vm6, %v4609_v14, %v4610_v1  ;;  %v4232_v48 = vsel %vm9428_vm10, %v4227_v12, %v4231_v7  ;;  %v11714_v11 = vcombine.low %v10344_v22, %v10357_v63  ;;  %v10632_v63 = vld [vmem:[#allocation2 + $0x1c] sm:$0xf]  ;;  %v10669_v1 = vld [vmem:[#allocation2 + $0x44] sm:$0x1]  ;;  %v6113_v62 = vld [vmem:[#allocation2 + $0x54] sm:$0xe] }
 0x28f   : > { %v7625_v28 = vcombine.low %v4232_v48, %v4242_v27  ;;  %v4608_v17 = vsel %vm9410_vm6, %v7643_v26, %v4607_v53  ;;  %v4616_v38 = vrot.slane %v4614_v51, 4  ;;  %v4615_v7 = vsel %vm9410_vm6, %v7644_v36, %v4614_v51  ;;  %v6111_v35 = vld [vmem:[#allocation2 + $0x3c] sm:$0xe]  ;;  %v6112_v51 = vld [vmem:[#allocation2 + $0x48] sm:$0xe] }
 0x290   : > { %v7661_v56 = vcombine.low %v4608_v17, %v4611_v42  ;;  %v11715_v19 = vcombine.low %v10349_v9, %v10367_v4  ;;  %v11716_v6 = vcombine.low %v10373_v2, %v10378_v15  ;;  %v11718_v22 = vcombine.low %v10396_v21, %v10407_v55  ;;  %v6108_v2 = vld [vmem:[#allocation2 + $0x18] sm:$0xe]  ;;  %v10638_v15 = vld [vmem:[#allocation2 + $0x20] sm:$0x1]  ;;  %v6109_v55 = vld [vmem:[#allocation2 + $0x24] sm:$0xe] }
 0x291   : > { %v4618_v18 = vsel %vm9410_vm6, %v4616_v38, %v4617_v44  ;;  %v11719_v9 = vcombine.low %v10401_v60, %v10417_v58  ;;  %v11720_v4 = vcombine.low %v10427_v29, %v10431_v54  ;;  %v6174_v21 = vrot.slane %v10632_v63, 5  ;;  %v10645_v60 = vld [vmem:[#allocation2 + $0x34] sm:$0xf]  ;;  %v10647_v58 = vld [vmem:[#allocation2 + $0x38] sm:$0x1] }
 0x292   : > { %v7662_v25 = vcombine.low %v4615_v7, %v4618_v18  ;;  %v7764_v53 = vrot.slane %v6108_v2, 9  ;;  %v6177_v29 = vrot.slane %v10638_v15, 5  ;;  %v6188_v59 = vrot.slane %v10645_v60, 5  ;;  %v10677_v42 = vld [vmem:[#allocation2 + $0x50] sm:$0x1] }
 0x293   : > { %8392 = vmatmul.mubr.msk.bf16.gmra.mrb[24].mxu1 %vm2483_vm7, %v7623_v61  ;;  %v6176_v23 = vrot.slane %v6174_v21, 4  ;;  %v10653_v61 = vld [vmem:[#allocation2 + $0x4c] sm:$0xf]  ;;  %v11721_v40 = vcombine.low %v10435_v47, %v10442_v33  ;;  %v7766_v45 = vrot.slane %v6110_v3, 9  ;;  %v11722_v26 = vcombine.low %v10452_v32, %v10458_v5  ;;  %v10679_v48 = vld [vmem:[#allocation2 + $0x58] sm:$0xf] }
 0x294   : > { %8395 = vmatprep.mubr.msk.bf16.mxu1 %vm2483_vm7, %v7624_v57  ;;  %v10657_v8 = vsel %vm9410_vm6, %v7764_v53, %v6174_v21  ;;  %v7765_v57 = vrot.slane %v6109_v55, 9  ;;  %v6191_v17 = vrot.slane %v10647_v58, 5  ;;  %v7767_v38 = vrot.slane %v6111_v35, 9  ;;  %v10699_v44 = vld [vmem:[#allocation2 + $0x5c] sm:$0x1] }
 0x295   : > { %v10661_v13 = vsel %vm9410_vm6, %v6176_v23, %v6177_v29  ;;  %v10696_v32 = vsel %vm9410_vm6, %v7766_v45, %v6188_v59  ;;  %v6195_v30 = vrot.slane %v10651_v43, 5  ;;  %v6198_v18 = vrot.slane %v10669_v1, 5 }
 0x296   : > { %11725 = vst [vmem:[#allocation4_spill] sm:$0xff] %v10696_v32  ;;  %v7768_v7 = vrot.slane %v6112_v51, 9  ;;  %v7769_v53 = vrot.slane %v6113_v62, 9  ;;  %v11732_v51 = vcombine.low %v10462_v49, %v10473_v34  ;;  %v6116_v62 = vld [vmem:[#allocation2 + $0x78] sm:$0xe] }
 0x297   : > { %v10717_v2 = vsel %vm9410_vm6, %v7767_v38, %v6195_v30  ;;  %v10760_v34 = vld [vmem:[#allocation2 + $0x80] sm:$0x1] }
 0x298   : > { %11727 = vst [vmem:[#allocation9_spill] sm:$0xff] %v10717_v2 }
 0x29b   : > { %8396 = vmatmul.mubr.msk.bf16.gmra.mrb[28].mxu1 %vm2483_vm7, %v7625_v28  ;;  %v6190_v28 = vrot.slane %v6188_v59, 4 }
 0x29c   : > { %8401 = vmatprep.mubr.msk.bf16.mxu1 %vm2483_vm7, %v7661_v56  ;;  %v10690_v56 = vld [vmem:[#allocation2 + $0x64] sm:$0xf] }
 0x29d   : > { %v10703_v36 = vsel %vm9410_vm6, %v6190_v28, %v6191_v17  ;;  %v6216_v3 = vrot.slane %v10690_v56, 5 }
 0x29e   : > { %11726 = vst [vmem:[#allocation6_spill] sm:$0xff] %v10703_v36  ;;  %v9014_v36 = vld [vmem:[#allocation2 + $0xcc] sm:$0xff]  }
 0x29f   : > { %v6218_v38 = vrot.slane %v6216_v3, 4  ;;  %v11781_v52 = vld [vmem:[#allocation9_spill] sm:$0xff] }
 0x2a3   : > { %8402 = vmatmul.mubr.msk.bf16.vlgmr.msra.gmra.mrb[0].mxu1 %vm2483_vm7, %v7662_v25  ;;  %v6202_v25 = vrot.slane %v10653_v61, 5 }
 0x2a4   : > { %8434 = vmatpush3.bf16.msra.mxu1 %v10273_v46  ;;  %8405 = vmatprep.mubr.msk.bf16.mxu1 %vm2483_vm7, %v11714_v11  ;;  %v11717_v46 = vcombine.low %v10382_v20, %v10389_v0  ;;  %v10640_v20 = vld [vmem:[#allocation2 + $0x28] sm:$0xf]  ;;  %v10642_v0 = vld [vmem:[#allocation2 + $0x2c] sm:$0x1] }
 0x2a5   : > { %8467 = vmatprep.subr.bf16.mxu1 %v10603_v50  ;;  %v6181_v54 = vrot.slane %v10640_v20, 5  ;;  %v6184_v12 = vrot.slane %v10642_v0, 5  ;;  %v10721_v21 = vsel %vm9410_vm6, %v7768_v7, %v6202_v25  ;;  %v6204_v55 = vrot.slane %v6202_v25, 4 }
 0x2a6   : > { %11728 = vst [vmem:[#allocation10_spill] sm:$0xff] %v10721_v21 }
 0x2a7   : > { %v6183_v14 = vrot.slane %v6181_v54, 4  ;;  %v10683_v47 = vsel %vm9410_vm6, %v7765_v57, %v6181_v54  ;;  %v6212_v54 = vrot.slane %v10699_v44, 5  ;;  %v6115_v57 = vld [vmem:[#allocation2 + $0x6c] sm:$0xe] }
 0x2a8   : > { %11723 = vst [vmem:[#allocation3_spill] sm:$0xff] %v10683_v47  ;;  %v7771_v7 = vrot.slane %v6115_v57, 9  ;;  %v7772_v57 = vrot.slane %v6116_v62, 9  ;;  %v6118_v62 = vld [vmem:[#allocation2 + $0x90] sm:$0xe] }
 0x2a9   : > { %v10687_v33 = vsel %vm9410_vm6, %v6183_v14, %v6184_v12  ;;  %v10729_v14 = vld [vmem:[#allocation2 + $0x74] sm:$0x1]  ;;  %v10731_v12 = vld [vmem:[#allocation2 + $0x7c] sm:$0xf] }
 0x2aa   : > { %11724 = vst [vmem:[#allocation5_spill] sm:$0xff] %v10687_v33 }
 0x2ab   : > { %8406 = vmatmul.mubr.msk.bf16.gmra.mrb[4].mxu1 %vm2483_vm7, %v11715_v19  ;;  %v6197_v19 = vrot.slane %v6195_v30, 4 }
 0x2ac   : > { %8409 = vmatprep.mubr.msk.bf16.mxu1 %vm2483_vm7, %v11716_v6  ;;  %v6205_v6 = vrot.slane %v10677_v42, 5 }
 0x2ad   : > { %v10725_v23 = vsel %vm9410_vm6, %v6197_v19, %v6198_v18  ;;  %v11734_v18 = vcombine.low %v10487_v39, %v10491_v41  ;;  %v6117_v19 = vld [vmem:[#allocation2 + $0x84] sm:$0xe]  ;;  %v6226_v41 = vrot.slane %v10729_v14, 5 }
 0x2ae   : > { %11729 = vst [vmem:[#allocation11_spill] sm:$0xff] %v10725_v23  ;;  %v10737_v35 = vsel %vm9410_vm6, %v6204_v55, %v6205_v6  ;;  %v10765_v6 = vld [vmem:[#allocation2 + $0x8c] sm:$0x1]  ;;  %v6230_v55 = vrot.slane %v10731_v12, 5 }
 0x2af   : > { %11730 = vst [vmem:[#allocation12_spill] sm:$0xff] %v10737_v35 }
 0x2b3   : > { %8410 = vmatmul.mubr.msk.bf16.gmra.mrb[8].mxu1 %vm2483_vm7, %v11717_v46  ;;  %v6209_v46 = vrot.slane %v10679_v48, 5 }
 0x2b4   : > { %8413 = vmatprep.mubr.msk.bf16.mxu1 %vm2483_vm7, %v11718_v22  ;;  %v6114_v22 = vld [vmem:[#allocation2 + $0x60] sm:$0xe] }
 0x2b5   : > { %v6211_v29 = vrot.slane %v6209_v46, 4  ;;  %v7770_v45 = vrot.slane %v6114_v22, 9 }
 0x2b7   : > { %v10753_v17 = vsel %vm9410_vm6, %v6211_v29, %v6212_v54  ;;  %v10771_v22 = vsel %vm9410_vm6, %v7770_v45, %v6216_v3  ;;  %v6232_v45 = vrot.slane %v6230_v55, 4  ;;  %v6240_v29 = vrot.slane %v10765_v6, 5 }
 0x2b8   : > { %11733 = vst [vmem:[#allocation14_spill] sm:$0xff] %v10753_v17  ;;  %11735 = vst [vmem:[#allocation15_spill] sm:$0xff] %v10771_v22  ;;  %v5384_v22 = vld [vmem:[#allocation2 + $0x30] sm:$0xf] }
 0x2bb   : > { %8414 = vmatmul.mubr.msk.bf16.gmra.mrb[12].mxu1 %vm2483_vm7, %v11719_v9  ;;  %v10711_v9 = vld [vmem:[#allocation2 + $0x68] sm:$0x1] }
 0x2bc   : > { %8417 = vmatprep.mubr.msk.bf16.mxu1 %vm2483_vm7, %v11720_v4  ;;  %v10713_v4 = vld [vmem:[#allocation2 + $0x70] sm:$0xf]  ;;  %v6219_v30 = vrot.slane %v10711_v9, 5 }
 0x2bd   : > { %v6223_v25 = vrot.slane %v10713_v4, 5 }
 0x2be   : > { %v10775_v39 = vsel %vm9410_vm6, %v6218_v38, %v6219_v30  ;;  %v6233_v38 = vrot.slane %v10760_v34, 5  ;;  %v7773_v30 = vrot.slane %v6117_v19, 9 }
 0x2bf   : > { %11736 = vst [vmem:[#allocation16_spill] sm:$0xff] %v10775_v39  ;;  %v6225_v54 = vrot.slane %v6223_v25, 4  ;;  %v10788_v3 = vsel %vm9410_vm6, %v7771_v7, %v6223_v25  ;;  %v10801_v7 = vsel %vm9410_vm6, %v7772_v57, %v6230_v55  ;;  %v11743_v55 = vld [vmem:[#allocation7_spill] sm:$0xff] }
 0x2c0   : > { %11737 = vst [vmem:[#allocation17_spill] sm:$0xff] %v10788_v3  ;;  %11739 = vst [vmem:[#allocation19_spill] sm:$0xff] %v10801_v7  ;;  %v10805_v25 = vsel %vm9410_vm6, %v6232_v45, %v6233_v38  ;;  %v11744_v57 = vcombine.low %v10497_v37, %v11743_v55  ;;  %v10822_v45 = vld [vmem:[#allocation2 + $0xa4] sm:$0x1]  ;;  %v7774_v38 = vrot.slane %v6118_v62, 9  ;;  %v8998_v62 = vld [vmem:[#allocation2 + $0x18] sm:$0xff]  }
 0x2c1   : > { %v10793_v49 = vsel %vm9410_vm6, %v6225_v54, %v6226_v41  ;;  %11740 = vst [vmem:[#allocation20_spill] sm:$0xff] %v10805_v25  ;;  %v10835_v37 = vld [vmem:[#allocation2 + $0xac] sm:$0xf]  ;;  %v6254_v27 = vrot.slane %v10822_v45, 5  ;;  %v11750_v7 = vld [vmem:[#allocation8_spill] sm:$0xff] }
 0x2c2   : > { %11738 = vst [vmem:[#allocation18_spill] sm:$0xff] %v10793_v49 }
 0x2c3   : > { %8418 = vmatmul.mubr.msk.bf16.gmra.mrb[16].mxu1 %vm2483_vm7, %v11721_v40  ;;  %v10741_v40 = vsel %vm9410_vm6, %v7769_v53, %v6209_v46  ;;  %v10767_v46 = vld [vmem:[#allocation2 + $0x94] sm:$0xf]  ;;  %v10779_v53 = vld [vmem:[#allocation2 + $0x98] sm:$0x1] }
 0x2c4   : > { %8421 = vmatprep.mubr.msk.bf16.mxu1 %vm2483_vm7, %v11722_v26  ;;  %11731 = vst [vmem:[#allocation13_spill] sm:$0xff] %v10741_v40  ;;  %v10747_v26 = vld [vmem:[#allocation2 + $0x88] sm:$0xf]  ;;  %v6244_v59 = vrot.slane %v10767_v46, 5  ;;  %v6247_v5 = vrot.slane %v10779_v53, 5 }
 0x2c6   : > { %v6246_v11 = vrot.slane %v6244_v59, 4  ;;  %v10839_v55 = vsel %vm9410_vm6, %v7774_v38, %v6244_v59  ;;  %v6258_v38 = vrot.slane %v10835_v37, 5 }
 0x2c7   : > { %11747 = vst [vmem:[#allocation23_spill] sm:$0xff] %v10839_v55 }
 0x2cb   : > { %8422 = vmatmul.mubr.msk.bf16.gmra.mrb[20].mxu1 %vm2483_vm7, %v11732_v51  ;;  %v6237_v51 = vrot.slane %v10747_v26, 5 }
 0x2cc   : > { %8425 = vmatprep.mubr.msk.bf16.mxu1 %vm2483_vm7, %v11734_v18  ;;  %v10784_v18 = vld [vmem:[#allocation2 + $0xa0] sm:$0xf] }
 0x2cd   : > { %v6239_v28 = vrot.slane %v6237_v51, 4  ;;  %v10809_v19 = vsel %vm9410_vm6, %v7773_v30, %v6237_v51  ;;  %v6119_v30 = vld [vmem:[#allocation2 + $0x9c] sm:$0xe]  ;;  %v6251_v41 = vrot.slane %v10784_v18, 5 }
 0x2ce   : > { %11741 = vst [vmem:[#allocation21_spill] sm:$0xff] %v10809_v19  ;;  %v6260_v19 = vrot.slane %v6258_v38, 4 }
 0x2cf   : > { %v10815_v54 = vsel %vm9410_vm6, %v6239_v28, %v6240_v29  ;;  %v11745_v28 = vcombine.low %v10511_v24, %v10515_v16  ;;  %v10833_v29 = vsel %vm9410_vm6, %v6246_v11, %v6247_v5  ;;  %v6253_v51 = vrot.slane %v6251_v41, 4  ;;  %v10844_v24 = vld [vmem:[#allocation2 + $0xb0] sm:$0x1]  ;;  %v10846_v16 = vld [vmem:[#allocation2 + $0xb8] sm:$0xf] }
 0x2d0   : > { %11742 = vst [vmem:[#allocation22_spill] sm:$0xff] %v10815_v54  ;;  %11746 = vst [vmem:[#allocation7_spill] sm:$0xff] %v10833_v29  ;;  %v10848_v5 = vld [vmem:[#allocation2 + $0xc4] sm:$0xf]  ;;  %v10859_v29 = vld [vmem:[#allocation2 + $0xbc] sm:$0x1] }
 0x2d1   : > { %v10856_v59 = vsel %vm9410_vm6, %v6253_v51, %v6254_v27  ;;  %v6261_v25 = vrot.slane %v10844_v24, 5  ;;  %v11751_v27 = vcombine.low %v10521_v10, %v11750_v7  ;;  %v10869_v51 = vld [vmem:[#allocation2 + $0xc8] sm:$0x1]  ;;  %v6272_v3 = vrot.slane %v10848_v5, 5 }
 0x2d2   : > { %11749 = vst [vmem:[#allocation25_spill] sm:$0xff] %v10856_v59  ;;  %v6268_v10 = vrot.slane %v10859_v29, 5 }
 0x2d3   : > { %8426 = vmatmul.mubr.msk.bf16.gmra.mrb[24].mxu1 %vm2483_vm7, %v11744_v57  ;;  %v7775_v57 = vrot.slane %v6119_v30, 9  ;;  %v6121_v30 = vld [vmem:[#allocation2 + $0xb4] sm:$0xe]  ;;  %v10879_v55 = vsel %vm9410_vm6, %v6260_v19, %v6261_v25 }
 0x2d4   : > { %8429 = vmatprep.mubr.msk.bf16.mxu1 %vm2483_vm7, %v11745_v28  ;;  %v6120_v28 = vld [vmem:[#allocation2 + $0xa8] sm:$0xe]  ;;  %v7777_v49 = vrot.slane %v6121_v30, 9  ;;  %11753 = vst [vmem:[#allocation26_spill] sm:$0xff] %v10879_v55 }
 0x2d5   : > { %v10852_v11 = vsel %vm9410_vm6, %v7775_v57, %v6251_v41  ;;  %v7776_v54 = vrot.slane %v6120_v28, 9  ;;  %v6265_v41 = vrot.slane %v10846_v16, 5  ;;  %v6122_v57 = vld [vmem:[#allocation2 + $0xc0] sm:$0xe] }
 0x2d6   : > { %11748 = vst [vmem:[#allocation24_spill] sm:$0xff] %v10852_v11 }
 0x2d7   : > { %v10875_v28 = vsel %vm9410_vm6, %v7776_v54, %v6258_v38  ;;  %v6267_v59 = vrot.slane %v6265_v41, 4  ;;  %v10886_v30 = vsel %vm9410_vm6, %v7777_v49, %v6265_v41  ;;  %v6274_v54 = vrot.slane %v6272_v3, 4  ;;  %v9000_v49 = vld [vmem:[#allocation2 + $0x24] sm:$0xff]   ;;  %v9006_v41 = vld [vmem:[#allocation2 + $0x6c] sm:$0xff]  }
 0x2d8   : > { %11752 = vst [vmem:[#allocation8_spill] sm:$0xff] %v10875_v28  ;;  %11754 = vst [vmem:[#allocation27_spill] sm:$0xff] %v10886_v30  ;;  %v6275_v38 = vrot.slane %v10869_v51, 5  ;;  %v5460_v28 = vshll.u32 %v10640_v20, 16 }
 0x2db   : > { %8430 = vmatmul.mubr.msk.bf16.gmra.mrb[28].mxu1 %vm2483_vm7, %v11751_v27  ;;  %v7778_v27 = vrot.slane %v6122_v57, 9  ;;  %v10901_v57 = vsel %vm9410_vm6, %v6274_v54, %v6275_v38  ;;  %v9004_v54 = vld [vmem:[#allocation2 + $0x54] sm:$0xff]   ;;  %v9005_v38 = vld [vmem:[#allocation2 + $0x60] sm:$0xff]  }
 0x2dc   : > { %8435 = vmatprep.mubr.msk.bf16.mxu1 %vm2483_vm7, %v8998_v62  ;;  %v10890_v62 = vsel %vm9410_vm6, %v6267_v59, %v6268_v10  ;;  %11757 = vst [vmem:[#allocation30_spill] sm:$0xff] %v10901_v57  ;;  %v10906_v59 = vld [vmem:[%s11629_s5 + $0x40] sm:$0xff]   ;;  %v9001_v10 = vld [vmem:[#allocation2 + $0x30] sm:$0xff]   ;;  %v5436_v57 = vshll.u32 %v10632_v63, 16 }
 0x2dd   : > { %11755 = vst [vmem:[#allocation28_spill] sm:$0xff] %v10890_v62  ;;  %v10897_v19 = vsel %vm9410_vm6, %v7778_v27, %v6272_v3  ;;  %v9002_v3 = vld [vmem:[#allocation2 + $0x3c] sm:$0xff]   ;;  %v9003_v27 = vld [vmem:[#allocation2 + $0x48] sm:$0xff]   ;;  %v9009_v62 = vld [vmem:[#allocation2 + $0x90] sm:$0xff]  }
 0x2de   : > { %11756 = vst [vmem:[#allocation29_spill] sm:$0xff] %v10897_v19  ;;  %v9008_v19 = vld [vmem:[#allocation2 + $0x84] sm:$0xff]  }
 0x2e3   : > { %8436 = vmatmul.mubr.msk.bf16.vlgmr.msra.gmra.mrb[0].mxu1 %vm2483_vm7, %v9000_v49  ;;  %v9007_v49 = vld [vmem:[#allocation2 + $0x78] sm:$0xff]  }
 0x2e4   : > { %8468 = vmatpush3.bf16.msra.mxu1 %v10603_v50  ;;  %8439 = vmatprep.mubr.msk.bf16.mxu1 %vm2483_vm7, %v9001_v10  ;;  %v5378_v50 = vld [vmem:[#allocation2 + $0x18] sm:$0xf] }
 0x2e5   : > { %8501 = vmatprep.subr.bf16.mxu1 %v10906_v59  ;;  %v5430_v7 = vshll.u32 %v5378_v50, 16 }
 0x2eb   : > { %8440 = vmatmul.mubr.msk.bf16.gmra.mrb[4].mxu1 %vm2483_vm7, %v9002_v3 }
 0x2ec   : > { %8443 = vmatprep.mubr.msk.bf16.mxu1 %vm2483_vm7, %v9003_v27  ;;  %v5427_v27 = vshrl.u32 %v5378_v50, 16 }
 0x2f3   : > { %8444 = vmatmul.mubr.msk.bf16.gmra.mrb[8].mxu1 %vm2483_vm7, %v9004_v54  ;;  %v5440_v54 = vshrl.u32 %v10632_v63, 16  ;;  %v5464_v63 = vshrl.u32 %v10640_v20, 16  ;;  %v5470_v20 = vshll.u32 %v10642_v0, 16 }
 0x2f4   : > { %8447 = vmatprep.mubr.msk.bf16.mxu1 %vm2483_vm7, %v9005_v38 }
 0x2f5   : > { %v5442_v30 = vrot.slane %v5440_v54, 4  ;;  %v5466_v17 = vrot.slane %v5464_v63, 4  ;;  %v5387_v63 = vld [vmem:[#allocation2 + $0x3c] sm:$0xf]  ;;  %v10955_v0 = vrot.slane %v5470_v20, 5  ;;  %v5494_v20 = vshll.u32 %v10647_v58, 16 }
 0x2f6   : > { %v10974_v58 = vld [vmem:[#allocation2 + $0xd4] sm:$0x1] }
 0x2fb   : > { %8448 = vmatmul.mubr.msk.bf16.gmra.mrb[12].mxu1 %vm2483_vm7, %v9006_v41  ;;  %v5381_v41 = vld [vmem:[#allocation2 + $0x24] sm:$0xf] }
 0x2fc   : > { %8451 = vmatprep.mubr.msk.bf16.mxu1 %vm2483_vm7, %v9007_v49  ;;  %v5429_v49 = vrot.slane %v5427_v27, 4  ;;  %v5451_v50 = vshrl.u32 %v5381_v41, 16  ;;  %v5454_v55 = vshll.u32 %v5381_v41, 16  ;;  %v9011_v27 = vld [vmem:[#allocation2 + $0xa8] sm:$0xff]   ;;  %v10943_v41 = vrot.slane %v5460_v28, 5 }
 0x2fe   : > { %v10920_v10 = vpop.f32.mrb[32].mxu0  ;;  %v5453_v54 = vrot.slane %v5451_v50, 4  ;;  %v5467_v50 = vor.u32 %v5466_v17, %v10943_v41 }
 0x2ff   : > { %11758 = vst [vmem:[#allocation31_spill] sm:$0xff] %v10920_v10  ;;  %v10922_v25 = vpop.f32.mrb[33].mxu0  ;;  %v5432_v10 = vrot.slane %v5430_v7, 5  ;;  %v9010_v7 = vld [vmem:[#allocation2 + $0x9c] sm:$0xff]  }
 0x300   : > { %11759 = vst [vmem:[#allocation32_spill] sm:$0xff] %v10922_v25  ;;  %v10924_v3 = vpop.f32.mrb[34].mxu0  ;;  %v5438_v25 = vrot.slane %v5436_v57, 5  ;;  %v5446_v57 = vshll.u32 %v10638_v15, 16  ;;  %v5488_v15 = vshrl.u32 %v10645_v60, 16  ;;  %v5468_v35 = vrot.slane %v5467_v50, 4 }
 0x301   : > { %11760 = vst [vmem:[#allocation33_spill] sm:$0xff] %v10924_v3  ;;  %v10928_v38 = vpop.f32.mrb[35].mxu0  ;;  %v6123_v50 = vld [vmem:[#allocation2 + $0xcc] sm:$0xe] }
 0x302   : > { %11761 = vst [vmem:[#allocation34_spill] sm:$0xff] %v10928_v38  ;;  %v5443_v39 = vor.u32 %v5442_v30, %v5438_v25 }
 0x303   : > { %8452 = vmatmul.mubr.msk.bf16.gmra.mrb[16].mxu1 %vm2483_vm7, %v9008_v19  ;;  %v5433_v19 = vor.u32 %v5432_v10, %v5429_v49  ;;  %v5484_v49 = vshll.u32 %v10645_v60, 16 }
 0x304   : > { %8455 = vmatprep.mubr.msk.bf16.mxu1 %vm2483_vm7, %v9009_v62  ;;  %v5444_v10 = vrot.slane %v5443_v39, 4 }
 0x305   : > { %v5434_v30 = vrot.slane %v5433_v19, 4 }
 0x306   : > { %v10932_v3 = vpop.f32.mrb[36].mxu0 }
 0x307   : > { %11762 = vst [vmem:[#allocation35_spill] sm:$0xff] %v10932_v3  ;;  %v10936_v38 = vpop.f32.mrb[37].mxu0  ;;  %v5456_v3 = vrot.slane %v5454_v55, 5  ;;  %v5448_v55 = vrot.slane %v5446_v57, 5  ;;  %v5439_v39 = vsel %vm9428_vm10, %v5434_v30, %v5438_v25  ;;  %v10963_v57 = vrot.slane %v5484_v49, 5 }
 0x308   : > { %11763 = vst [vmem:[#allocation36_spill] sm:$0xff] %v10936_v38  ;;  %v10938_v11 = vpop.f32.mrb[38].mxu0  ;;  %v5475_v38 = vshrl.u32 %v5384_v22, 16  ;;  %v5512_v25 = vshrl.u32 %v10651_v43, 16 }
 0x309   : > { %11764 = vst [vmem:[#allocation37_spill] sm:$0xff] %v10938_v11  ;;  %v10940_v62 = vpop.f32.mrb[39].mxu0  ;;  %v5478_v11 = vshll.u32 %v5384_v22, 16  ;;  %v5457_v28 = vor.u32 %v5456_v3, %v5453_v54  ;;  %v5449_v60 = vsel %vm9428_vm10, %v5444_v10, %v5448_v55  ;;  %v5490_v3 = vrot.slane %v5488_v15, 4  ;;  %v9012_v54 = vld [vmem:[#allocation2 + $0xb4] sm:$0xff]  }
 0x30a   : > { %11765 = vst [vmem:[#allocation38_spill] sm:$0xff] %v10940_v62  ;;  %v5477_v22 = vrot.slane %v5475_v38, 4  ;;  %v5502_v38 = vshll.u32 %v5387_v63, 16  ;;  %v7731_v10 = vcombine.low %v5439_v39, %v5449_v60  ;;  %v5532_v55 = vshll.u32 %v10653_v61, 16 }
 0x30b   : > { %8456 = vmatmul.mubr.msk.bf16.gmra.mrb[20].mxu1 %vm2483_vm7, %v9010_v7  ;;  %v5480_v40 = vrot.slane %v5478_v11, 5  ;;  %v5508_v11 = vshll.u32 %v10651_v43, 16  ;;  %v7779_v60 = vrot.slane %v6123_v50, 9  ;;  %v5514_v23 = vrot.slane %v5512_v25, 4 }
 0x30c   : > { %8459 = vmatprep.mubr.msk.bf16.mxu1 %vm2483_vm7, %v9011_v27  ;;  %v5390_v27 = vld [vmem:[#allocation2 + $0x48] sm:$0xf]  ;;  %v10989_v47 = vrot.slane %v5532_v55, 5  ;;  %v5496_v55 = vrot.slane %v5494_v20, 5 }
 0x30d   : > { %v5523_v30 = vshrl.u32 %v5390_v27, 16  ;;  %v5481_v49 = vor.u32 %v5480_v40, %v5477_v22  ;;  %v5526_v15 = vshll.u32 %v5390_v27, 16  ;;  %v5504_v40 = vrot.slane %v5502_v38, 5  ;;  %v5393_v27 = vld [vmem:[#allocation2 + $0x54] sm:$0xf] }
 0x30e   : > { %v10950_v62 = vpop.f32.mrb[40].mxu0  ;;  %v10981_v22 = vrot.slane %v5508_v11, 5  ;;  %v5547_v25 = vshrl.u32 %v5393_v27, 16  ;;  %v5550_v50 = vshll.u32 %v5393_v27, 16 }
 0x30f   : > { %11766 = vst [vmem:[#allocation39_spill] sm:$0xff] %v10950_v62  ;;  %v10953_v7 = vpop.f32.mrb[41].mxu0  ;;  %v9013_v62 = vld [vmem:[#allocation2 + $0xc0] sm:$0xff]   ;;  %v5525_v32 = vrot.slane %v5523_v30, 4  ;;  %v5528_v33 = vrot.slane %v5526_v15, 5  ;;  %v5473_v15 = vsel %vm9428_vm10, %v5468_v35, %v10955_v0  ;;  %v5482_v27 = vrot.slane %v5481_v49, 4 }
 0x310   : > { %11767 = vst [vmem:[#allocation40_spill] sm:$0xff] %v10953_v7  ;;  %v10957_v19 = vpop.f32.mrb[42].mxu0  ;;  %v5499_v7 = vshrl.u32 %v5387_v63, 16  ;;  %v5491_v63 = vor.u32 %v5490_v3, %v10963_v57  ;;  %v5560_v3 = vshrl.u32 %v10679_v48, 16  ;;  %v9016_v35 = vld [vmem:[%s11631_s7] sm:$0xff]   ;;  %v5549_v20 = vrot.slane %v5547_v25, 4 }
 0x311   : > { %11768 = vst [vmem:[#allocation41_spill] sm:$0xff] %v10957_v19  ;;  %v10965_v17 = vpop.f32.mrb[43].mxu0  ;;  %v5458_v19 = vrot.slane %v5457_v28, 4  ;;  %v5536_v28 = vshrl.u32 %v10653_v61, 16  ;;  %v5552_v49 = vrot.slane %v5550_v50, 5  ;;  %8535 = vmatprep.subr.bf16.mxu0 %v9016_v35 }
 0x312   : > { %11769 = vst [vmem:[#allocation42_spill] sm:$0xff] %v10965_v17  ;;  %v10972_v17 = vld [vmem:[#allocation2 + $0xd0] sm:$0xf]  ;;  %v5501_v39 = vrot.slane %v5499_v7, 4  ;;  %8536 = vmatpush3.bf16.msra.mxu0 %v9016_v35 }
 0x313   : > { %8460 = vmatmul.mubr.msk.bf16.gmra.mrb[24].mxu1 %vm2483_vm7, %v9012_v54  ;;  %v6279_v43 = vrot.slane %v10972_v17, 5  ;;  %v6282_v54 = vrot.slane %v10974_v58, 5  ;;  %v5538_v11 = vrot.slane %v5536_v28, 4  ;;  %v5463_v30 = vsel %vm9428_vm10, %v5458_v19, %v10943_v41 }
 0x314   : > { %8463 = vmatprep.mubr.msk.bf16.mxu1 %vm2483_vm7, %v9013_v62  ;;  %v5556_v62 = vshll.u32 %v10679_v48, 16  ;;  %v5518_v41 = vshll.u32 %v10669_v1, 16  ;;  %v5529_v19 = vor.u32 %v5528_v33, %v5525_v32  ;;  %v5487_v33 = vsel %vm9428_vm10, %v5482_v27, %v10963_v57 }
 0x315   : > { %v6281_v2 = vrot.slane %v6279_v43, 4  ;;  %v10993_v7 = vsel %vm9410_vm6, %v7779_v60, %v6279_v43  ;;  %v5396_v43 = vld [vmem:[#allocation2 + $0x60] sm:$0xf]  ;;  %v5492_v60 = vrot.slane %v5491_v63, 4  ;;  %v5539_v0 = vor.u32 %v5538_v11, %v10989_v47 }
 0x316   : > { %v10983_v21 = vpop.f32.mrb[44].mxu0  ;;  %v11011_v31 = vrot.slane %v5556_v62, 5  ;;  %v5571_v63 = vshrl.u32 %v5396_v43, 16  ;;  %v7732_v62 = vcombine.low %v5463_v30, %v5473_v15  ;;  %v5520_v50 = vrot.slane %v5518_v41, 5 }
 0x317   : > { %11770 = vst [vmem:[#allocation43_spill] sm:$0xff] %v10983_v21  ;;  %v10987_v61 = vpop.f32.mrb[45].mxu0  ;;  %v10999_v48 = vsel %vm9410_vm6, %v6281_v2, %v6282_v54  ;;  %v5562_v2 = vrot.slane %v5560_v3, 4  ;;  %v5505_v54 = vor.u32 %v5504_v40, %v5501_v39  ;;  %v5574_v3 = vshll.u32 %v5396_v43, 16  ;;  %v5399_v40 = vld [vmem:[#allocation2 + $0x6c] sm:$0xf] }
 0x318   : > { %v10995_v38 = vpop.f32.mrb[46].mxu0  ;;  %v5497_v32 = vsel %vm9428_vm10, %v5492_v60, %v5496_v55  ;;  %v5530_v30 = vrot.slane %v5529_v19, 4  ;;  %v5540_v43 = vrot.slane %v5539_v0, 4  ;;  %v5553_v28 = vor.u32 %v5552_v49, %v5549_v20  ;;  %v5402_v20 = vld [vmem:[#allocation2 + $0x78] sm:$0xf] }
 0x319   : > { %v11001_v21 = vpop.f32.mrb[47].mxu0  ;;  %v5563_v39 = vor.u32 %v5562_v2, %v11011_v31  ;;  %v5506_v25 = vrot.slane %v5505_v54, 4  ;;  %v5566_v57 = vshll.u32 %v10699_v44, 16  ;;  %v5573_v27 = vrot.slane %v5571_v63, 4 }
 0x31a   : > { %11771 = vst [vmem:[#allocation44_spill] sm:$0xff] %v11001_v21  ;;  %v5515_v21 = vor.u32 %v5514_v23, %v10981_v22  ;;  %v5584_v23 = vshrl.u32 %v10690_v56, 16  ;;  %v5595_v35 = vshrl.u32 %v5399_v40, 16  ;;  %v5604_v19 = vshll.u32 %v10713_v4, 16 }
 0x31b   : > { %8464 = vmatmul.mubr.msk.bf16.gmra.mrb[28].mxu1 %vm2483_vm7, %v9014_v36  ;;  %v5580_v36 = vshll.u32 %v10690_v56, 16  ;;  %v5564_v54 = vrot.slane %v5563_v39, 4  ;;  %v5511_v41 = vsel %vm9428_vm10, %v5506_v25, %v10981_v22  ;;  %v5608_v0 = vshrl.u32 %v10713_v4, 16 }
 0x31c   : > { %8469 = vmatprep.mubr.msk.bf16.mxu1 %vm2483_vm7, %v7731_v10  ;;  %v5542_v10 = vshll.u32 %v10677_v42, 16  ;;  %v5516_v56 = vrot.slane %v5515_v21, 4  ;;  %v5576_v42 = vrot.slane %v5574_v3, 5  ;;  %v5586_v2 = vrot.slane %v5584_v23, 4 }
 0x31d   : > { %v11039_v60 = vrot.slane %v5580_v36, 5  ;;  %v5598_v21 = vshll.u32 %v5399_v40, 16  ;;  %v5535_v49 = vsel %vm9428_vm10, %v5530_v30, %v10989_v47  ;;  %v5554_v22 = vrot.slane %v5553_v28, 4 }
 0x31e   : > { %v11023_v1 = vpop.f32.mrb[48].mxu0  ;;  %v5521_v44 = vsel %vm9428_vm10, %v5516_v56, %v5520_v50  ;;  %v5577_v3 = vor.u32 %v5576_v42, %v5573_v27  ;;  %v5590_v23 = vshll.u32 %v10711_v9, 16  ;;  %v5597_v4 = vrot.slane %v5595_v35, 4  ;;  %v5405_v42 = vld [vmem:[#allocation2 + $0x84] sm:$0xf] }
 0x31f   : > { %11772 = vst [vmem:[#allocation45_spill] sm:$0xff] %v11023_v1  ;;  %v11032_v11 = vpop.f32.mrb[49].mxu0  ;;  %v7733_v1 = vcombine.low %v5487_v33, %v5497_v32  ;;  %v5587_v36 = vor.u32 %v5586_v2, %v11039_v60  ;;  %v5619_v32 = vshrl.u32 %v5402_v20, 16  ;;  %v11064_v39 = vrot.slane %v5604_v19, 5 }
 0x320   : > { %11773 = vst [vmem:[#allocation46_spill] sm:$0xff] %v11032_v11  ;;  %v11034_v15 = vpop.f32.mrb[50].mxu0  ;;  %v5544_v11 = vrot.slane %v5542_v10, 5  ;;  %v5622_v10 = vshll.u32 %v5402_v20, 16  ;;  %v5610_v28 = vrot.slane %v5608_v0, 4  ;;  %v5628_v40 = vshll.u32 %v10731_v12, 16 }
 0x321   : > { %v11037_v55 = vpop.f32.mrb[51].mxu0  ;;  %v7734_v9 = vcombine.low %v5511_v41, %v5521_v44  ;;  %v5559_v30 = vsel %vm9428_vm10, %v5554_v22, %v11011_v31  ;;  %v5614_v27 = vshll.u32 %v10729_v14, 16  ;;  %v5588_v35 = vrot.slane %v5587_v36, 4 }
 0x322   : > { %v5545_v63 = vsel %vm9428_vm10, %v5540_v43, %v5544_v11  ;;  %v5632_v11 = vshrl.u32 %v10731_v12, 16  ;;  %v5578_v43 = vrot.slane %v5577_v3, 4  ;;  %v5408_v12 = vld [vmem:[#allocation2 + $0x90] sm:$0xf]  ;;  %v5611_v44 = vor.u32 %v5610_v28, %v11064_v39 }
 0x323   : > { %8470 = vmatmul.mubr.msk.bf16.vlgmr.msra.gmra.mrb[0].mxu1 %vm2483_vm7, %v7732_v62  ;;  %v5568_v62 = vrot.slane %v5566_v57, 5  ;;  %v7735_v56 = vcombine.low %v5535_v49, %v5545_v63  ;;  %v5592_v57 = vrot.slane %v5590_v23, 5  ;;  %v11078_v19 = vrot.slane %v5628_v40, 5 }
 0x324   : > { %8502 = vmatpush3.bf16.msra.mxu1 %v10906_v59  ;;  %8473 = vmatprep.mubr.msk.bf16.mxu1 %vm2483_vm7, %v7733_v1  ;;  %v5600_v1 = vrot.slane %v5598_v21, 5  ;;  %v5624_v21 = vrot.slane %v5622_v10, 5  ;;  %v5634_v0 = vrot.slane %v5632_v11, 4  ;;  %v5643_v31 = vshrl.u32 %v5405_v42, 16 }
 0x325   : > { %v5569_v59 = vsel %vm9428_vm10, %v5564_v54, %v5568_v62  ;;  %v5621_v54 = vrot.slane %v5619_v32, 4  ;;  %v5646_v20 = vshll.u32 %v5405_v42, 16  ;;  %v5652_v14 = vshll.u32 %v10747_v26, 16 }
 0x326   : > { %v11058_v33 = vpop.f32.mrb[52].mxu0  ;;  %v7736_v2 = vcombine.low %v5559_v30, %v5569_v59  ;;  %v5601_v41 = vor.u32 %v5600_v1, %v5597_v4  ;;  %v5656_v49 = vshrl.u32 %v10747_v26, 16  ;;  %v5667_v63 = vshrl.u32 %v5408_v12, 16 }
 0x327   : > { %v11062_v47 = vpop.f32.mrb[53].mxu0  ;;  %v5670_v22 = vshll.u32 %v5408_v12, 16  ;;  %v5676_v62 = vshll.u32 %v10767_v46, 16  ;;  %v5680_v3 = vshrl.u32 %v10767_v46, 16  ;;  %v5583_v23 = vsel %vm9428_vm10, %v5578_v43, %v11039_v60  ;;  %v5411_v46 = vld [vmem:[#allocation2 + $0x9c] sm:$0xf] }
 0x328   : > { %v11068_v25 = vpop.f32.mrb[54].mxu0  ;;  %v5593_v4 = vsel %vm9428_vm10, %v5588_v35, %v5592_v57  ;;  %v5616_v59 = vrot.slane %v5614_v27, 5  ;;  %v5625_v1 = vor.u32 %v5624_v21, %v5621_v54  ;;  %v5602_v26 = vrot.slane %v5601_v41, 4 }
 0x329   : > { %v11070_v50 = vpop.f32.mrb[55].mxu0  ;;  %v5612_v10 = vrot.slane %v5611_v44, 4  ;;  %v5635_v28 = vor.u32 %v5634_v0, %v11078_v19  ;;  %v5638_v40 = vshll.u32 %v10760_v34, 16  ;;  %v11098_v30 = vrot.slane %v5652_v14, 5 }
 0x32a   : > { %v5658_v60 = vrot.slane %v5656_v49, 4  ;;  %v5669_v57 = vrot.slane %v5667_v63, 4  ;;  %v5672_v27 = vrot.slane %v5670_v22, 5  ;;  %v11102_v42 = vrot.slane %v5676_v62, 5 }
 0x32b   : > { %8474 = vmatmul.mubr.msk.bf16.gmra.mrb[4].mxu1 %vm2483_vm7, %v7734_v9  ;;  %v5645_v9 = vrot.slane %v5643_v31, 4  ;;  %v5682_v35 = vrot.slane %v5680_v3, 4  ;;  %v7737_v54 = vcombine.low %v5583_v23, %v5593_v4  ;;  %v5626_v21 = vrot.slane %v5625_v1, 4  ;;  %v5414_v4 = vld [vmem:[#allocation2 + $0xa8] sm:$0xf] }
 0x32c   : > { %8477 = vmatprep.mubr.msk.bf16.mxu1 %vm2483_vm7, %v7735_v56  ;;  %v5648_v56 = vrot.slane %v5646_v20, 5  ;;  %v5607_v34 = vsel %vm9428_vm10, %v5602_v26, %v11064_v39  ;;  %v5617_v12 = vsel %vm9428_vm10, %v5612_v10, %v5616_v59  ;;  %v5636_v41 = vrot.slane %v5635_v28, 4 }
 0x32d   : > { %v5659_v0 = vor.u32 %v5658_v60, %v11098_v30  ;;  %v5691_v31 = vshrl.u32 %v5411_v46, 16  ;;  %v5694_v20 = vshll.u32 %v5411_v46, 16  ;;  %v5640_v14 = vrot.slane %v5638_v40, 5 }
 0x32e   : > { %v11085_v36 = vpop.f32.mrb[56].mxu0  ;;  %v5649_v44 = vor.u32 %v5648_v56, %v5645_v9  ;;  %v5662_v49 = vshll.u32 %v10765_v6, 16  ;;  %v5673_v63 = vor.u32 %v5672_v27, %v5669_v57  ;;  %v7738_v39 = vcombine.low %v5607_v34, %v5617_v12 }
 0x32f   : > { %v11092_v32 = vpop.f32.mrb[57].mxu0  ;;  %v5631_v62 = vsel %vm9428_vm10, %v5626_v21, %v11078_v19  ;;  %v5700_v3 = vshll.u32 %v10784_v18, 16  ;;  %v5704_v23 = vshrl.u32 %v10784_v18, 16  ;;  %v5641_v6 = vsel %vm9428_vm10, %v5636_v41, %v5640_v14  ;;  %v5417_v41 = vld [vmem:[#allocation2 + $0xb4] sm:$0xf] }
 0x330   : > { %v11096_v11 = vpop.f32.mrb[58].mxu0  ;;  %v5686_v1 = vshll.u32 %v10779_v53, 16  ;;  %v5724_v26 = vshll.u32 %v10835_v37, 16  ;;  %v5728_v10 = vshrl.u32 %v10835_v37, 16  ;;  %v5650_v40 = vrot.slane %v5649_v44, 4 }
 0x331   : > { %v11100_v43 = vpop.f32.mrb[59].mxu0  ;;  %v5660_v19 = vrot.slane %v5659_v0, 4  ;;  %v5693_v46 = vrot.slane %v5691_v31, 4  ;;  %v5696_v9 = vrot.slane %v5694_v20, 5  ;;  %v5674_v18 = vrot.slane %v5673_v63, 4 }
 0x332   : > { %v5715_v57 = vshrl.u32 %v5414_v4, 16  ;;  %v5718_v27 = vshll.u32 %v5414_v4, 16  ;;  %v11132_v21 = vrot.slane %v5700_v3, 5  ;;  %v5706_v53 = vrot.slane %v5704_v23, 4  ;;  %v5420_v23 = vld [vmem:[#allocation2 + $0xc0] sm:$0xf] }
 0x333   : > { %8478 = vmatmul.mubr.msk.bf16.gmra.mrb[8].mxu1 %vm2483_vm7, %v7736_v2  ;;  %v5683_v2 = vor.u32 %v5682_v35, %v11102_v42  ;;  %v7739_v35 = vcombine.low %v5631_v62, %v5641_v6  ;;  %v5688_v37 = vrot.slane %v5686_v1, 5  ;;  %v11135_v34 = vrot.slane %v5724_v26, 5 }
 0x334   : > { %8481 = vmatprep.mubr.msk.bf16.mxu1 %vm2483_vm7, %v7737_v54  ;;  %v5664_v54 = vrot.slane %v5662_v49, 5  ;;  %v5730_v12 = vrot.slane %v5728_v10, 4  ;;  %v5655_v44 = vsel %vm9428_vm10, %v5650_v40, %v11098_v30  ;;  %v5697_v31 = vor.u32 %v5696_v9, %v5693_v46 }
 0x335   : > { %v5684_v60 = vrot.slane %v5683_v2, 4  ;;  %v5710_v20 = vshll.u32 %v10822_v45, 16  ;;  %v5679_v14 = vsel %vm9428_vm10, %v5674_v18, %v11102_v42  ;;  %v5717_v63 = vrot.slane %v5715_v57, 4 }
 0x336   : > { %v11114_v22 = vpop.f32.mrb[60].mxu0  ;;  %v5665_v0 = vsel %vm9428_vm10, %v5660_v19, %v5664_v54  ;;  %v5720_v2 = vrot.slane %v5718_v27, 5  ;;  %v5739_v62 = vshrl.u32 %v5417_v41, 16  ;;  %v5748_v30 = vshll.u32 %v10846_v16, 16 }
 0x337   : > { %v11121_v59 = vpop.f32.mrb[61].mxu0  ;;  %v5689_v49 = vsel %vm9428_vm10, %v5684_v60, %v5688_v37  ;;  %v5752_v3 = vshrl.u32 %v10846_v16, 16  ;;  %v5731_v4 = vor.u32 %v5730_v12, %v11135_v34  ;;  %v5742_v45 = vshll.u32 %v5417_v41, 16  ;;  %v5423_v60 = vld [vmem:[#allocation2 + $0xcc] sm:$0xf] }
 0x338   : > { %v11128_v28 = vpop.f32.mrb[62].mxu0  ;;  %v5772_v6 = vshll.u32 %v10848_v5, 16  ;;  %v5776_v42 = vshrl.u32 %v10848_v5, 16  ;;  %v7740_v1 = vcombine.low %v5655_v44, %v5665_v0  ;;  %v7741_v26 = vcombine.low %v5679_v14, %v5689_v49 }
 0x339   : > { %v11130_v56 = vpop.f32.mrb[63].mxu0  ;;  %v5698_v10 = vrot.slane %v5697_v31, 4  ;;  %v5712_v40 = vrot.slane %v5710_v20, 5  ;;  %v5721_v19 = vor.u32 %v5720_v2, %v5717_v63  ;;  %v5734_v46 = vshll.u32 %v10844_v24, 16 }
 0x33a   : > { %v5763_v9 = vshrl.u32 %v5420_v23, 16  ;;  %v5766_v18 = vshll.u32 %v5420_v23, 16  ;;  %v5741_v16 = vrot.slane %v5739_v62, 4  ;;  %v5750_v27 = vrot.slane %v5748_v30, 5 }
 0x33b   : > { %8482 = vmatmul.mubr.msk.bf16.gmra.mrb[12].mxu1 %vm2483_vm7, %v7738_v39  ;;  %v5707_v39 = vor.u32 %v5706_v53, %v11132_v21  ;;  %v5732_v54 = vrot.slane %v5731_v4, 4  ;;  %v5744_v53 = vrot.slane %v5742_v45, 5  ;;  %v5774_v37 = vrot.slane %v5772_v6, 5 }
 0x33c   : > { %8485 = vmatprep.mubr.msk.bf16.mxu1 %vm2483_vm7, %v7739_v35  ;;  %v5754_v35 = vrot.slane %v5752_v3, 4  ;;  %v5778_v5 = vrot.slane %v5776_v42, 4  ;;  %v5787_v12 = vshrl.u32 %v5423_v60, 16  ;;  %v5790_v41 = vshll.u32 %v5423_v60, 16 }
 0x33d   : > { %v5708_v57 = vrot.slane %v5707_v39, 4  ;;  %v5796_v44 = vshll.u32 %v10972_v17, 16  ;;  %v5800_v24 = vshrl.u32 %v10972_v17, 16  ;;  %v5722_v0 = vrot.slane %v5721_v19, 4 }
 0x33e   : > { %v5736_v31 = vrot.slane %v5734_v46, 5  ;;  %v5765_v20 = vrot.slane %v5763_v9, 4  ;;  %v5768_v14 = vrot.slane %v5766_v18, 5  ;;  %v5703_v49 = vsel %vm9428_vm10, %v5698_v10, %v11132_v21 }
 0x33f   : > { %v5713_v63 = vsel %vm9428_vm10, %v5708_v57, %v5712_v40  ;;  %v5755_v2 = vor.u32 %v5754_v35, %v5750_v27  ;;  %v5745_v62 = vor.u32 %v5744_v53, %v5741_v16  ;;  %v5758_v30 = vshll.u32 %v10859_v29, 16 }
 0x340   : > { %v5737_v39 = vsel %vm9428_vm10, %v5732_v54, %v5736_v31  ;;  %v5779_v3 = vor.u32 %v5778_v5, %v5774_v37  ;;  %v5789_v17 = vrot.slane %v5787_v12, 4  ;;  %v5792_v23 = vrot.slane %v5790_v41, 5 }
 0x341   : > { %v5798_v4 = vrot.slane %v5796_v44, 5  ;;  %v5802_v45 = vrot.slane %v5800_v24, 4  ;;  %v7742_v6 = vcombine.low %v5703_v49, %v5713_v63  ;;  %v5727_v21 = vsel %vm9428_vm10, %v5722_v0, %v11135_v34  ;;  %v11776_v0 = vld [vmem:[#allocation5_spill] sm:$0xff]  ;;  %v11782_v63 = vld [vmem:[#allocation11_spill] sm:$0xff] }
 0x342   : > { %v5769_v42 = vor.u32 %v5768_v14, %v5765_v20  ;;  %v5756_v10 = vrot.slane %v5755_v2, 4  ;;  %v5760_v40 = vrot.slane %v5758_v30, 5  ;;  %v5780_v19 = vrot.slane %v5779_v3, 4  ;;  %v11778_v20 = vld [vmem:[#allocation4_spill] sm:$0xff]  ;;  %v11779_v14 = vld [vmem:[#allocation6_spill] sm:$0xff] }
 0x343   : > { %8486 = vmatmul.mubr.msk.bf16.gmra.mrb[16].mxu1 %vm2483_vm7, %v7740_v1  ;;  %v5782_v1 = vshll.u32 %v10869_v51, 16  ;;  %v5746_v29 = vrot.slane %v5745_v62, 4  ;;  %v5793_v46 = vor.u32 %v5792_v23, %v5789_v17  ;;  %v5803_v9 = vor.u32 %v5802_v45, %v5798_v4  ;;  %v11785_v62 = vld [vmem:[#allocation12_spill] sm:$0xff]  ;;  %v11788_v30 = vld [vmem:[#allocation14_spill] sm:$0xff]  ;;  %v11790_v17 = vld [vmem:[#allocation15_spill] sm:$0xff] }
 0x344   : > { %8489 = vmatprep.mubr.msk.bf16.mxu1 %vm2483_vm7, %v7741_v26  ;;  %v7743_v26 = vcombine.low %v5727_v21, %v5737_v39  ;;  %v5806_v18 = vshll.u32 %v10974_v58, 16  ;;  %v5770_v60 = vrot.slane %v5769_v42, 4  ;;  %v5761_v34 = vsel %vm9428_vm10, %v5756_v10, %v5760_v40  ;;  %v11784_v39 = vld [vmem:[#allocation10_spill] sm:$0xff]  ;;  %v11791_v23 = vld [vmem:[#allocation16_spill] sm:$0xff]  ;;  %v11793_v45 = vld [vmem:[#allocation17_spill] sm:$0xff] }
 0x345   : > { %v5784_v57 = vrot.slane %v5782_v1, 5  ;;  %v5751_v16 = vsel %vm9428_vm10, %v5746_v29, %v5750_v27  ;;  %v5794_v35 = vrot.slane %v5793_v46, 4  ;;  %v5804_v54 = vrot.slane %v5803_v9, 4  ;;  %v11796_v42 = vld [vmem:[#allocation19_spill] sm:$0xff]  ;;  %v11797_v1 = vld [vmem:[#allocation20_spill] sm:$0xff]  ;;  %v11799_v10 = vld [vmem:[#allocation21_spill] sm:$0xff] }
 0x346   : > { %v5808_v53 = vrot.slane %v5806_v18, 5  ;;  %v7744_v5 = vcombine.low %v5751_v16, %v5761_v34  ;;  %v5775_v12 = vsel %vm9428_vm10, %v5770_v60, %v5774_v37  ;;  %v11774_v27 = vcombine.low %v10657_v8, %v10661_v13  ;;  %v11775_v37 = vld [vmem:[#allocation3_spill] sm:$0xff]  ;;  %v11787_v13 = vld [vmem:[#allocation13_spill] sm:$0xff]  ;;  %v11800_v40 = vld [vmem:[#allocation22_spill] sm:$0xff] }
 0x347   : > { %v5785_v51 = vsel %vm9428_vm10, %v5780_v19, %v5784_v57  ;;  %v5799_v58 = vsel %vm9428_vm10, %v5794_v35, %v5798_v4  ;;  %v11777_v31 = vcombine.low %v11775_v37, %v11776_v0  ;;  %v11780_v49 = vcombine.low %v11778_v20, %v11779_v14  ;;  %v11802_v29 = vld [vmem:[#allocation23_spill] sm:$0xff]  ;;  %v11805_v18 = vld [vmem:[#allocation24_spill] sm:$0xff]  ;;  %v11806_v60 = vld [vmem:[#allocation25_spill] sm:$0xff] }
 0x348   : > { %v7745_v41 = vcombine.low %v5775_v12, %v5785_v51  ;;  %v5809_v44 = vsel %vm9428_vm10, %v5804_v54, %v5808_v53  ;;  %v11783_v2 = vcombine.low %v11781_v52, %v11782_v63  ;;  %v11786_v8 = vcombine.low %v11784_v39, %v11785_v62  ;;  %v11803_v46 = vld [vmem:[#allocation7_spill] sm:$0xff]  ;;  %v11808_v34 = vld [vmem:[#allocation8_spill] sm:$0xff]  ;;  %v11809_v51 = vld [vmem:[#allocation26_spill] sm:$0xff] }
 0x349   : > { %v7746_v24 = vcombine.low %v5799_v58, %v5809_v44  ;;  %v11789_v3 = vcombine.low %v11787_v13, %v11788_v30  ;;  %v11792_v4 = vcombine.low %v11790_v17, %v11791_v23  ;;  %v11801_v19 = vcombine.low %v11799_v10, %v11800_v40  ;;  %v11811_v35 = vld [vmem:[#allocation27_spill] sm:$0xff]  ;;  %v11812_v54 = vld [vmem:[#allocation28_spill] sm:$0xff]  ;;  %v11815_v12 = vld [vmem:[#allocation30_spill] sm:$0xff] }
 0x34a   : > { %v11804_v9 = vcombine.low %v11802_v29, %v11803_v46  ;;  %v11807_v57 = vcombine.low %v11805_v18, %v11806_v60  ;;  %v11810_v16 = vcombine.low %v11808_v34, %v11809_v51  ;;  %v11813_v53 = vcombine.low %v11811_v35, %v11812_v54  ;;  %v6973_v44 = vld [vmem:[%s11633_s9] sm:$0x3]  ;;  %v11818_v37 = vld [vmem:[#allocation31_spill] sm:$0xff]  ;;  %v11821_v39 = vld [vmem:[#allocation34_spill] sm:$0xff] }
 0x34b   : > { %8490 = vmatmul.mubr.msk.bf16.gmra.mrb[20].mxu1 %vm2483_vm7, %v7742_v6  ;;  %v11794_v6 = vld [vmem:[#allocation18_spill] sm:$0xff]  ;;  %v11817_v58 = vcombine.low %v10993_v7, %v10999_v48  ;;  %8926 = vmatprep.subr.msk.bf16.mxu0 %vm654_vm0, %v6973_v44  ;;  %v11819_v20 = vld [vmem:[#allocation32_spill] sm:$0xff]  ;;  %v11824_v29 = vld [vmem:[#allocation37_spill] sm:$0xff]  ;;  %v7030_v18 = vsel %vm654_vm0, %v6973_v44, 0  ;;  %vm7225_vm0 = vcmask 64512  }
 0x34c   : > { %8493 = vmatprep.mubr.msk.bf16.mxu1 %vm2483_vm7, %v7743_v26  ;;  %v11795_v21 = vcombine.low %v11793_v45, %v11794_v6  ;;  %v11798_v26 = vcombine.low %v11796_v42, %v11797_v1  ;;  %v11822_v6 = vld [vmem:[#allocation35_spill] sm:$0xff] }
 0x353   : > { %8494 = vmatmul.mubr.msk.bf16.gmra.mrb[24].mxu1 %vm2483_vm7, %v7744_v5  ;;  %v11814_v5 = vld [vmem:[#allocation29_spill] sm:$0xff] }
 0x354   : > { %8497 = vmatprep.mubr.msk.bf16.mxu1 %vm2483_vm7, %v7745_v41  ;;  %v11816_v41 = vcombine.low %v11814_v5, %v11815_v12 }
 0x35b   : > { %8498 = vmatmul.mubr.msk.bf16.gmra.mrb[28].mxu1 %vm2483_vm7, %v7746_v24 }
 0x35c   : > { %8503 = vmatprep.mubr.msk.bf16.mxu1 %vm2483_vm7, %v11774_v27  ;;  %v11261_v27 = vld [vmem:[%s11630_s6] ss:$0 sm:$0xff] }
 0x363   : > { %8504 = vmatmul.mubr.msk.bf16.vlgmr.msra.gmra.mrb[0].mxu1 %vm2483_vm7, %v11777_v31 }
 0x364   : > { %8507 = vmatprep.mubr.msk.bf16.mxu1 %vm2483_vm7, %v11780_v49  ;;  %v11820_v49 = vld [vmem:[#allocation33_spill] sm:$0xff] }
 0x36b   : > { %8508 = vmatmul.mubr.msk.bf16.gmra.mrb[4].mxu1 %vm2483_vm7, %v11783_v2 }
 0x36c   : > { %8511 = vmatprep.mubr.msk.bf16.mxu1 %vm2483_vm7, %v11786_v8 }
 0x373   : > { %8512 = vmatmul.mubr.msk.bf16.gmra.mrb[8].mxu1 %vm2483_vm7, %v11789_v3 }
 0x374   : > { %8515 = vmatprep.mubr.msk.bf16.mxu1 %vm2483_vm7, %v11792_v4 }
 0x37b   : > { %8516 = vmatmul.mubr.msk.bf16.gmra.mrb[12].mxu1 %vm2483_vm7, %v11795_v21 }
 0x37c   : > { %8519 = vmatprep.mubr.msk.bf16.mxu1 %vm2483_vm7, %v11798_v26  ;;  %v11823_v26 = vld [vmem:[#allocation36_spill] sm:$0xff] }
 0x383   : > { %8520 = vmatmul.mubr.msk.bf16.gmra.mrb[16].mxu1 %vm2483_vm7, %v11801_v19 }
 0x384   : > { %8523 = vmatprep.mubr.msk.bf16.mxu1 %vm2483_vm7, %v11804_v9 }
 0x38b   : > { %8524 = vmatmul.mubr.msk.bf16.gmra.mrb[20].mxu1 %vm2483_vm7, %v11807_v57  ;;  %v11825_v57 = vld [vmem:[#allocation38_spill] sm:$0xff] }
 0x38c   : > { %8527 = vmatprep.mubr.msk.bf16.mxu1 %vm2483_vm7, %v11810_v16 }
 0x393   : > { %8528 = vmatmul.mubr.msk.bf16.gmra.mrb[24].mxu1 %vm2483_vm7, %v11813_v53 }
 0x394   : > { %8531 = vmatprep.mubr.msk.bf16.mxu1 %vm2483_vm7, %v11816_v41 }
 0x39b   : > { %8532 = vmatmul.mubr.msk.bf16.gmra.mrb[28].mxu1 %vm2483_vm7, %v11817_v58  ;;  %v11826_v58 = vld [vmem:[#allocation39_spill] sm:$0xff] }
 0x436   : > { %v8505_v24 = vpop.f32.mrb[0].mxu1 }
 0x437   : > { %v8603_v0 = vadd.f32 %v8505_v24, %v11818_v37  ;;  %v6423_v31 = vpop.f32.mrb[1].mxu1 }
 0x438   : > { %v8604_v14 = vadd.f32 %v6423_v31, %v11819_v20  ;;  %v8506_v7 = vpop.f32.mrb[2].mxu1 }
 0x439   : > { %v6591_v48 = vadd.f32 %v8603_v0, %v11261_v27  ;;  %v8605_v52 = vadd.f32 %v8506_v7, %v11820_v49  ;;  %v6426_v63 = vpop.f32.mrb[3].mxu1  ;;  %v11827_v0 = vld [vmem:[#allocation40_spill] sm:$0xff]  ;;  %v11828_v7 = vld [vmem:[#allocation41_spill] sm:$0xff] }
 0x43a   : > { %v6589_v2 = vadd.f32 %v8604_v14, %v11261_v27  ;;  %v8606_v62 = vadd.f32 %v6426_v63, %v11821_v39  ;;  %v11829_v63 = vld [vmem:[#allocation42_spill] sm:$0xff] }
 0x43b   : > { %v6592_v8 = vadd.f32 %v8605_v52, %v11261_v27  ;;  %v6623_v30 = vmax.f32 %v6591_v48, 0.0 }
 0x43c   : > { %v6590_v13 = vadd.f32 %v8606_v62, %v11261_v27  ;;  %v6621_v17 = vmax.f32 %v6589_v2, 0.0 }
 0x43d   : > { %v6624_v3 = vmax.f32 %v6592_v8, 0.0 }
 0x43e   : > { %v6622_v23 = vmax.f32 %v6590_v13, 0.0  ;;  %v8509_v4 = vpop.f32.mrb[4].mxu1 }
 0x43f   : > { %v6654_v45 = vpack.c.bf16 %v6624_v3, %v6623_v30  ;;  %v8607_v21 = vadd.f32 %v8509_v4, %v11822_v6  ;;  %v6439_v42 = vpop.f32.mrb[5].mxu1  ;;  %v11830_v4 = vld [vmem:[#allocation43_spill] sm:$0xff] }
 0x440   : > { %v6653_v1 = vpack.c.bf16 %v6622_v23, %v6621_v17  ;;  %v8608_v10 = vadd.f32 %v6439_v42, %v11823_v26  ;;  %v8510_v40 = vpop.f32.mrb[6].mxu1 }
 0x441   : > { %v6595_v19 = vadd.f32 %v8607_v21, %v11261_v27  ;;  %v8609_v46 = vadd.f32 %v8510_v40, %v11824_v29  ;;  %v6442_v9 = vpop.f32.mrb[7].mxu1  ;;  %v11831_v29 = vld [vmem:[#allocation44_spill] sm:$0xff] }
 0x442   : > { %v6593_v60 = vadd.f32 %v8608_v10, %v11261_v27  ;;  %v8610_v34 = vadd.f32 %v6442_v9, %v11825_v57  ;;  %8537 = vmatprep.mubr.msk.bf16.mxu0 %vm2483_vm7, %v6653_v1 }
 0x443   : > { %v6596_v51 = vadd.f32 %v8609_v46, %v11261_v27  ;;  %8538 = vmatmul.mubr.msk.bf16.vlgmr.msra.gmra.mrb[64].mxu0 %vm2483_vm7, %v6654_v45  ;;  %v6627_v35 = vmax.f32 %v6595_v19, 0.0 }
 0x444   : > { %v6594_v16 = vadd.f32 %v8610_v34, %v11261_v27  ;;  %8570 = vmatpush3.bf16.msra.mxu0 %v7030_v18  ;;  %v6625_v53 = vmax.f32 %v6593_v60, 0.0 }
 0x445   : > { %v6628_v54 = vmax.f32 %v6596_v51, 0.0 }
 0x446   : > { %v6626_v5 = vmax.f32 %v6594_v16, 0.0  ;;  %v8513_v12 = vpop.f32.mrb[8].mxu1 }
 0x447   : > { %v6656_v41 = vpack.c.bf16 %v6628_v54, %v6627_v35  ;;  %v8611_v44 = vadd.f32 %v8513_v12, %v11826_v58  ;;  %v6455_v24 = vpop.f32.mrb[9].mxu1 }
 0x448   : > { %v6655_v37 = vpack.c.bf16 %v6626_v5, %v6625_v53  ;;  %v8612_v31 = vadd.f32 %v6455_v24, %v11827_v0  ;;  %v8514_v20 = vpop.f32.mrb[10].mxu1  ;;  %v11833_v5 = vld [vmem:[#allocation46_spill] sm:$0xff] }
 0x449   : > { %v6599_v14 = vadd.f32 %v8611_v44, %v11261_v27  ;;  %v8613_v48 = vadd.f32 %v8514_v20, %v11828_v7  ;;  %v6458_v49 = vpop.f32.mrb[11].mxu1 }
 0x44a   : > { %v6597_v52 = vadd.f32 %v8612_v31, %v11261_v27  ;;  %v8614_v2 = vadd.f32 %v6458_v49, %v11829_v63  ;;  %8541 = vmatprep.mubr.msk.bf16.mxu0 %vm2483_vm7, %v6655_v37 }
 0x44b   : > { %v6600_v39 = vadd.f32 %v8613_v48, %v11261_v27  ;;  %8542 = vmatmul.mubr.msk.bf16.gmra.mrb[68].mxu0 %vm2483_vm7, %v6656_v41  ;;  %v6631_v8 = vmax.f32 %v6599_v14, 0.0 }
 0x44c   : > { %v6598_v62 = vadd.f32 %v8614_v2, %v11261_v27  ;;  %v6629_v30 = vmax.f32 %v6597_v52, 0.0 }
 0x44d   : > { %v6632_v13 = vmax.f32 %v6600_v39, 0.0 }
 0x44e   : > { %v6630_v3 = vmax.f32 %v6598_v62, 0.0  ;;  %v8517_v17 = vpop.f32.mrb[12].mxu1 }
 0x44f   : > { %v6658_v23 = vpack.c.bf16 %v6632_v13, %v6631_v8  ;;  %v8615_v45 = vadd.f32 %v8517_v17, %v11830_v4  ;;  %v6471_v6 = vpop.f32.mrb[13].mxu1 }
 0x450   : > { %v6657_v21 = vpack.c.bf16 %v6630_v3, %v6629_v30  ;;  %v8616_v42 = vadd.f32 %v6471_v6, %v10987_v61  ;;  %v8518_v1 = vpop.f32.mrb[14].mxu1 }
 0x451   : > { %v6603_v26 = vadd.f32 %v8615_v45, %v11261_v27  ;;  %v8617_v10 = vadd.f32 %v8518_v1, %v10995_v38  ;;  %v6474_v40 = vpop.f32.mrb[15].mxu1  ;;  %v11832_v38 = vld [vmem:[#allocation45_spill] sm:$0xff] }
 0x452   : > { %v6601_v19 = vadd.f32 %v8616_v42, %v11261_v27  ;;  %v8618_v46 = vadd.f32 %v6474_v40, %v11831_v29  ;;  %8545 = vmatprep.mubr.msk.bf16.mxu0 %vm2483_vm7, %v6657_v21 }
 0x453   : > { %v6604_v9 = vadd.f32 %v8617_v10, %v11261_v27  ;;  %8546 = vmatmul.mubr.msk.bf16.gmra.mrb[72].mxu0 %vm2483_vm7, %v6658_v23  ;;  %v6635_v60 = vmax.f32 %v6603_v26, 0.0 }
 0x454   : > { %v6602_v18 = vadd.f32 %v8618_v46, %v11261_v27  ;;  %v6633_v57 = vmax.f32 %v6601_v19, 0.0 }
 0x455   : > { %v6636_v61 = vmax.f32 %v6604_v9, 0.0 }
 0x456   : > { %v6634_v34 = vmax.f32 %v6602_v18, 0.0  ;;  %v8521_v51 = vpop.f32.mrb[16].mxu1 }
 0x457   : > { %v6660_v16 = vpack.c.bf16 %v6636_v61, %v6635_v60  ;;  %v8619_v35 = vadd.f32 %v8521_v51, %v11832_v38  ;;  %v6487_v54 = vpop.f32.mrb[17].mxu1 }
 0x458   : > { %v6659_v53 = vpack.c.bf16 %v6634_v34, %v6633_v57  ;;  %v8620_v12 = vadd.f32 %v6487_v54, %v11833_v5  ;;  %v8522_v41 = vpop.f32.mrb[18].mxu1 }
 0x459   : > { %v6607_v58 = vadd.f32 %v8619_v35, %v11261_v27  ;;  %v8621_v44 = vadd.f32 %v8522_v41, %v11034_v15  ;;  %v6490_v24 = vpop.f32.mrb[19].mxu1 }
 0x45a   : > { %v6605_v37 = vadd.f32 %v8620_v12, %v11261_v27  ;;  %v8622_v0 = vadd.f32 %v6490_v24, %v11037_v55  ;;  %8549 = vmatprep.mubr.msk.bf16.mxu0 %vm2483_vm7, %v6659_v53  ;;  %v6926_v24 = vld [vmem:[%s9184_s15 + $0x8] sm:$0xff] }
 0x45b   : > { %v6608_v31 = vadd.f32 %v8621_v44, %v11261_v27  ;;  %8550 = vmatmul.mubr.msk.bf16.gmra.mrb[76].mxu0 %vm2483_vm7, %v6660_v16  ;;  %v6639_v14 = vmax.f32 %v6607_v58, 0.0 }
 0x45c   : > { %v6606_v20 = vadd.f32 %v8622_v0, %v11261_v27  ;;  %v6637_v48 = vmax.f32 %v6605_v37, 0.0 }
 0x45d   : > { %v6640_v7 = vmax.f32 %v6608_v31, 0.0 }
 0x45e   : > { %v6638_v49 = vmax.f32 %v6606_v20, 0.0  ;;  %v8525_v52 = vpop.f32.mrb[20].mxu1 }
 0x45f   : > { %v6662_v63 = vpack.c.bf16 %v6640_v7, %v6639_v14  ;;  %v8623_v15 = vadd.f32 %v8525_v52, %v11058_v33  ;;  %v6503_v2 = vpop.f32.mrb[21].mxu1  ;;  %v6928_v14 = vld [vmem:[%s9184_s15 + $0x18] sm:$0xff]  ;;  %v6929_v7 = vld [vmem:[%s9184_s15 + $0x20] sm:$0xff] }
 0x460   : > { %v6661_v39 = vpack.c.bf16 %v6638_v49, %v6637_v48  ;;  %v8624_v55 = vadd.f32 %v6503_v2, %v11062_v47  ;;  %v8526_v62 = vpop.f32.mrb[22].mxu1  ;;  %v6930_v48 = vld [vmem:[%s9184_s15 + $0x28] sm:$0xff]  ;;  %v6933_v2 = vld [vmem:[%s9184_s15 + $0x40] sm:$0xff] }
 0x461   : > { %v6611_v8 = vadd.f32 %v8623_v15, %v11261_v27  ;;  %v8625_v13 = vadd.f32 %v8526_v62, %v11068_v25  ;;  %v6506_v30 = vpop.f32.mrb[23].mxu1  ;;  %v6959_v52 = vpack.c.bf16 %v6930_v48, %v6929_v7  ;;  %v6932_v15 = vld [vmem:[%s9184_s15 + $0x38] sm:$0xff] }
 0x462   : > { %v6609_v3 = vadd.f32 %v8624_v55, %v11261_v27  ;;  %v8626_v17 = vadd.f32 %v6506_v30, %v11070_v50  ;;  %8553 = vmatprep.mubr.msk.bf16.mxu0 %vm2483_vm7, %v6661_v39  ;;  %v6934_v39 = vld [vmem:[%s9184_s15 + $0x48] sm:$0xff]  ;;  %v6937_v30 = vld [vmem:[%s9184_s15 + $0x60] sm:$0xff] }
 0x463   : > { %v6612_v23 = vadd.f32 %v8625_v13, %v11261_v27  ;;  %8554 = vmatmul.mubr.msk.bf16.gmra.mrb[80].mxu0 %vm2483_vm7, %v6662_v63  ;;  %v6643_v4 = vmax.f32 %v6611_v8, 0.0  ;;  %v6931_v63 = vld [vmem:[%s9184_s15 + $0x30] sm:$0xff]  ;;  %v6961_v62 = vpack.c.bf16 %v6934_v39, %v6933_v2  ;;  %v6936_v13 = vld [vmem:[%s9184_s15 + $0x58] sm:$0xff] }
 0x464   : > { %v6610_v33 = vadd.f32 %v8626_v17, %v11261_v27  ;;  %v6641_v45 = vmax.f32 %v6609_v3, 0.0  ;;  %v6960_v55 = vpack.c.bf16 %v6932_v15, %v6931_v63  ;;  %v6935_v8 = vld [vmem:[%s9184_s15 + $0x50] sm:$0xff]  ;;  %v6938_v3 = vld [vmem:[%s9184_s15 + $0x68] sm:$0xff] }
 0x465   : > { %v6644_v47 = vmax.f32 %v6612_v23, 0.0  ;;  %v6962_v17 = vpack.c.bf16 %v6936_v13, %v6935_v8  ;;  %v6963_v23 = vpack.c.bf16 %v6938_v3, %v6937_v30 }
 0x466   : > { %v6642_v6 = vmax.f32 %v6610_v33, 0.0  ;;  %v8529_v21 = vpop.f32.mrb[24].mxu1  ;;  %v6939_v33 = vld [vmem:[%s9184_s15 + $0x70] sm:$0xff] }
 0x467   : > { %v6664_v42 = vpack.c.bf16 %v6644_v47, %v6643_v4  ;;  %v8627_v25 = vadd.f32 %v8529_v21, %v11085_v36  ;;  %v6519_v1 = vpop.f32.mrb[25].mxu1  ;;  %v6940_v4 = vld [vmem:[%s9184_s15 + $0x78] sm:$0xff]  ;;  %v6941_v47 = vld [vmem:[%s9184_s15 + $0x80] sm:$0xff] }
 0x468   : > { %v6663_v26 = vpack.c.bf16 %v6642_v6, %v6641_v45  ;;  %v8628_v50 = vadd.f32 %v6519_v1, %v11092_v32  ;;  %v8530_v10 = vpop.f32.mrb[26].mxu1  ;;  %v6942_v45 = vld [vmem:[%s9184_s15 + $0x88] sm:$0xff]  ;;  %v6964_v6 = vpack.c.bf16 %v6940_v4, %v6939_v33  ;;  %v6945_v1 = vld [vmem:[%s9184_s15 + $0xa0] sm:$0xff] }
 0x469   : > { %v6615_v40 = vadd.f32 %v8627_v25, %v11261_v27  ;;  %v8629_v19 = vadd.f32 %v8530_v10, %v11096_v11  ;;  %v6522_v29 = vpop.f32.mrb[27].mxu1  ;;  %v6965_v21 = vpack.c.bf16 %v6942_v45, %v6941_v47  ;;  %v6944_v25 = vld [vmem:[%s9184_s15 + $0x98] sm:$0xff] }
 0x46a   : > { %v6613_v46 = vadd.f32 %v8628_v50, %v11261_v27  ;;  %v8630_v9 = vadd.f32 %v6522_v29, %v11100_v43  ;;  %8557 = vmatprep.mubr.msk.bf16.mxu0 %vm2483_vm7, %v6663_v26  ;;  %v6946_v26 = vld [vmem:[%s9184_s15 + $0xa8] sm:$0xff]  ;;  %v6949_v29 = vld [vmem:[%s9184_s15 + $0xc0] sm:$0xff] }
 0x46b   : > { %v6616_v18 = vadd.f32 %v8629_v19, %v11261_v27  ;;  %8558 = vmatmul.mubr.msk.bf16.gmra.mrb[84].mxu0 %vm2483_vm7, %v6664_v42  ;;  %v6647_v60 = vmax.f32 %v6615_v40, 0.0  ;;  %v6943_v42 = vld [vmem:[%s9184_s15 + $0x90] sm:$0xff]  ;;  %v6967_v10 = vpack.c.bf16 %v6946_v26, %v6945_v1  ;;  %v6948_v19 = vld [vmem:[%s9184_s15 + $0xb8] sm:$0xff] }
 0x46c   : > { %v6614_v36 = vadd.f32 %v8630_v9, %v11261_v27  ;;  %v6645_v61 = vmax.f32 %v6613_v46, 0.0  ;;  %v6966_v50 = vpack.c.bf16 %v6944_v25, %v6943_v42  ;;  %v6947_v40 = vld [vmem:[%s9184_s15 + $0xb0] sm:$0xff]  ;;  %v6950_v46 = vld [vmem:[%s9184_s15 + $0xc8] sm:$0xff] }
 0x46d   : > { %v6648_v32 = vmax.f32 %v6616_v18, 0.0  ;;  %v6968_v9 = vpack.c.bf16 %v6948_v19, %v6947_v40  ;;  %v6969_v18 = vpack.c.bf16 %v6950_v46, %v6949_v29 }
 0x46e   : > { %v6646_v57 = vmax.f32 %v6614_v36, 0.0  ;;  %v8533_v34 = vpop.f32.mrb[28].mxu1  ;;  %v6951_v36 = vld [vmem:[%s9184_s15 + $0xd0] sm:$0xff] }
 0x46f   : > { %v6666_v51 = vpack.c.bf16 %v6648_v32, %v6647_v60  ;;  %v8631_v11 = vadd.f32 %v8533_v34, %v11114_v22  ;;  %v6535_v16 = vpop.f32.mrb[29].mxu1  ;;  %v6952_v60 = vld [vmem:[%s9184_s15 + $0xd8] sm:$0xff]  ;;  %v6953_v32 = vld [vmem:[%s9184_s15 + $0xe0] sm:$0xff] }
 0x470   : > { %v6665_v43 = vpack.c.bf16 %v6646_v57, %v6645_v61  ;;  %v8632_v38 = vadd.f32 %v6535_v16, %v11121_v59  ;;  %v8534_v35 = vpop.f32.mrb[30].mxu1  ;;  %v6954_v61 = vld [vmem:[%s9184_s15 + $0xe8] sm:$0xff]  ;;  %v6970_v57 = vpack.c.bf16 %v6952_v60, %v6951_v36 }
 0x471   : > { %v6619_v54 = vadd.f32 %v8631_v11, %v11261_v27  ;;  %v8633_v53 = vadd.f32 %v8534_v35, %v11128_v28  ;;  %v6538_v5 = vpop.f32.mrb[31].mxu1  ;;  %v6925_v28 = vld [vmem:[%s9184_s15] sm:$0xff]  ;;  %v6971_v34 = vpack.c.bf16 %v6954_v61, %v6953_v32  ;;  %v6956_v11 = vld [vmem:[%s9184_s15 + $0xf8] sm:$0xff] }
 0x472   : > { %v6617_v12 = vadd.f32 %v8632_v38, %v11261_v27  ;;  %v8634_v41 = vadd.f32 %v6538_v5, %v11130_v56  ;;  %8561 = vmatprep.mubr.msk.bf16.mxu0 %vm2483_vm7, %v6665_v43  ;;  %v6957_v20 = vpack.c.bf16 %v6926_v24, %v6925_v28 }
 0x473   : > { %v6620_v22 = vadd.f32 %v8633_v53, %v11261_v27  ;;  %8562 = vmatmul.mubr.msk.bf16.gmra.mrb[88].mxu0 %vm2483_vm7, %v6666_v51  ;;  %v6651_v58 = vmax.f32 %v6619_v54, 0.0  ;;  %v6955_v51 = vld [vmem:[%s9184_s15 + $0xf0] sm:$0xff] }
 0x474   : > { %v6618_v59 = vadd.f32 %v8634_v41, %v11261_v27  ;;  %v6649_v37 = vmax.f32 %v6617_v12, 0.0  ;;  %v6927_v27 = vld [vmem:[%s9184_s15 + $0x10] sm:$0xff]  ;;  %v6972_v16 = vpack.c.bf16 %v6956_v11, %v6955_v51  ;;  %s7368_s15 = sshll.u32 %s9058_s18, 3 }
 0x475   : > { %v6652_v44 = vmax.f32 %v6620_v22, 0.0  ;;  %v6958_v49 = vpack.c.bf16 %v6928_v14, %v6927_v27  ;;  %s497_s29 = sadd.s32 %s9054_s17, %s7368_s15 }
 0x476   : > { %v6650_v0 = vmax.f32 %v6618_v59, 0.0  ;;  %p498_p8 = scmp.lt.s32.totalorder %s497_s29, 15 }
 0x477   : > { %v6668_v56 = vpack.c.bf16 %v6652_v44, %v6651_v58 }
 0x478   : > { %v6667_v31 = vpack.c.bf16 %v6650_v0, %v6649_v37  ;;  %s11849_s29 = smov (!%p498_p8, %s497_s29), 15 }
 0x479   : > { %s7856_s24 = sshll.u32 %s11849_s29, 8 }
 0x47a   : > { %8565 = vmatprep.mubr.msk.bf16.mxu0 %vm2483_vm7, %v6667_v31  ;;  %s11460_s27 = scalar_lea.vmem %s11635_s11, %s7856_s24 }
 0x47b   : > { %8566 = vmatmul.mubr.msk.bf16.gmra.mrb[92].mxu0 %vm2483_vm7, %v6668_v56 }
 0x47c   : > { %8571 = vmatprep.mubr.msk.bf16.mxu0 %vm605_vm1, %v6957_v20 }
 0x483   : > { %8572 = vmatmul.mubr.msk.bf16.vlgmr.msra.gmra.mrb[96].mxu0 %vm605_vm1, %v6958_v49 }
 0x484   : > { %8575 = vmatprep.mubr.msk.bf16.mxu0 %vm605_vm1, %v6959_v52 }
 0x48b   : > { %8576 = vmatmul.mubr.msk.bf16.gmra.mrb[100].mxu0 %vm605_vm1, %v6960_v55 }
 0x48c   : > { %8579 = vmatprep.mubr.msk.bf16.mxu0 %vm605_vm1, %v6961_v62  ;;  %v11441_v62 = vld [vmem:[%s11632_s8] ss:$0 sm:$0xff] }
 0x493   : > { %8580 = vmatmul.mubr.msk.bf16.gmra.mrb[104].mxu0 %vm605_vm1, %v6962_v17  ;;  %v11452_v17 = vld [vmem:[%s11634_s10] ss:$0 sm:$0xff] }
 0x494   : > { %8583 = vmatprep.mubr.msk.bf16.mxu0 %vm605_vm1, %v6963_v23 }
 0x49b   : > { %8584 = vmatmul.mubr.msk.bf16.gmra.mrb[108].mxu0 %vm605_vm1, %v6964_v6 }
 0x49c   : > { %8587 = vmatprep.mubr.msk.bf16.mxu0 %vm605_vm1, %v6965_v21 }
 0x4a3   : > { %8588 = vmatmul.mubr.msk.bf16.gmra.mrb[112].mxu0 %vm605_vm1, %v6966_v50 }
 0x4a4   : > { %8591 = vmatprep.mubr.msk.bf16.mxu0 %vm605_vm1, %v6967_v10 }
 0x4ab   : > { %8592 = vmatmul.mubr.msk.bf16.gmra.mrb[116].mxu0 %vm605_vm1, %v6968_v9 }
 0x4ac   : > { %8595 = vmatprep.mubr.msk.bf16.mxu0 %vm605_vm1, %v6969_v18 }
 0x4b3   : > { %8596 = vmatmul.mubr.msk.bf16.gmra.mrb[120].mxu0 %vm605_vm1, %v6970_v57 }
 0x4b4   : > { %8599 = vmatprep.mubr.msk.bf16.mxu0 %vm605_vm1, %v6971_v34 }
 0x4bb   : > { %8600 = vmatmul.mubr.msk.bf16.gmra.mrb[124].mxu0 %vm605_vm1, %v6972_v16 }
 0x516   : > { %v8539_v43 = vpop.f32.mrb[64].mxu0 }
 0x517   : > { %v6766_v38 = vpop.f32.mrb[65].mxu0  ;;  %v6775_v30 = vadd.f32 %v8539_v43, %v11441_v62 }
 0x518   : > { %v8540_v35 = vpop.f32.mrb[66].mxu0  ;;  %v6767_v3 = vadd.f32 %v11441_v62, %v6766_v38 }
 0x519   : > { %v6769_v54 = vpop.f32.mrb[67].mxu0  ;;  %v6778_v23 = vadd.f32 %v8540_v35, %v11441_v62  ;;  %v6895_v47 = vmax.f32 %v6775_v30, 0.0 }
 0x51a   : > { %v6770_v33 = vadd.f32 %v11441_v62, %v6769_v54  ;;  %v6893_v21 = vmax.f32 %v6767_v3, 0.0 }
 0x51b   : > { %v6896_v1 = vmax.f32 %v6778_v23, 0.0 }
 0x51c   : > { %v6894_v40 = vmax.f32 %v6770_v33, 0.0 }
 0x51e   : > { %v8543_v53 = vpop.f32.mrb[68].mxu0 }
 0x51f   : > { %v6782_v5 = vpop.f32.mrb[69].mxu0  ;;  %v6791_v46 = vadd.f32 %v8543_v53, %v11441_v62 }
 0x520   : > { %v8544_v12 = vpop.f32.mrb[70].mxu0  ;;  %v6783_v18 = vadd.f32 %v11441_v62, %v6782_v5 }
 0x521   : > { %v6785_v41 = vpop.f32.mrb[71].mxu0  ;;  %v6794_v60 = vadd.f32 %v8544_v12, %v11441_v62  ;;  %v6899_v57 = vmax.f32 %v6791_v46, 0.0 }
 0x522   : > { %v6786_v32 = vadd.f32 %v11441_v62, %v6785_v41  ;;  %v6897_v11 = vmax.f32 %v6783_v18, 0.0 }
 0x523   : > { %v6900_v38 = vmax.f32 %v6794_v60, 0.0 }
 0x524   : > { %v6898_v5 = vmax.f32 %v6786_v32, 0.0 }
 0x526   : > { %v11392_v22 = vpop.f32.mrb[72].mxu0 }
 0x527   : > { %v11394_v59 = vpop.f32.mrb[73].mxu0  ;;  %v6807_v30 = vadd.f32 %v11392_v22, %v11441_v62 }
 0x528   : > { %v11396_v58 = vpop.f32.mrb[74].mxu0  ;;  %v6799_v23 = vadd.f32 %v11441_v62, %v11394_v59 }
 0x529   : > { %v11398_v44 = vpop.f32.mrb[75].mxu0 }
 0x52e   : > { %v11400_v28 = vpop.f32.mrb[76].mxu0 }
 0x52f   : > { %v11402_v24 = vpop.f32.mrb[77].mxu0 }
 0x530   : > { %v11404_v37 = vpop.f32.mrb[78].mxu0  ;;  %v6815_v46 = vadd.f32 %v11441_v62, %v11402_v24 }
 0x531   : > { %v11406_v0 = vpop.f32.mrb[79].mxu0  ;;  %v6826_v18 = vadd.f32 %v11404_v37, %v11441_v62 }
 0x533   : > { %v6908_v37 = vmax.f32 %v6826_v18, 0.0 }
 0x536   : > { %v11408_v56 = vpop.f32.mrb[80].mxu0 }
 0x537   : > { %v11410_v31 = vpop.f32.mrb[81].mxu0 }
 0x538   : > { %v11412_v20 = vpop.f32.mrb[82].mxu0 }
 0x539   : > { %v11414_v27 = vpop.f32.mrb[83].mxu0 }
 0x53e   : > { %v11416_v14 = vpop.f32.mrb[84].mxu0 }
 0x53f   : > { %v11418_v7 = vpop.f32.mrb[85].mxu0 }
 0x540   : > { %v11420_v48 = vpop.f32.mrb[86].mxu0 }
 0x541   : > { %v11422_v49 = vpop.f32.mrb[87].mxu0 }
 0x546   : > { %v11424_v52 = vpop.f32.mrb[88].mxu0 }
 0x547   : > { %v11426_v63 = vpop.f32.mrb[89].mxu0 }
 0x548   : > { %v11429_v15 = vpop.f32.mrb[90].mxu0 }
 0x549   : > { %v11431_v2 = vpop.f32.mrb[91].mxu0 }
 0x54e   : > { %v11434_v39 = vpop.f32.mrb[92].mxu0 }
 0x54f   : > { %v11436_v55 = vpop.f32.mrb[93].mxu0 }
 0x550   : > { %v11443_v8 = vpop.f32.mrb[94].mxu0 }
 0x551   : > { %v11445_v13 = vpop.f32.mrb[95].mxu0 }
 0x556   : > { %v8573_v4 = vpop.f32.mrb[96].mxu0 }
 0x557   : > { %v7075_v45 = vadd.f32 %v8573_v4, %v11452_v17  ;;  %v7066_v6 = vpop.f32.mrb[97].mxu0  ;;  %v6810_v4 = vadd.f32 %v11396_v58, %v11441_v62 }
 0x558   : > { %v7067_v42 = vadd.f32 %v11452_v17, %v7066_v6  ;;  %v8574_v25 = vpop.f32.mrb[98].mxu0 }
 0x559   : > { %v7195_v26 = vadd.f32 %v7075_v45, %v6895_v47  ;;  %v7078_v50 = vadd.f32 %v8574_v25, %v11452_v17  ;;  %v7069_v10 = vpop.f32.mrb[99].mxu0  ;;  %v6802_v47 = vadd.f32 %v11441_v62, %v11398_v44  ;;  %v6903_v45 = vmax.f32 %v6807_v30, 0.0 }
 0x55a   : > { %v7193_v19 = vadd.f32 %v7067_v42, %v6893_v21  ;;  %v7070_v29 = vadd.f32 %v11452_v17, %v7069_v10  ;;  %v6901_v21 = vmax.f32 %v6799_v23, 0.0  ;;  %v6904_v58 = vmax.f32 %v6810_v4, 0.0 }
 0x55b   : > { %7228 = vst.msk [vmem:[%s11460_s27 + $0x10] sm:$0xff] %vm7225_vm0, %v7195_v26  ;;  %v7196_v9 = vadd.f32 %v7078_v50, %v6896_v1  ;;  %v6902_v50 = vmax.f32 %v6802_v47, 0.0 }
 0x55c   : > { %7226 = vst.msk [vmem:[%s11460_s27] sm:$0xff] %vm7225_vm0, %v7193_v19  ;;  %v7194_v36 = vadd.f32 %v7070_v29, %v6894_v40  ;;  %v6823_v19 = vadd.f32 %v11400_v28, %v11441_v62 }
 0x55d   : > { %7229 = vst.msk [vmem:[%s11460_s27 + $0x18] sm:$0xff] %vm7225_vm0, %v7196_v9 }
 0x55e   : > { %7227 = vst.msk [vmem:[%s11460_s27 + $0x8] sm:$0xff] %vm7225_vm0, %v7194_v36  ;;  %v8577_v61 = vpop.f32.mrb[100].mxu0  ;;  %v6818_v36 = vadd.f32 %v11441_v62, %v11406_v0  ;;  %v6907_v60 = vmax.f32 %v6823_v19, 0.0 }
 0x55f   : > { %v7091_v34 = vadd.f32 %v8577_v61, %v11452_v17  ;;  %v7082_v51 = vpop.f32.mrb[101].mxu0  ;;  %v6905_v61 = vmax.f32 %v6815_v46, 0.0 }
 0x560   : > { %v7083_v16 = vadd.f32 %v11452_v17, %v7082_v51  ;;  %v8578_v43 = vpop.f32.mrb[102].mxu0 }
 0x561   : > { %v7199_v35 = vadd.f32 %v7091_v34, %v6899_v57  ;;  %v7094_v54 = vadd.f32 %v8578_v43, %v11452_v17  ;;  %v7085_v53 = vpop.f32.mrb[103].mxu0 }
 0x562   : > { %v7197_v12 = vadd.f32 %v7083_v16, %v6897_v11  ;;  %v7086_v41 = vadd.f32 %v11452_v17, %v7085_v53  ;;  %v6906_v16 = vmax.f32 %v6818_v36, 0.0  ;;  %v6831_v53 = vadd.f32 %v11441_v62, %v11410_v31 }
 0x563   : > { %7232 = vst.msk [vmem:[%s11460_s27 + $0x30] sm:$0xff] %vm7225_vm0, %v7199_v35  ;;  %v7200_v3 = vadd.f32 %v7094_v54, %v6900_v38  ;;  %v6839_v35 = vadd.f32 %v11408_v56, %v11441_v62 }
 0x564   : > { %7230 = vst.msk [vmem:[%s11460_s27 + $0x20] sm:$0xff] %vm7225_vm0, %v7197_v12  ;;  %v7198_v33 = vadd.f32 %v7086_v41, %v6898_v5  ;;  %v6842_v12 = vadd.f32 %v11412_v20, %v11441_v62  ;;  %v6834_v41 = vadd.f32 %v11441_v62, %v11414_v27  ;;  %v6909_v23 = vmax.f32 %v6831_v53, 0.0 }
 0x565   : > { %7233 = vst.msk [vmem:[%s11460_s27 + $0x38] sm:$0xff] %vm7225_vm0, %v7200_v3  ;;  %v6911_v30 = vmax.f32 %v6839_v35, 0.0  ;;  %v6887_v53 = vadd.f32 %v11434_v39, %v11441_v62 }
 0x566   : > { %7231 = vst.msk [vmem:[%s11460_s27 + $0x28] sm:$0xff] %vm7225_vm0, %v7198_v33  ;;  %v8581_v22 = vpop.f32.mrb[104].mxu0  ;;  %v6912_v20 = vmax.f32 %v6842_v12, 0.0  ;;  %v6879_v12 = vadd.f32 %v11441_v62, %v11436_v55 }
 0x567   : > { %v7107_v6 = vadd.f32 %v8581_v22, %v11452_v17  ;;  %v7098_v59 = vpop.f32.mrb[105].mxu0 }
 0x568   : > { %v7099_v42 = vadd.f32 %v11452_v17, %v7098_v59  ;;  %v8582_v25 = vpop.f32.mrb[106].mxu0 }
 0x569   : > { %v7203_v1 = vadd.f32 %v7107_v6, %v6903_v45  ;;  %v7110_v26 = vadd.f32 %v8582_v25, %v11452_v17  ;;  %v7101_v44 = vpop.f32.mrb[107].mxu0  ;;  %v6910_v45 = vmax.f32 %v6834_v41, 0.0  ;;  %v6847_v25 = vadd.f32 %v11441_v62, %v11418_v7 }
 0x56a   : > { %v7201_v10 = vadd.f32 %v7099_v42, %v6901_v21  ;;  %v7102_v40 = vadd.f32 %v11452_v17, %v7101_v44  ;;  %v6855_v21 = vadd.f32 %v11416_v14, %v11441_v62 }
 0x56b   : > { %7236 = vst.msk [vmem:[%s11460_s27 + $0x50] sm:$0xff] %vm7225_vm0, %v7203_v1  ;;  %v7204_v29 = vadd.f32 %v7110_v26, %v6904_v58  ;;  %v6858_v1 = vadd.f32 %v11420_v48, %v11441_v62  ;;  %v6850_v26 = vadd.f32 %v11441_v62, %v11422_v49 }
 0x56c   : > { %7234 = vst.msk [vmem:[%s11460_s27 + $0x40] sm:$0xff] %vm7225_vm0, %v7201_v10  ;;  %v7202_v9 = vadd.f32 %v7102_v40, %v6902_v50  ;;  %v6915_v44 = vmax.f32 %v6855_v21, 0.0  ;;  %v6913_v10 = vmax.f32 %v6847_v25, 0.0 }
 0x56d   : > { %7237 = vst.msk [vmem:[%s11460_s27 + $0x58] sm:$0xff] %vm7225_vm0, %v7204_v29  ;;  %v6916_v48 = vmax.f32 %v6858_v1, 0.0 }
 0x56e   : > { %7235 = vst.msk [vmem:[%s11460_s27 + $0x48] sm:$0xff] %vm7225_vm0, %v7202_v9  ;;  %v8585_v28 = vpop.f32.mrb[108].mxu0  ;;  %v6914_v9 = vmax.f32 %v6850_v26, 0.0 }
 0x56f   : > { %v7123_v32 = vadd.f32 %v8585_v28, %v11452_v17  ;;  %v7114_v24 = vpop.f32.mrb[109].mxu0  ;;  %v6871_v28 = vadd.f32 %v11424_v52, %v11441_v62 }
 0x570   : > { %v7115_v57 = vadd.f32 %v11452_v17, %v7114_v24  ;;  %v8586_v34 = vpop.f32.mrb[110].mxu0 }
 0x571   : > { %v7207_v51 = vadd.f32 %v7123_v32, %v6907_v60  ;;  %v7126_v11 = vadd.f32 %v8586_v34, %v11452_v17  ;;  %v7117_v0 = vpop.f32.mrb[111].mxu0  ;;  %v6863_v32 = vadd.f32 %v11441_v62, %v11426_v63  ;;  %v6919_v34 = vmax.f32 %v6871_v28, 0.0 }
 0x572   : > { %v7205_v43 = vadd.f32 %v7115_v57, %v6905_v61  ;;  %v7118_v38 = vadd.f32 %v11452_v17, %v7117_v0  ;;  %v6874_v61 = vadd.f32 %v11429_v15, %v11441_v62  ;;  %v6866_v57 = vadd.f32 %v11441_v62, %v11431_v2 }
 0x573   : > { %7240 = vst.msk [vmem:[%s11460_s27 + $0x70] sm:$0xff] %vm7225_vm0, %v7207_v51  ;;  %v7208_v54 = vadd.f32 %v7126_v11, %v6908_v37  ;;  %v6917_v51 = vmax.f32 %v6863_v32, 0.0 }
 0x574   : > { %7238 = vst.msk [vmem:[%s11460_s27 + $0x60] sm:$0xff] %vm7225_vm0, %v7205_v43  ;;  %v7206_v5 = vadd.f32 %v7118_v38, %v6906_v16  ;;  %v6920_v15 = vmax.f32 %v6874_v61, 0.0  ;;  %v6918_v38 = vmax.f32 %v6866_v57, 0.0 }
 0x575   : > { %7241 = vst.msk [vmem:[%s11460_s27 + $0x78] sm:$0xff] %vm7225_vm0, %v7208_v54 }
 0x576   : > { %7239 = vst.msk [vmem:[%s11460_s27 + $0x68] sm:$0xff] %vm7225_vm0, %v7206_v5  ;;  %v8589_v56 = vpop.f32.mrb[112].mxu0 }
 0x577   : > { %v7139_v3 = vadd.f32 %v8589_v56, %v11452_v17  ;;  %v7130_v31 = vpop.f32.mrb[113].mxu0  ;;  %v6890_v56 = vadd.f32 %v11443_v8, %v11441_v62 }
 0x578   : > { %v7131_v33 = vadd.f32 %v11452_v17, %v7130_v31  ;;  %v8590_v4 = vpop.f32.mrb[114].mxu0 }
 0x579   : > { %v7211_v47 = vadd.f32 %v7139_v3, %v6911_v30  ;;  %v7142_v22 = vadd.f32 %v8590_v4, %v11452_v17  ;;  %v7133_v27 = vpop.f32.mrb[115].mxu0  ;;  %v6882_v30 = vadd.f32 %v11441_v62, %v11445_v13  ;;  %v6923_v3 = vmax.f32 %v6887_v53, 0.0 }
 0x57a   : > { %v7209_v6 = vadd.f32 %v7131_v33, %v6909_v23  ;;  %v7134_v59 = vadd.f32 %v11452_v17, %v7133_v27  ;;  %v6921_v23 = vmax.f32 %v6879_v12, 0.0  ;;  %v6924_v4 = vmax.f32 %v6890_v56, 0.0 }
 0x57b   : > { %7244 = vst.msk [vmem:[%s11460_s27 + $0x90] sm:$0xff] %vm7225_vm0, %v7211_v47  ;;  %v7212_v42 = vadd.f32 %v7142_v22, %v6912_v20  ;;  %v6922_v13 = vmax.f32 %v6882_v30, 0.0 }
 0x57c   : > { %7242 = vst.msk [vmem:[%s11460_s27 + $0x80] sm:$0xff] %vm7225_vm0, %v7209_v6  ;;  %v7210_v58 = vadd.f32 %v7134_v59, %v6910_v45 }
 0x57d   : > { %7245 = vst.msk [vmem:[%s11460_s27 + $0x98] sm:$0xff] %vm7225_vm0, %v7212_v42 }
 0x57e   : > { %7243 = vst.msk [vmem:[%s11460_s27 + $0x88] sm:$0xff] %vm7225_vm0, %v7210_v58  ;;  %v8593_v14 = vpop.f32.mrb[116].mxu0 }
 0x57f   : > { %v7155_v50 = vadd.f32 %v8593_v14, %v11452_v17  ;;  %v7146_v7 = vpop.f32.mrb[117].mxu0 }
 0x580   : > { %v7147_v40 = vadd.f32 %v11452_v17, %v7146_v7  ;;  %v8594_v19 = vpop.f32.mrb[118].mxu0 }
 0x581   : > { %v7215_v29 = vadd.f32 %v7155_v50, %v6915_v44  ;;  %v7158_v46 = vadd.f32 %v8594_v19, %v11452_v17  ;;  %v7149_v49 = vpop.f32.mrb[119].mxu0 }
 0x582   : > { %v7213_v18 = vadd.f32 %v7147_v40, %v6913_v10  ;;  %v7150_v36 = vadd.f32 %v11452_v17, %v7149_v49 }
 0x583   : > { %7248 = vst.msk [vmem:[%s11460_s27 + $0xb0] sm:$0xff] %vm7225_vm0, %v7215_v29  ;;  %v7216_v60 = vadd.f32 %v7158_v46, %v6916_v48 }
 0x584   : > { %7246 = vst.msk [vmem:[%s11460_s27 + $0xa0] sm:$0xff] %vm7225_vm0, %v7213_v18  ;;  %v7214_v24 = vadd.f32 %v7150_v36, %v6914_v9 }
 0x585   : > { %7249 = vst.msk [vmem:[%s11460_s27 + $0xb8] sm:$0xff] %vm7225_vm0, %v7216_v60 }
 0x586   : > { %7247 = vst.msk [vmem:[%s11460_s27 + $0xa8] sm:$0xff] %vm7225_vm0, %v7214_v24  ;;  %v8597_v52 = vpop.f32.mrb[120].mxu0 }
 0x587   : > { %v7171_v37 = vadd.f32 %v8597_v52, %v11452_v17  ;;  %v7162_v63 = vpop.f32.mrb[121].mxu0 }
 0x588   : > { %v7163_v11 = vadd.f32 %v11452_v17, %v7162_v63  ;;  %v8598_v0 = vpop.f32.mrb[122].mxu0 }
 0x589   : > { %v7219_v16 = vadd.f32 %v7171_v37, %v6919_v34  ;;  %v7174_v43 = vadd.f32 %v8598_v0, %v11452_v17  ;;  %v7165_v2 = vpop.f32.mrb[123].mxu0 }
 0x58a   : > { %v7217_v35 = vadd.f32 %v7163_v11, %v6917_v51  ;;  %v7166_v54 = vadd.f32 %v11452_v17, %v7165_v2 }
 0x58b   : > { %7252 = vst.msk [vmem:[%s11460_s27 + $0xd0] sm:$0xff] %vm7225_vm0, %v7219_v16  ;;  %v7220_v5 = vadd.f32 %v7174_v43, %v6920_v15 }
 0x58c   : > { %7250 = vst.msk [vmem:[%s11460_s27 + $0xc0] sm:$0xff] %vm7225_vm0, %v7217_v35  ;;  %v7218_v41 = vadd.f32 %v7166_v54, %v6918_v38 }
 0x58d   : > { %7253 = vst.msk [vmem:[%s11460_s27 + $0xd8] sm:$0xff] %vm7225_vm0, %v7220_v5 }
 0x58e   : > { %7251 = vst.msk [vmem:[%s11460_s27 + $0xc8] sm:$0xff] %vm7225_vm0, %v7218_v41  ;;  %v8601_v39 = vpop.f32.mrb[124].mxu0 }
 0x58f   : > { %v7187_v31 = vadd.f32 %v8601_v39, %v11452_v17  ;;  %v7178_v55 = vpop.f32.mrb[125].mxu0 }
 0x590   : > { %v7179_v33 = vadd.f32 %v11452_v17, %v7178_v55  ;;  %v8602_v8 = vpop.f32.mrb[126].mxu0 }
 0x591   : > { %v7223_v20 = vadd.f32 %v7187_v31, %v6923_v3  ;;  %v7190_v47 = vadd.f32 %v8602_v8, %v11452_v17  ;;  %v7181_v62 = vpop.f32.mrb[127].mxu0 }
 0x592   : > { %v7221_v22 = vadd.f32 %v7179_v33, %v6921_v23  ;;  %v7182_v27 = vadd.f32 %v11452_v17, %v7181_v62 }
 0x593   : > { %7256 = vst.msk [vmem:[%s11460_s27 + $0xf0] sm:$0xff] %vm7225_vm0, %v7223_v20  ;;  %v7224_v45 = vadd.f32 %v7190_v47, %v6924_v4 }
 0x594   : > { %7254 = vst.msk [vmem:[%s11460_s27 + $0xe0] sm:$0xff] %vm7225_vm0, %v7221_v22  ;;  %v7222_v6 = vadd.f32 %v7182_v27, %v6922_v13 }
 0x595   : > { %7257 = vst.msk [vmem:[%s11460_s27 + $0xf8] sm:$0xff] %vm7225_vm0, %v7224_v45 }
 0x596   : > { %7255 = vst.msk [vmem:[%s11460_s27 + $0xe8] sm:$0xff] %vm7225_vm0, %v7222_v6 }
 0x597 PF: > { %s21_s21 = sadd.s32 1, %s9070_s21   ;;  %s11834_s17 = smov %s9062_s19 }
 0x598   : > { %p18_p9 = scmp.ge.s32.totalorder %s21_s21, 18   ;;  %s11835_s18 = smov %s9066_s20 }
 0x599   : > { %s11836_s19 = smov %s11839_s22  ;;  %s11837_s20 = smov %s11843_s23 }
 0x59a   :  { %20 = sbr.rel (!%p18_p9) target bundleno = 3 (0x3), region = 112 }

</bundles_post_ra>
